<compile_context>
chip_gen: v6e
topology: v6e:2x2x1
jax: 0.10.0
libtpu: 0.0.40
codegen_flags: <defaults>
</compile_context>

<pallas_src>
import functools
import math

import jax
import jax.numpy as jnp
from jax import lax
from jax.experimental import pallas as pl
from jax.experimental.pallas import tpu as pltpu


DEFAULT_MASK_VALUE = -0.7 * float(jnp.finfo(jnp.float32).max)


def _round_up(x, m):
    return ((x + m - 1) // m) * m


@functools.lru_cache(maxsize=1)
def _vmem_limit_bytes():
    """Per-generation VMEM budget: 3/4 of physical, capped, with a safe fallback.

    v5e/v6e have 128 MiB VMEM per TensorCore, v7x only 64 MiB, so a hard-coded
    64 MiB limit would oversubscribe v7x.  Fall back to 48 MiB (safe everywhere).
    """
    try:
        cap = int(pltpu.get_tpu_info().vmem_capacity_bytes)
        return max(32 * 1024 * 1024, min((cap * 3) // 4, 96 * 1024 * 1024))
    except Exception:
        return 48 * 1024 * 1024


# --------------------------------------------------------------------------
# Tiled matmul kernel (qkv_proj and o_proj, both bias-free linears)
# --------------------------------------------------------------------------
def _matmul_kernel(x_ref, w_ref, o_ref, acc_ref):
    @pl.when(pl.program_id(2) == 0)
    def _():
        acc_ref[...] = jnp.zeros_like(acc_ref)

    acc_ref[...] += jnp.dot(x_ref[...], w_ref[...],
                            preferred_element_type=jnp.float32)

    @pl.when(pl.program_id(2) == pl.num_programs(2) - 1)
    def _():
        o_ref[...] = acc_ref[...].astype(o_ref.dtype)


def pallas_matmul(x, w, *, tm=512, tn=512, tk=None):
    M, K = x.shape
    K2, N = w.shape
    assert K == K2
    if tk is None:
        tk = 1024 if x.dtype == jnp.bfloat16 else 512
    tm = min(tm, _round_up(M, 8))
    tn = min(tn, _round_up(N, 128))
    tk = min(tk, _round_up(K, 128))
    Mp, Np, Kp = _round_up(M, tm), _round_up(N, tn), _round_up(K, tk)
    # Real Mistral K/N are already multiples of the tiles; usually only the token
    # dim (M) is ragged, so these pads are no-ops for the weight matrix.
    xp = x if (Mp == M and Kp == K) else jnp.pad(x, ((0, Mp - M), (0, Kp - K)))
    wp = w if (Kp == K and Np == N) else jnp.pad(w, ((0, Kp - K), (0, Np - N)))

    out = pl.pallas_call(
        _matmul_kernel,
        out_shape=jax.ShapeDtypeStruct((Mp, Np), x.dtype),
        grid_spec=pltpu.PrefetchScalarGridSpec(
            num_scalar_prefetch=0,
            grid=(Mp // tm, Np // tn, Kp // tk),
            in_specs=[pl.BlockSpec((tm, tk), lambda i, j, k: (i, k)),
                      pl.BlockSpec((tk, tn), lambda i, j, k: (k, j))],
            out_specs=pl.BlockSpec((tm, tn), lambda i, j, k: (i, j)),
            scratch_shapes=[pltpu.VMEM((tm, tn), jnp.float32)]),
        compiler_params=pltpu.CompilerParams(
            dimension_semantics=("parallel", "parallel", "arbitrary"),
            vmem_limit_bytes=_vmem_limit_bytes()),
    )(xp, wp)
    if Mp != M or Np != N:
        out = out[:M, :N]
    return out


# --------------------------------------------------------------------------
# RoPE kernel — applied once to q (scale folded in) and once to k.
# --------------------------------------------------------------------------
def _rotate_half(x):
    d = x.shape[-1]
    rolled = pltpu.roll(x, shift=d // 2, axis=x.ndim - 1)
    idx = lax.broadcasted_iota(jnp.int32, x.shape, x.ndim - 1)
    return jnp.where(idx < d // 2, -rolled, rolled)


def _rope_kernel(x_ref, cos_ref, sin_ref, o_ref, *, scale):
    x = x_ref[...].astype(jnp.float32)
    c = cos_ref[...].astype(jnp.float32)
    s = sin_ref[...].astype(jnp.float32)
    y = x * c + _rotate_half(x) * s
    if scale != 1.0:
        y = y * scale
    o_ref[...] = y.astype(o_ref.dtype)


def pallas_rope(x, cos, sin, *, head_dim, scale=1.0, block_s=256):
    """x: [B, Sp, H*D]; cos/sin: [B, Sp, D].  Returns rotated x (same layout)."""
    B, Sp, HD = x.shape
    D = head_dim
    H = HD // D
    sb = min(block_s, Sp)
    assert Sp % sb == 0
    return pl.pallas_call(
        functools.partial(_rope_kernel, scale=scale),
        out_shape=jax.ShapeDtypeStruct((B, Sp, HD), x.dtype),
        grid_spec=pltpu.PrefetchScalarGridSpec(
            num_scalar_prefetch=0,
            grid=(B, Sp // sb, H),
            in_specs=[pl.BlockSpec((None, sb, D), lambda b, t, h: (b, t, h)),
                      pl.BlockSpec((None, sb, D), lambda b, t, h: (b, t, 0)),
                      pl.BlockSpec((None, sb, D), lambda b, t, h: (b, t, 0))],
            out_specs=pl.BlockSpec((None, sb, D), lambda b, t, h: (b, t, h))),
        compiler_params=pltpu.CompilerParams(
            dimension_semantics=("parallel", "parallel", "parallel"),
            vmem_limit_bytes=_vmem_limit_bytes()),
    )(x, cos, sin)


# --------------------------------------------------------------------------
# Flash attention kernel: GQA group packing, causal + sliding-window masking,
# band-restricted KV iteration, native-dtype MXU operands, f32 accumulation.
# --------------------------------------------------------------------------
def _flash_attn_kernel(q_ref, k_ref, v_ref, o_ref, q_scr, m_scr, l_scr, acc_scr,
                       *, sliding_window, tq, tkv, G, D, L):
    qi = pl.program_id(2)
    ki = pl.program_id(3)
    q_start = qi * tq

    # Live-band bookkeeping (must match the kv index_map).
    hi_q = ((qi + 1) * tq - 1) // tkv
    if sliding_window is None:
        lo_q = 0
    else:
        lo_q = jnp.maximum((qi * tq - (sliding_window - 1)) // tkv, 0)
    raw = hi_q - (L - 1) + ki           # actual kv tile index for live steps
    live = raw >= lo_q
    k_start = raw * tkv

    @pl.when(ki == 0)
    def _init():
        m_scr[...] = jnp.full_like(m_scr, DEFAULT_MASK_VALUE)
        l_scr[...] = jnp.zeros_like(l_scr)
        acc_scr[...] = jnp.zeros_like(acc_scr)
        # Stack the G query heads of this KV group into (G, tq, D) scratch.
        # Slices are lane-aligned (multiples of D=128) -> cheap copies.
        q = q_ref[...]                                   # (tq, G*D)
        for g in range(G):
            q_scr[g] = q[:, g * D:(g + 1) * D]

    # Does this tile need per-element masking (diagonal / window-edge / pad)?
    cross_diag = (k_start + (tkv - 1)) > q_start
    if sliding_window is None:
        needs_mask = cross_diag
    else:
        needs_mask = jnp.logical_or(
            cross_diag, (q_start + (tq - 1) - k_start) >= sliding_window)

    def _step(masked):
        q2 = q_scr[...].reshape(G * tq, D)               # native dtype (bf16 ok)
        s = lax.dot_general(q2, k_ref[...], (((1,), (1,)), ((), ())),
                            preferred_element_type=jnp.float32)
        s = s.reshape(G, tq, tkv)
        mask = None
        if masked:
            q_pos = q_start + lax.broadcasted_iota(jnp.int32, (tq, tkv), 0)
            k_pos = k_start + lax.broadcasted_iota(jnp.int32, (tq, tkv), 1)
            mask = k_pos <= q_pos                         # causal
            if sliding_window is not None:
                mask = jnp.logical_and(mask, (q_pos - k_pos) < sliding_window)
            mask = mask[None]                             # (1, tq, tkv)
            s = jnp.where(mask, s, DEFAULT_MASK_VALUE)

        m_prev = m_scr[...]                               # (G, tq, 1)
        m_curr = jnp.max(s, axis=-1, keepdims=True)
        m_next = jnp.maximum(m_prev, m_curr)
        alpha = jnp.exp(m_prev - m_next)
        p = jnp.exp(s - m_next)
        if masked:
            p = jnp.where(mask, p, 0.0)
        l_scr[...] = alpha * l_scr[...] + jnp.sum(p, axis=-1, keepdims=True)
        pv = lax.dot_general(p.reshape(G * tq, tkv).astype(v_ref.dtype),
                             v_ref[...], (((1,), (0,)), ((), ())),
                             preferred_element_type=jnp.float32)
        acc_scr[...] = alpha * acc_scr[...] + pv.reshape(G, tq, D)
        m_scr[...] = m_next

    @pl.when(jnp.logical_and(live, needs_mask))
    def _boundary():
        _step(True)

    @pl.when(jnp.logical_and(live, jnp.logical_not(needs_mask)))
    def _interior():
        _step(False)

    @pl.when(ki == pl.num_programs(3) - 1)
    def _finalize():
        l = l_scr[...]
        l = jnp.where(l == 0.0, 1.0, l)
        out = acc_scr[...] * pl.reciprocal(l, approx=True)   # (G, tq, D) f32
        for g in range(G):
            o_ref[:, g * D:(g + 1) * D] = out[g].astype(o_ref.dtype)


def pallas_flash_attention(q, k, v, cos, sin, *, scale, sliding_window,
                           head_dim, block_q=256, block_kv=256):
    """q: [B, S, Hq*D]; k, v: [B, S, Hkv*D]; cos/sin: [B, S, D].

    RoPE is applied in-function (scale folded into q).  Output: [B, S, Hq*D].
    """
    B, S, QD = q.shape
    D = head_dim
    Hq = QD // D
    Hkv = k.shape[-1] // D
    G = Hq // Hkv
    W = sliding_window

    tq = min(block_q, _round_up(S, 8))
    tkv = min(block_kv, _round_up(S, 8))
    if (tq % tkv != 0) and (tkv % tq != 0):
        tkv = tq
    tmax = max(tq, tkv)
    Sp = _round_up(S, tmax)

    if Sp != S:
        # TODO(synk): the ragged tail could be handled fully in-kernel instead of
        # padding; padding keeps OOB behaviour well-defined at a small cost.
        pad = ((0, 0), (0, Sp - S), (0, 0))
        q = jnp.pad(q, pad)
        k = jnp.pad(k, pad)
        v = jnp.pad(v, pad)
        cos = jnp.pad(cos, pad)
        sin = jnp.pad(sin, pad)

    # RoPE once per tensor (q also absorbs the 1/sqrt(D) scale).
    q = pallas_rope(q, cos, sin, head_dim=D, scale=scale, block_s=tq)
    k = pallas_rope(k, cos, sin, head_dim=D, scale=1.0, block_s=tq)

    nTq = Sp // tq
    nTkv = Sp // tkv

    def _hi(qi):
        return ((qi + 1) * tq - 1) // tkv

    def _lo(qi):
        if W is None:
            return 0
        return max(0, (qi * tq - (W - 1)) // tkv)

    # Static length of the live KV band (max over q tiles).
    L = max(_hi(qi) - _lo(qi) + 1 for qi in range(nTq))
    L = min(L, nTkv)

    def _kv_index(b, h, qi, ki):
        hi_q = ((qi + 1) * tq - 1) // tkv
        raw = hi_q - (L - 1) + ki
        if W is None:
            lo_q = 0
        else:
            lo_q = jnp.maximum((qi * tq - (W - 1)) // tkv, 0)
        # Dead steps are clamped onto tile lo_q (needed anyway) so their DMAs
        # are elided (consecutive identical block indices are not re-fetched).
        return (b, jnp.maximum(raw, lo_q), h)

    kernel = functools.partial(_flash_attn_kernel, sliding_window=W,
                               tq=tq, tkv=tkv, G=G, D=D, L=L)

    out = pl.pallas_call(
        kernel,
        out_shape=jax.ShapeDtypeStruct((B, Sp, Hq * D), q.dtype),
        grid_spec=pltpu.PrefetchScalarGridSpec(
            num_scalar_prefetch=0,
            grid=(B, Hkv, nTq, L),
            in_specs=[
                pl.BlockSpec((None, tq, G * D),
                             lambda b, h, qi, ki: (b, qi, h)),
                pl.BlockSpec((None, tkv, D), _kv_index),
                pl.BlockSpec((None, tkv, D), _kv_index),
            ],
            out_specs=pl.BlockSpec((None, tq, G * D),
                                   lambda b, h, qi, ki: (b, qi, h)),
            scratch_shapes=[
                pltpu.VMEM((G, tq, D), q.dtype),     # group-stacked rotated q
                pltpu.VMEM((G, tq, 1), jnp.float32),  # running max
                pltpu.VMEM((G, tq, 1), jnp.float32),  # running denominator
                pltpu.VMEM((G, tq, D), jnp.float32),  # output accumulator
            ]),
        compiler_params=pltpu.CompilerParams(
            # Three leading parallel axes keep both v7x TensorCores busy.
            dimension_semantics=("parallel", "parallel", "parallel",
                                 "arbitrary"),
            vmem_limit_bytes=_vmem_limit_bytes()),
    )(q, k, v)

    if Sp != S:
        out = out[:, :S, :]
    return out


# --------------------------------------------------------------------------
# MistralAttention module wrapper
# --------------------------------------------------------------------------
class MistralAttentionPallas:
    def __init__(self, hidden_size, num_heads, num_kv_heads, head_dim,
                 sliding_window, dtype=jnp.float32, seed=0,
                 attn_block_q=256, attn_block_kv=256):
        self.hidden_size = hidden_size
        self.num_heads = num_heads
        self.num_kv_heads = num_kv_heads
        self.head_dim = head_dim
        self.num_key_value_groups = num_heads // num_kv_heads
        self.sliding_window = sliding_window
        self.dtype = dtype
        self.attn_block_q = attn_block_q
        self.attn_block_kv = attn_block_kv

        key = jax.random.PRNGKey(seed)
        k1, k2 = jax.random.split(key)
        qkv_out = (num_heads + 2 * num_kv_heads) * head_dim
        # Deterministic synthetic weights (qkv_proj and o_proj, bias=False).
        self.w_qkv = (0.02 * jax.random.normal(
            k1, (hidden_size, qkv_out), jnp.float32)).astype(dtype)
        self.w_o = (0.02 * jax.random.normal(
            k2, (num_heads * head_dim, hidden_size), jnp.float32)).astype(dtype)

    def __call__(self, hidden_states, rotary_pos_emb):
        # hidden_states: [B, S, hidden]; rotary_pos_emb: (cos, sin) each [B*S, D]
        cos, sin = rotary_pos_emb
        B, S, Hd = hidden_states.shape
        T = B * S
        nq, nkv, D = self.num_heads, self.num_kv_heads, self.head_dim

        x = hidden_states.reshape(T, Hd)

        # qkv_proj + flatten(0, -2) + split_qkv  (token-major layout throughout,
        # only free reshapes below — no head transposes, no extra HBM passes)
        qkv = pallas_matmul(x, self.w_qkv)                        # [T,(nq+2nkv)D]
        q = qkv[:, :nq * D].reshape(B, S, nq * D)
        k = qkv[:, nq * D:(nq + nkv) * D].reshape(B, S, nkv * D)
        v = qkv[:, (nq + nkv) * D:].reshape(B, S, nkv * D)
        cos_b = cos.reshape(B, S, D)
        sin_b = sin.reshape(B, S, D)

        # RoPE + flash attention (causal prefill, GQA, sliding window)
        ob = pallas_flash_attention(q, k, v, cos_b, sin_b,
                                    scale=1.0 / math.sqrt(D),
                                    sliding_window=self.sliding_window,
                                    head_dim=D,
                                    block_q=self.attn_block_q,
                                    block_kv=self.attn_block_kv)  # [B,S,nq*D]

        # o_proj
        out = pallas_matmul(ob.reshape(T, nq * D), self.w_o)      # [T, hidden]
        return out.reshape(B, S, Hd)

    # ---------------- pure-JAX reference for correctness check -------------
    def reference(self, hidden_states, rotary_pos_emb):
        cos, sin = rotary_pos_emb
        B, S, Hd = hidden_states.shape
        T = B * S
        nq, nkv, D = self.num_heads, self.num_kv_heads, self.head_dim
        x = hidden_states.reshape(T, Hd).astype(jnp.float32)
        w_qkv = self.w_qkv.astype(jnp.float32)
        w_o = self.w_o.astype(jnp.float32)
        qkv = x @ w_qkv
        q = qkv[:, :nq * D].reshape(T, nq, D)
        k = qkv[:, nq * D:(nq + nkv) * D].reshape(T, nkv, D)
        v = qkv[:, (nq + nkv) * D:].reshape(T, nkv, D)

        def rot(xx):
            d = xx.shape[-1] // 2
            return jnp.concatenate([-xx[..., d:], xx[..., :d]], axis=-1)

        cos = cos.astype(jnp.float32)
        sin = sin.astype(jnp.float32)
        q = q * cos[:, None, :] + rot(q) * sin[:, None, :]
        k = k * cos[:, None, :] + rot(k) * sin[:, None, :]

        qb = q.reshape(B, S, nq, D).transpose(0, 2, 1, 3)
        kb = k.reshape(B, S, nkv, D).transpose(0, 2, 1, 3)
        vb = v.reshape(B, S, nkv, D).transpose(0, 2, 1, 3)
        kb = jnp.repeat(kb, self.num_key_value_groups, axis=1)
        vb = jnp.repeat(vb, self.num_key_value_groups, axis=1)
        s = jnp.einsum('bhqd,bhkd->bhqk', qb, kb) / math.sqrt(D)
        qi = jnp.arange(S)[:, None]
        kj = jnp.arange(S)[None, :]
        mask = (kj <= qi)
        if self.sliding_window is not None:
            mask = mask & ((qi - kj) < self.sliding_window)
        s = jnp.where(mask[None, None], s, -jnp.inf)
        p = jax.nn.softmax(s, axis=-1)
        ob = jnp.einsum('bhqk,bhkd->bhqd', p, vb)
        o = ob.transpose(0, 2, 1, 3).reshape(T, nq * D)
        return (o @ w_o).reshape(B, S, Hd)


def make_rope(positions, head_dim, base=10000.0):
    half = head_dim // 2
    inv_freq = 1.0 / (base ** (jnp.arange(0, half, dtype=jnp.float32) / half))
    freqs = positions[:, None].astype(jnp.float32) * inv_freq[None, :]  # [T,D/2]
    emb = jnp.concatenate([freqs, freqs], axis=-1)                       # [T,D]
    return jnp.cos(emb), jnp.sin(emb)


if __name__ == "__main__":
    # Small Mistral-like config (head_dim=128 = one full lane vreg width).
    batch, seq = 2, 200          # seq deliberately not a tile multiple
    hidden_size = 512
    num_heads = 4
    num_kv_heads = 2
    head_dim = hidden_size // num_heads      # 128

    key = jax.random.PRNGKey(0)
    hidden_f32 = jax.random.normal(key, (batch, seq, hidden_size), jnp.float32)

    # rotary tables per flattened token (positions restart per sequence)
    positions = jnp.tile(jnp.arange(seq), batch)                 # [B*S]
    cos, sin = make_rope(positions, head_dim)

    configs = [
        # (name, dtype, sliding_window, attn block, tolerance)
        ("f32 sliding-window", jnp.float32, 96, 128, 1e-2),
        ("f32 causal", jnp.float32, None, 128, 1e-2),
        ("bf16 sliding-window", jnp.bfloat16, 96, 128, 5e-2),
    ]

    for name, dtype, window, blk, tol in configs:
        attn = MistralAttentionPallas(hidden_size, num_heads, num_kv_heads,
                                      head_dim, window, dtype=dtype, seed=0,
                                      attn_block_q=blk, attn_block_kv=blk)
        hs = hidden_f32.astype(dtype)
        out = attn(hs, (cos, sin))
        out = jax.block_until_ready(out)
        assert out.shape == (batch, seq, hidden_size)
        ref = attn.reference(hs, (cos, sin))
        err = float(jnp.max(jnp.abs(out.astype(jnp.float32) - ref)))
        assert err < tol, f"{name}: max abs err {err}"

    print("KERNEL_OK")
</pallas_src>

<mosaic_0001>
module attributes {stable_mosaic.version = 11 : i64} {
  func.func @_matmul_kernel(%arg0: i32, %arg1: i32, %arg2: i32, %arg3: memref<400x512xf32, #tpu.memory_space<vmem>>, %arg4: memref<512x512xf32, #tpu.memory_space<vmem>>, %arg5: memref<400x512xf32, #tpu.memory_space<vmem>>, %arg6: memref<400x512xf32, #tpu.memory_space<vmem>>) attributes {dimension_semantics = [#tpu.dimension_semantics<parallel>, #tpu.dimension_semantics<parallel>, #tpu.dimension_semantics<arbitrary>], iteration_bounds = array<i64: 1, 2, 1>, scalar_prefetch = 0 : i64, scratch_operands = 1 : i64, tpu.core_type = #tpu.core_type<tc>, window_params = [{transform_indices = @transform_0, window_bounds = array<i64: 400, 512>}, {transform_indices = @transform_1, window_bounds = array<i64: 512, 512>}, {transform_indices = @transform_2, window_bounds = array<i64: 400, 512>}]} {
    %c0_i32 = arith.constant 0 : i32
    %0 = arith.cmpi eq, %arg2, %c0_i32 : i32
    %1 = arith.extui %0 : i1 to i32
    %c0_i32_0 = arith.constant 0 : i32
    %2 = arith.cmpi ne, %1, %c0_i32_0 : i32
    scf.if %2 {
      %cst_10 = arith.constant 0.000000e+00 : f32
      %12 = vector.broadcast %cst_10 : f32 to vector<400x512xf32>
      %c0_11 = arith.constant 0 : index
      %c0_12 = arith.constant 0 : index
      %13 = vector.load %arg6[%c0_11, %c0_12] : memref<400x512xf32, #tpu.memory_space<vmem>>, vector<400x512xf32>
      tpu.vector_store %arg6[%c0_11, %c0_12], %12 {strides = array<i32>} : memref<400x512xf32, #tpu.memory_space<vmem>>, vector<400x512xf32>,
    } else {
    }
    %c0 = arith.constant 0 : index
    %c0_1 = arith.constant 0 : index
    %3 = vector.load %arg6[%c0, %c0_1] : memref<400x512xf32, #tpu.memory_space<vmem>>, vector<400x512xf32>
    %c0_2 = arith.constant 0 : index
    %c0_3 = arith.constant 0 : index
    %4 = vector.load %arg3[%c0_2, %c0_3] : memref<400x512xf32, #tpu.memory_space<vmem>>, vector<400x512xf32>
    %c0_4 = arith.constant 0 : index
    %c0_5 = arith.constant 0 : index
    %5 = vector.load %arg4[%c0_4, %c0_5] : memref<512x512xf32, #tpu.memory_space<vmem>>, vector<512x512xf32>
    %cst = arith.constant dense<0.000000e+00> : vector<400x512xf32>
    %6 = tpu.matmul %4, %5, %cst {dimension_numbers = #tpu.dot_dimension_numbers<[1], [0], [0], [1], [0, 0, 1, 1], [], []>} : vector<400x512xf32>, vector<512x512xf32>, vector<400x512xf32> -> vector<400x512xf32>
    %7 = arith.addf %3, %6 : vector<400x512xf32>
    %c0_6 = arith.constant 0 : index
    %c0_7 = arith.constant 0 : index
    %8 = vector.load %arg6[%c0_6, %c0_7] : memref<400x512xf32, #tpu.memory_space<vmem>>, vector<400x512xf32>
    tpu.vector_store %arg6[%c0_6, %c0_7], %7 {strides = array<i32>} : memref<400x512xf32, #tpu.memory_space<vmem>>, vector<400x512xf32>,
    %c0_i32_8 = arith.constant 0 : i32
    %9 = arith.cmpi eq, %arg2, %c0_i32_8 : i32
    %10 = arith.extui %9 : i1 to i32
    %c0_i32_9 = arith.constant 0 : i32
    %11 = arith.cmpi ne, %10, %c0_i32_9 : i32
    scf.if %11 {
      %c0_10 = arith.constant 0 : index
      %c0_11 = arith.constant 0 : index
      %12 = vector.load %arg6[%c0_10, %c0_11] : memref<400x512xf32, #tpu.memory_space<vmem>>, vector<400x512xf32>
      %c0_12 = arith.constant 0 : index
      %c0_13 = arith.constant 0 : index
      %13 = vector.load %arg5[%c0_12, %c0_13] : memref<400x512xf32, #tpu.memory_space<vmem>>, vector<400x512xf32>
      tpu.vector_store %arg5[%c0_12, %c0_13], %12 {strides = array<i32>} : memref<400x512xf32, #tpu.memory_space<vmem>>, vector<400x512xf32>,
    } else {
    }
    return
  }
  func.func @transform_0(%arg0: i32, %arg1: i32, %arg2: i32) -> (i32, i32) {
    %c0_i32 = arith.constant 0 : i32
    return %arg0, %arg2 : i32, i32
  }
  func.func @transform_1(%arg0: i32, %arg1: i32, %arg2: i32) -> (i32, i32) {
    %c0_i32 = arith.constant 0 : i32
    return %arg2, %arg1 : i32, i32
  }
  func.func @transform_2(%arg0: i32, %arg1: i32, %arg2: i32) -> (i32, i32) {
    %c0_i32 = arith.constant 0 : i32
    return %arg0, %arg1 : i32, i32
  }
}

</mosaic_0001>

<bundles_post_ra>
// kernel: tpu_custom_call.1
= control target key start
LH: loop header
LB: loop body
LE: loop exit
PB: predicated region body
PF: predicated region fallthrough
CT: control target
= control target key end

     0   :  { %7 = vsyncpa [#allocation4], 0  ;;  %s4572_s0 = inlined_call_operand.hbm [shape: f32[400,512], index: 0, kind: input, shape index: {}]   ;;  %s4573_s1 = inlined_call_operand.hbm [shape: f32[512,1024], index: 1, kind: input, shape index: {}]   ;;  %s4574_s2 = inlined_call_operand.hbm [shape: f32[400,1024], index: 2, kind: output, shape index: {}]  }
   0x1   :  { %8 = vsyncpa [#allocation7], 0 }
   0x2   :  { %10 = vsyncpa [#allocation7 + $0x1], 0 }
   0x3   :  { %11 = vsyncpa [#allocation5], 0 }
   0x4   :  { %13 = vsyncpa [#allocation5 + $0x1], 0  ;;  %s3930_s9 = smov 0   ;;  %s3932_s10 = smov 0  }
   0x5   :  { %s3934_s11 = smov 0   ;;  %s3936_s12 = smov 0  }
   0x6   :  { %s3938_s13 = smov 0   ;;  %s3940_s14 = smov 0  }
   0x7 LB: > { %4580 = sst [smem:[#allocation12_spill]] %s3904_s14  ;;  %s3469_s15 = sadd.s32 4294967295, %s3904_s14   ;;  %s3904_s14 = sphi %s3940_s14, %s4600_s14   ;;  %s3900_s13 = sphi %s3938_s13, %s4599_s13   ;;  %s3896_s12 = sphi %s3936_s12, %s4598_s12   ;;  %s3892_s11 = sphi %s3934_s11, %s4597_s11   ;;  %s3888_s10 = sphi %s3932_s10, %s4596_s10   ;;  %s3884_s9 = sphi %s3930_s9, %s4595_s9  }
   0x8   : > { %s3470_s16 = sadd.s32 4294967294, %s3904_s14   ;;  %p82_p0 = scmp.ne.s32.totalorder %s3892_s11, %s3888_s10 }
   0x9   : > { %p83_p1 = scmp.eq.s32.totalorder %s3904_s14, 0  ;;  %p88_p2 = scmp.ne.s32.totalorder %s3888_s10, %s3884_s9 }
   0xa   : > { %p3967_p3 = scmp.eq.s32.totalorder %s3469_s15, 0  ;;  %p114_p5 = scmp.eq.s32.totalorder %s3469_s15, 1 }
   0xb   : > { %p3971_p4 = por %p83_p1, %p82_p0  ;;  %p120_p7 = scmp.eq.s32.totalorder %s3470_s16, 1 }
   0xc   : > { %p3977_p6 = por %p3967_p3, %p88_p2  ;;  %p3981_p8 = por %p114_p5, %p82_p0 }
   0xd   : > { %p3471_p9 = scmp.ge.s32.totalorder %s3904_s14, 1  ;;  %p3986_p10 = por %p120_p7, %p88_p2 }
   0xe   : > { %s4583_s19 = scalar_select %p3977_p6, 1, 0 }
   0xf   : > { %s4584_s20 = scalar_select %p3981_p8, 1, 0 }
  0x10   : > { %s4585_s21 = scalar_select %p3986_p10, 1, 0 }
  0x11   : > { %p127_p11 = scmp.lt.s32.totalorder %s3904_s14, 3  ;;  %s3906_s23 = smov [#allocation3]  }
  0x12   : > { %s145_s24 = sshll.u32 %s3906_s23, 4  ;;  %p3508_p1 = scmp.lt.s32.totalorder %s3904_s14, 2  ;;  %s146_s24 = int_to_ptr.vmem [resolvable:$true] %s145_s24 }
  0x13   : > { %p3991_p12 = pnand %p3471_p9, %p127_p11  ;;  %s34_s27 = sadd.s32 1, %s3900_s13 }
  0x14   : > { %p4007_p2 = pnand %p3508_p1, %p3971_p4  ;;  %s3777_s28 = scalar_lea.vmem %s146_s24, 25600 }
  0x15   : > { %p3495_p13 = pneg %p3991_p12  ;;  %p3778_p9 = scmp.ne.s32.totalorder %s146_s24, %s3777_s28 }
  0x16   : > { %p3785_p0 = scmp.lt.s32.totalorder %s146_s24, %s146_s24  ;;  %p3786_p8 = scmp.lt.s32.totalorder %s3777_s28, %s3777_s28 }
  0x17   : > { %p4001_p5 = pnand %p3495_p13, %p3967_p3 }
  0x18   : > { %p3787_p6 = por %p3786_p8, %p3785_p0 }
  0x19   : > { %p3768_p7 = pneg %p4001_p5 }
  0x1b   : > { %p3780_p11 = pnand %p3778_p9, %p3768_p7 }
  0x1d   : > { %p3781_p10 = pneg %p3780_p11 }
  0x1f   : > { %p3788_p13 = pnand %p3787_p6, %p3781_p10 }
  0x21   : > { %3791 = shalt.err (!%p3788_p13)
}
  0x22   : > { %s4579_s29 = smov 512   ;;  %s3908_s30 = smov 32  }
  0x23   : > { %3498 = dma.hbm_to_vmem [thread:$0]  (!%p4001_p5), %s4572_s0, 25600, %s146_s24, [#allocation4], %s4579_s29, %s4579_s29, %s3908_s30  }
  0x24   : > { %p36_p4 = scmp.ge.s32.totalorder %s34_s27, 2  ;;  %s75_s5 = sadd.s32 1, %s3892_s11 }
  0x25   : > { %s159_s6 = sand.u32 1, %s3892_s11   ;;  %s3484_s15 = sshll.u32 %s3900_s13, 9 }
  0x26   : > { %s4602_s27 = smov (%p36_p4, %s34_s27), 0  ;;  %s3474_s7 = sshll.u32 %s159_s6, 11 }
  0x27   : > { %s71_s8 = ssub.s32 %s3900_s13, %s4602_s27  ;;  %s172_s23 = scalar_lea.hbm %s4573_s1, %s3484_s15 }
  0x28   : > { %p73_p6 = scmp.eq.s32.totalorder %s71_s8, 0  ;;  %s163_s25 = scalar_lea.vmem [#allocation6], %s3474_s7 }
  0x29   : > { %s173_s28 = sshll.u32 %s163_s25, 4  ;;  %s160_s24 = scalar_lea.sflag [#allocation7], %s159_s6  ;;  %s174_s28 = int_to_ptr.vmem [resolvable:$true] %s173_s28 }
  0x2a   : > { %s4033_s14 = scalar_select %p73_p6, %s3892_s11, %s75_s5  }
  0x2b   : > { %p3794_p8 = pneg %p4007_p2  ;;  %s3805_s3 = scalar_lea.vmem %s174_s28, 32768 }
  0x2c   : > { %p3806_p10 = scmp.ne.s32.totalorder %s174_s28, %s3805_s3  ;;  %s3909_s4 = smov [#allocation6]  }
  0x2d   : > { %s3810_s29 = sshll.u32 %s3909_s4, 4  ;;  %s3811_s29 = int_to_ptr.vmem [resolvable:$false] %s3810_s29 }
  0x2e   : > { %p3808_p0 = pnand %p3806_p10, %p3794_p8  ;;  %s3812_s8 = scalar_lea.vmem %s3811_s29, 65536 }
  0x2f   : > { %p3813_p5 = scmp.lt.s32.totalorder %s174_s28, %s3811_s29  ;;  %p3814_p7 = scmp.lt.s32.totalorder %s3812_s8, %s3805_s3 }
  0x30   : > { %p3809_p1 = pneg %p3808_p0 }
  0x31   : > { %p3815_p9 = por %p3814_p7, %p3813_p5 }
  0x33   : > { %p3816_p11 = pnand %p3815_p9, %p3809_p1 }
  0x35   : > { %3819 = shalt.err (!%p3816_p11)
}
  0x36   : > { %s3910_s7 = smov 1024   ;;  %s4589_s5 = smov 512  }
  0x37   : > { %3502 = dma.hbm_to_vmem [thread:$0]  (!%p4007_p2), %s172_s23, 32768, %s174_s28, %s160_s24, %s3910_s7, %s4589_s5, %s3908_s30  }
  0x38   : > { %185 = sbr.rel (%p3991_p12) target bundleno = 741 (0x2e5), region = 28 }
  0x3d   : > { %3871 = dma.done.wait (%p3967_p3), [#allocation4], 25600  }
  0x3e   : > { %3873 = vsyncadd (%p3967_p3), [#allocation4], 4294941696  ;;  %s4048_s29 = sand.u32 1, %s3888_s10   ;;  %p4590_p2 = scmp.ne.s32.totalorder %s4583_s19, 0 }
  0x3f   : > { %s3479_s6 = sshll.u32 %s4048_s29, 11  ;;  %s192_s26 = scalar_lea.sflag [#allocation7], %s4048_s29 }
  0x40   : > { %s4052_s15 = scalar_lea.vmem [#allocation6], %s3479_s6 }
  0x41   : > { %3875 = dma.done.wait (%p4590_p2), %s192_s26, 32768  }
  0x42   : > { %3877 = vsyncadd (%p4590_p2), %s192_s26, 4294934528  ;;  %v887_v0 = vld [vmem:[%s4052_s15 + $0x1e8] sm:$0xff]  ;;  %v886_v2 = vld [vmem:[%s4052_s15 + $0x1e0] sm:$0xff]  ;;  %s3486_s17 = smul.u32 1600, %s4048_s29  ;;  %s3485_s22 = sshll.u32 %s3896_s12, 9 }
  0x43   : > { %v1015_v1 = vld [vmem:[%s4052_s15 + $0x5e8] sm:$0xff]  ;;  %1082 = vmatprep.subr.mxu0 %v887_v0  ;;  %v1014_v3 = vld [vmem:[%s4052_s15 + $0x5e0] sm:$0xff]  ;;  %s4520_s23 = scalar_lea.hbm %s4574_s2, %s3485_s22  ;;  %s3346_s12 = scalar_lea.sflag [#allocation5], %s4048_s29 }
  0x44   : > { %1447 = vmatprep.subr.mxu1 %v1015_v1  ;;  %v883_v4 = vld [vmem:[%s4052_s15 + $0x1c8] sm:$0xff]  ;;  %1083 = vmatpush1.msra.mxu0 %v886_v2  ;;  %v882_v6 = vld [vmem:[%s4052_s15 + $0x1c0] sm:$0xff]  ;;  %s4315_s19 = scalar_lea.vmem [#allocation8], %s3486_s17  ;;  %p4591_p12 = scmp.ne.s32.totalorder %s4584_s20, 0 }
  0x45   : > { %v1011_v5 = vld [vmem:[%s4052_s15 + $0x5c8] sm:$0xff]  ;;  %1448 = vmatpush1.msra.mxu1 %v1014_v3  ;;  %v1010_v7 = vld [vmem:[%s4052_s15 + $0x5c0] sm:$0xff]  ;;  %1084 = vmatprep.subr.mxu0 %v883_v4  ;;  %s3362_s30 = sshll.u32 %s4315_s19, 4  ;;  %s3911_s28 = smov [#allocation8]   ;;  %s4522_s30 = int_to_ptr.vmem [resolvable:$true] %s3362_s30 }
  0x46   : > { %v879_v8 = vld [vmem:[%s4052_s15 + $0x1a8] sm:$0xff]  ;;  %1449 = vmatprep.subr.mxu1 %v1011_v5  ;;  %v878_v10 = vld [vmem:[%s4052_s15 + $0x1a0] sm:$0xff]  ;;  %1085 = vmatpush1.msra.mxu0 %v882_v6  ;;  %s3820_s25 = scalar_lea.vmem %s4522_s30, 25600  ;;  %s3824_s24 = sshll.u32 %s3911_s28, 4  ;;  %s3825_s24 = int_to_ptr.vmem [resolvable:$false] %s3824_s24 }
  0x47   : > { %v1007_v9 = vld [vmem:[%s4052_s15 + $0x5a8] sm:$0xff]  ;;  %v1006_v11 = vld [vmem:[%s4052_s15 + $0x5a0] sm:$0xff]  ;;  %1450 = vmatpush1.msra.mxu1 %v1010_v7  ;;  %1086 = vmatprep.subr.mxu0 %v879_v8  ;;  %p3821_p3 = scmp.ne.s32.totalorder %s4522_s30, %s3820_s25  ;;  %s3826_s3 = scalar_lea.vmem %s3825_s24, 51200 }
  0x48   : > { %v875_v12 = vld [vmem:[%s4052_s15 + $0x188] sm:$0xff]  ;;  %1451 = vmatprep.subr.mxu1 %v1007_v9  ;;  %v874_v14 = vld [vmem:[%s4052_s15 + $0x180] sm:$0xff]  ;;  %1087 = vmatpush1.msra.mxu0 %v878_v10  ;;  %p3827_p6 = scmp.lt.s32.totalorder %s4522_s30, %s3825_s24  ;;  %p3828_p8 = scmp.lt.s32.totalorder %s3826_s3, %s3820_s25 }
  0x49   : > { %v1003_v13 = vld [vmem:[%s4052_s15 + $0x588] sm:$0xff]  ;;  %v1002_v15 = vld [vmem:[%s4052_s15 + $0x580] sm:$0xff]  ;;  %1452 = vmatpush1.msra.mxu1 %v1006_v11  ;;  %1088 = vmatprep.subr.mxu0 %v875_v12  ;;  %p3822_p13 = pnand %p3821_p3, %p4591_p12 }
  0x4a   : > { %v871_v16 = vld [vmem:[%s4052_s15 + $0x168] sm:$0xff]  ;;  %1453 = vmatprep.subr.mxu1 %v1003_v13  ;;  %v870_v18 = vld [vmem:[%s4052_s15 + $0x160] sm:$0xff]  ;;  %1089 = vmatpush1.msra.mxu0 %v874_v14  ;;  %p3829_p10 = por %p3828_p8, %p3827_p6 }
  0x4b   : > { %v999_v17 = vld [vmem:[%s4052_s15 + $0x568] sm:$0xff]  ;;  %v998_v19 = vld [vmem:[%s4052_s15 + $0x560] sm:$0xff]  ;;  %1454 = vmatpush1.msra.mxu1 %v1002_v15  ;;  %1090 = vmatprep.subr.mxu0 %v871_v16  ;;  %p3823_p4 = pneg %p3822_p13 }
  0x4c   : > { %v867_v20 = vld [vmem:[%s4052_s15 + $0x148] sm:$0xff]  ;;  %1455 = vmatprep.subr.mxu1 %v999_v17  ;;  %v866_v22 = vld [vmem:[%s4052_s15 + $0x140] sm:$0xff]  ;;  %1091 = vmatpush1.msra.mxu0 %v870_v18 }
  0x4d   : > { %v995_v21 = vld [vmem:[%s4052_s15 + $0x548] sm:$0xff]  ;;  %v994_v23 = vld [vmem:[%s4052_s15 + $0x540] sm:$0xff]  ;;  %1456 = vmatpush1.msra.mxu1 %v998_v19  ;;  %1092 = vmatprep.subr.mxu0 %v867_v20  ;;  %p3830_p0 = pnand %p3829_p10, %p3823_p4 }
  0x4e   : > { %v863_v24 = vld [vmem:[%s4052_s15 + $0x128] sm:$0xff]  ;;  %1457 = vmatprep.subr.mxu1 %v995_v21  ;;  %v862_v26 = vld [vmem:[%s4052_s15 + $0x120] sm:$0xff]  ;;  %1093 = vmatpush1.msra.mxu0 %v866_v22 }
  0x4f   : > { %v991_v25 = vld [vmem:[%s4052_s15 + $0x528] sm:$0xff]  ;;  %v990_v27 = vld [vmem:[%s4052_s15 + $0x520] sm:$0xff]  ;;  %1458 = vmatpush1.msra.mxu1 %v994_v23  ;;  %1094 = vmatprep.subr.mxu0 %v863_v24 }
  0x50   : > { %v859_v28 = vld [vmem:[%s4052_s15 + $0x108] sm:$0xff]  ;;  %1459 = vmatprep.subr.mxu1 %v991_v25  ;;  %v858_v30 = vld [vmem:[%s4052_s15 + $0x100] sm:$0xff]  ;;  %1095 = vmatpush1.msra.mxu0 %v862_v26 }
  0x51   : > { %v987_v29 = vld [vmem:[%s4052_s15 + $0x508] sm:$0xff]  ;;  %v986_v31 = vld [vmem:[%s4052_s15 + $0x500] sm:$0xff]  ;;  %1460 = vmatpush1.msra.mxu1 %v990_v27  ;;  %1096 = vmatprep.subr.mxu0 %v859_v28 }
  0x52   : > { %v855_v32 = vld [vmem:[%s4052_s15 + $0xe8] sm:$0xff]  ;;  %1461 = vmatprep.subr.mxu1 %v987_v29  ;;  %v854_v34 = vld [vmem:[%s4052_s15 + $0xe0] sm:$0xff]  ;;  %1097 = vmatpush1.msra.mxu0 %v858_v30 }
  0x53   : > { %v983_v33 = vld [vmem:[%s4052_s15 + $0x4e8] sm:$0xff]  ;;  %v982_v35 = vld [vmem:[%s4052_s15 + $0x4e0] sm:$0xff]  ;;  %1462 = vmatpush1.msra.mxu1 %v986_v31  ;;  %1098 = vmatprep.subr.mxu0 %v855_v32 }
  0x54   : > { %v851_v36 = vld [vmem:[%s4052_s15 + $0xc8] sm:$0xff]  ;;  %1463 = vmatprep.subr.mxu1 %v983_v33  ;;  %v850_v38 = vld [vmem:[%s4052_s15 + $0xc0] sm:$0xff]  ;;  %1099 = vmatpush1.msra.mxu0 %v854_v34 }
  0x55   : > { %v979_v37 = vld [vmem:[%s4052_s15 + $0x4c8] sm:$0xff]  ;;  %v978_v39 = vld [vmem:[%s4052_s15 + $0x4c0] sm:$0xff]  ;;  %1464 = vmatpush1.msra.mxu1 %v982_v35  ;;  %1100 = vmatprep.subr.mxu0 %v851_v36 }
  0x56   : > { %v847_v40 = vld [vmem:[%s4052_s15 + $0xa8] sm:$0xff]  ;;  %1465 = vmatprep.subr.mxu1 %v979_v37  ;;  %v846_v42 = vld [vmem:[%s4052_s15 + $0xa0] sm:$0xff]  ;;  %1101 = vmatpush1.msra.mxu0 %v850_v38 }
  0x57   : > { %v975_v41 = vld [vmem:[%s4052_s15 + $0x4a8] sm:$0xff]  ;;  %v974_v43 = vld [vmem:[%s4052_s15 + $0x4a0] sm:$0xff]  ;;  %1466 = vmatpush1.msra.mxu1 %v978_v39  ;;  %1102 = vmatprep.subr.mxu0 %v847_v40 }
  0x58   : > { %v843_v44 = vld [vmem:[%s4052_s15 + $0x88] sm:$0xff]  ;;  %1467 = vmatprep.subr.mxu1 %v975_v41  ;;  %v842_v46 = vld [vmem:[%s4052_s15 + $0x80] sm:$0xff]  ;;  %1103 = vmatpush1.msra.mxu0 %v846_v42 }
  0x59   : > { %v971_v45 = vld [vmem:[%s4052_s15 + $0x488] sm:$0xff]  ;;  %v970_v47 = vld [vmem:[%s4052_s15 + $0x480] sm:$0xff]  ;;  %1468 = vmatpush1.msra.mxu1 %v974_v43  ;;  %1104 = vmatprep.subr.mxu0 %v843_v44 }
  0x5a   : > { %v839_v48 = vld [vmem:[%s4052_s15 + $0x68] sm:$0xff]  ;;  %1469 = vmatprep.subr.mxu1 %v971_v45  ;;  %v838_v50 = vld [vmem:[%s4052_s15 + $0x60] sm:$0xff]  ;;  %1105 = vmatpush1.msra.mxu0 %v842_v46 }
  0x5b   : > { %v967_v49 = vld [vmem:[%s4052_s15 + $0x468] sm:$0xff]  ;;  %v966_v51 = vld [vmem:[%s4052_s15 + $0x460] sm:$0xff]  ;;  %1470 = vmatpush1.msra.mxu1 %v970_v47  ;;  %1106 = vmatprep.subr.mxu0 %v839_v48 }
  0x5c   : > { %v835_v52 = vld [vmem:[%s4052_s15 + $0x48] sm:$0xff]  ;;  %1471 = vmatprep.subr.mxu1 %v967_v49  ;;  %v834_v54 = vld [vmem:[%s4052_s15 + $0x40] sm:$0xff]  ;;  %1107 = vmatpush1.msra.mxu0 %v838_v50 }
  0x5d   : > { %v963_v53 = vld [vmem:[%s4052_s15 + $0x448] sm:$0xff]  ;;  %v962_v55 = vld [vmem:[%s4052_s15 + $0x440] sm:$0xff]  ;;  %1472 = vmatpush1.msra.mxu1 %v966_v51  ;;  %1108 = vmatprep.subr.mxu0 %v835_v52 }
  0x5e   : > { %v831_v56 = vld [vmem:[%s4052_s15 + $0x28] sm:$0xff]  ;;  %1473 = vmatprep.subr.mxu1 %v963_v53  ;;  %v830_v58 = vld [vmem:[%s4052_s15 + $0x20] sm:$0xff]  ;;  %1109 = vmatpush1.msra.mxu0 %v834_v54 }
  0x5f   : > { %v959_v57 = vld [vmem:[%s4052_s15 + $0x428] sm:$0xff]  ;;  %v958_v59 = vld [vmem:[%s4052_s15 + $0x420] sm:$0xff]  ;;  %1474 = vmatpush1.msra.mxu1 %v962_v55  ;;  %1110 = vmatprep.subr.mxu0 %v831_v56 }
  0x60   : > { %v827_v60 = vld [vmem:[%s4052_s15 + $0x8] sm:$0xff]  ;;  %1475 = vmatprep.subr.mxu1 %v959_v57  ;;  %v826_v62 = vld [vmem:[%s4052_s15] sm:$0xff]  ;;  %1111 = vmatpush1.msra.mxu0 %v830_v58 }
  0x61   : > { %v955_v61 = vld [vmem:[%s4052_s15 + $0x408] sm:$0xff]  ;;  %v954_v63 = vld [vmem:[%s4052_s15 + $0x400] sm:$0xff]  ;;  %1476 = vmatpush1.msra.mxu1 %v958_v59  ;;  %1112 = vmatprep.subr.mxu0 %v827_v60 }
  0x62   : > { %v951_v0 = vld [vmem:[%s4052_s15 + $0x3e8] sm:$0xff]  ;;  %1477 = vmatprep.subr.mxu1 %v955_v61  ;;  %v950_v2 = vld [vmem:[%s4052_s15 + $0x3e0] sm:$0xff]  ;;  %1113 = vmatpush1.msra.mxu0 %v826_v62 }
  0x63   : > { %v1079_v1 = vld [vmem:[%s4052_s15 + $0x7e8] sm:$0xff]  ;;  %v1078_v3 = vld [vmem:[%s4052_s15 + $0x7e0] sm:$0xff]  ;;  %1478 = vmatpush1.msra.mxu1 %v954_v63  ;;  %1114 = vmatprep.subr.mxu0 %v951_v0 }
  0x64   : > { %v947_v4 = vld [vmem:[%s4052_s15 + $0x3c8] sm:$0xff]  ;;  %1479 = vmatprep.subr.mxu1 %v1079_v1  ;;  %v946_v6 = vld [vmem:[%s4052_s15 + $0x3c0] sm:$0xff]  ;;  %1115 = vmatpush2.msra.mxu0 %v950_v2  ;;  %v629_v1 = vld [vmem:[#allocation3 + $0x18] sm:$0xff] }
  0x65   : > { %v1075_v5 = vld [vmem:[%s4052_s15 + $0x7c8] sm:$0xff]  ;;  %v1074_v7 = vld [vmem:[%s4052_s15 + $0x7c0] sm:$0xff]  ;;  %1480 = vmatpush2.msra.mxu1 %v1078_v3  ;;  %1116 = vmatprep.subr.mxu0 %v947_v4  ;;  %v628_v3 = vld [vmem:[#allocation3 + $0x10] sm:$0xff] }
  0x66   : > { %v943_v8 = vld [vmem:[%s4052_s15 + $0x3a8] sm:$0xff]  ;;  %1481 = vmatprep.subr.mxu1 %v1075_v5  ;;  %v942_v10 = vld [vmem:[%s4052_s15 + $0x3a0] sm:$0xff]  ;;  %1117 = vmatpush2.msra.mxu0 %v946_v6  ;;  %v889_v4 = vld [vmem:[%s4052_s15 + $0x1f8] sm:$0xff] }
  0x67   : > { %v1071_v9 = vld [vmem:[%s4052_s15 + $0x7a8] sm:$0xff]  ;;  %v1070_v11 = vld [vmem:[%s4052_s15 + $0x7a0] sm:$0xff]  ;;  %1482 = vmatpush2.msra.mxu1 %v1074_v7  ;;  %1118 = vmatprep.subr.mxu0 %v943_v8  ;;  %v1017_v5 = vld [vmem:[%s4052_s15 + $0x5f8] sm:$0xff] }
  0x68   : > { %v939_v12 = vld [vmem:[%s4052_s15 + $0x388] sm:$0xff]  ;;  %1483 = vmatprep.subr.mxu1 %v1071_v9  ;;  %v938_v14 = vld [vmem:[%s4052_s15 + $0x380] sm:$0xff]  ;;  %1119 = vmatpush2.msra.mxu0 %v942_v10  ;;  %v888_v6 = vld [vmem:[%s4052_s15 + $0x1f0] sm:$0xff] }
  0x69   : > { %v1067_v13 = vld [vmem:[%s4052_s15 + $0x788] sm:$0xff]  ;;  %v1066_v15 = vld [vmem:[%s4052_s15 + $0x780] sm:$0xff]  ;;  %1484 = vmatpush2.msra.mxu1 %v1070_v11  ;;  %1120 = vmatprep.subr.mxu0 %v939_v12  ;;  %v1016_v7 = vld [vmem:[%s4052_s15 + $0x5f0] sm:$0xff] }
  0x6a   : > { %v935_v16 = vld [vmem:[%s4052_s15 + $0x368] sm:$0xff]  ;;  %1485 = vmatprep.subr.mxu1 %v1067_v13  ;;  %v934_v18 = vld [vmem:[%s4052_s15 + $0x360] sm:$0xff]  ;;  %1121 = vmatpush2.msra.mxu0 %v938_v14  ;;  %v633_v9 = vld [vmem:[#allocation3 + $0x38] sm:$0xff] }
  0x6b   : > { %v1063_v17 = vld [vmem:[%s4052_s15 + $0x768] sm:$0xff]  ;;  %v1062_v19 = vld [vmem:[%s4052_s15 + $0x760] sm:$0xff]  ;;  %1486 = vmatpush2.msra.mxu1 %v1066_v15  ;;  %1122 = vmatprep.subr.mxu0 %v935_v16  ;;  %v632_v11 = vld [vmem:[#allocation3 + $0x30] sm:$0xff] }
  0x6c   : > { %v931_v20 = vld [vmem:[%s4052_s15 + $0x348] sm:$0xff]  ;;  %1487 = vmatprep.subr.mxu1 %v1063_v17  ;;  %v930_v22 = vld [vmem:[%s4052_s15 + $0x340] sm:$0xff]  ;;  %1123 = vmatpush2.msra.mxu0 %v934_v18  ;;  %v637_v13 = vld [vmem:[#allocation3 + $0x58] sm:$0xff] }
  0x6d   : > { %v1059_v21 = vld [vmem:[%s4052_s15 + $0x748] sm:$0xff]  ;;  %v1058_v23 = vld [vmem:[%s4052_s15 + $0x740] sm:$0xff]  ;;  %1488 = vmatpush2.msra.mxu1 %v1062_v19  ;;  %1124 = vmatprep.subr.mxu0 %v931_v20  ;;  %v885_v14 = vld [vmem:[%s4052_s15 + $0x1d8] sm:$0xff] }
  0x6e   : > { %v927_v24 = vld [vmem:[%s4052_s15 + $0x328] sm:$0xff]  ;;  %1489 = vmatprep.subr.mxu1 %v1059_v21  ;;  %v926_v26 = vld [vmem:[%s4052_s15 + $0x320] sm:$0xff]  ;;  %1125 = vmatpush2.msra.mxu0 %v930_v22  ;;  %v1013_v15 = vld [vmem:[%s4052_s15 + $0x5d8] sm:$0xff] }
  0x6f   : > { %v1055_v25 = vld [vmem:[%s4052_s15 + $0x728] sm:$0xff]  ;;  %v1054_v27 = vld [vmem:[%s4052_s15 + $0x720] sm:$0xff]  ;;  %1490 = vmatpush2.msra.mxu1 %v1058_v23  ;;  %1126 = vmatprep.subr.mxu0 %v927_v24  ;;  %v884_v16 = vld [vmem:[%s4052_s15 + $0x1d0] sm:$0xff] }
  0x70   : > { %v923_v28 = vld [vmem:[%s4052_s15 + $0x308] sm:$0xff]  ;;  %1491 = vmatprep.subr.mxu1 %v1055_v25  ;;  %v922_v30 = vld [vmem:[%s4052_s15 + $0x300] sm:$0xff]  ;;  %1127 = vmatpush2.msra.mxu0 %v926_v26  ;;  %v1012_v17 = vld [vmem:[%s4052_s15 + $0x5d0] sm:$0xff] }
  0x71   : > { %v1051_v29 = vld [vmem:[%s4052_s15 + $0x708] sm:$0xff]  ;;  %v1050_v31 = vld [vmem:[%s4052_s15 + $0x700] sm:$0xff]  ;;  %1492 = vmatpush2.msra.mxu1 %v1054_v27  ;;  %1128 = vmatprep.subr.mxu0 %v923_v28  ;;  %v636_v19 = vld [vmem:[#allocation3 + $0x50] sm:$0xff] }
  0x72   : > { %v919_v32 = vld [vmem:[%s4052_s15 + $0x2e8] sm:$0xff]  ;;  %1493 = vmatprep.subr.mxu1 %v1051_v29  ;;  %v918_v34 = vld [vmem:[%s4052_s15 + $0x2e0] sm:$0xff]  ;;  %1129 = vmatpush2.msra.mxu0 %v922_v30  ;;  %v641_v21 = vld [vmem:[#allocation3 + $0x78] sm:$0xff] }
  0x73   : > { %v1047_v33 = vld [vmem:[%s4052_s15 + $0x6e8] sm:$0xff]  ;;  %v1046_v35 = vld [vmem:[%s4052_s15 + $0x6e0] sm:$0xff]  ;;  %1494 = vmatpush2.msra.mxu1 %v1050_v31  ;;  %1130 = vmatprep.subr.mxu0 %v919_v32  ;;  %v881_v22 = vld [vmem:[%s4052_s15 + $0x1b8] sm:$0xff] }
  0x74   : > { %v915_v36 = vld [vmem:[%s4052_s15 + $0x2c8] sm:$0xff]  ;;  %1495 = vmatprep.subr.mxu1 %v1047_v33  ;;  %v914_v38 = vld [vmem:[%s4052_s15 + $0x2c0] sm:$0xff]  ;;  %1131 = vmatpush2.msra.mxu0 %v918_v34  ;;  %v1009_v23 = vld [vmem:[%s4052_s15 + $0x5b8] sm:$0xff] }
  0x75   : > { %v1043_v37 = vld [vmem:[%s4052_s15 + $0x6c8] sm:$0xff]  ;;  %v1042_v39 = vld [vmem:[%s4052_s15 + $0x6c0] sm:$0xff]  ;;  %1496 = vmatpush2.msra.mxu1 %v1046_v35  ;;  %1132 = vmatprep.subr.mxu0 %v915_v36  ;;  %v880_v24 = vld [vmem:[%s4052_s15 + $0x1b0] sm:$0xff] }
  0x76   : > { %v911_v40 = vld [vmem:[%s4052_s15 + $0x2a8] sm:$0xff]  ;;  %1497 = vmatprep.subr.mxu1 %v1043_v37  ;;  %v910_v42 = vld [vmem:[%s4052_s15 + $0x2a0] sm:$0xff]  ;;  %1133 = vmatpush2.msra.mxu0 %v914_v38  ;;  %v1008_v25 = vld [vmem:[%s4052_s15 + $0x5b0] sm:$0xff] }
  0x77   : > { %v1039_v41 = vld [vmem:[%s4052_s15 + $0x6a8] sm:$0xff]  ;;  %v1038_v43 = vld [vmem:[%s4052_s15 + $0x6a0] sm:$0xff]  ;;  %1498 = vmatpush2.msra.mxu1 %v1042_v39  ;;  %1134 = vmatprep.subr.mxu0 %v911_v40  ;;  %v640_v27 = vld [vmem:[#allocation3 + $0x70] sm:$0xff] }
  0x78   : > { %v907_v44 = vld [vmem:[%s4052_s15 + $0x288] sm:$0xff]  ;;  %1499 = vmatprep.subr.mxu1 %v1039_v41  ;;  %v906_v46 = vld [vmem:[%s4052_s15 + $0x280] sm:$0xff]  ;;  %1135 = vmatpush2.msra.mxu0 %v910_v42  ;;  %v645_v29 = vld [vmem:[#allocation3 + $0x98] sm:$0xff] }
  0x79   : > { %v1035_v45 = vld [vmem:[%s4052_s15 + $0x688] sm:$0xff]  ;;  %v1034_v47 = vld [vmem:[%s4052_s15 + $0x680] sm:$0xff]  ;;  %1500 = vmatpush2.msra.mxu1 %v1038_v43  ;;  %1136 = vmatprep.subr.mxu0 %v907_v44  ;;  %v877_v30 = vld [vmem:[%s4052_s15 + $0x198] sm:$0xff] }
  0x7a   : > { %v903_v48 = vld [vmem:[%s4052_s15 + $0x268] sm:$0xff]  ;;  %1501 = vmatprep.subr.mxu1 %v1035_v45  ;;  %v902_v50 = vld [vmem:[%s4052_s15 + $0x260] sm:$0xff]  ;;  %1137 = vmatpush2.msra.mxu0 %v906_v46  ;;  %v1005_v31 = vld [vmem:[%s4052_s15 + $0x598] sm:$0xff] }
  0x7b   : > { %v1031_v49 = vld [vmem:[%s4052_s15 + $0x668] sm:$0xff]  ;;  %v1030_v51 = vld [vmem:[%s4052_s15 + $0x660] sm:$0xff]  ;;  %1502 = vmatpush2.msra.mxu1 %v1034_v47  ;;  %1138 = vmatprep.subr.mxu0 %v903_v48  ;;  %v876_v32 = vld [vmem:[%s4052_s15 + $0x190] sm:$0xff] }
  0x7c   : > { %v899_v52 = vld [vmem:[%s4052_s15 + $0x248] sm:$0xff]  ;;  %1503 = vmatprep.subr.mxu1 %v1031_v49  ;;  %v898_v54 = vld [vmem:[%s4052_s15 + $0x240] sm:$0xff]  ;;  %1139 = vmatpush2.msra.mxu0 %v902_v50  ;;  %v1004_v33 = vld [vmem:[%s4052_s15 + $0x590] sm:$0xff] }
  0x7d   : > { %v1027_v53 = vld [vmem:[%s4052_s15 + $0x648] sm:$0xff]  ;;  %v1026_v55 = vld [vmem:[%s4052_s15 + $0x640] sm:$0xff]  ;;  %1504 = vmatpush2.msra.mxu1 %v1030_v51  ;;  %1140 = vmatprep.subr.mxu0 %v899_v52  ;;  %v644_v35 = vld [vmem:[#allocation3 + $0x90] sm:$0xff] }
  0x7e   : > { %v895_v56 = vld [vmem:[%s4052_s15 + $0x228] sm:$0xff]  ;;  %1505 = vmatprep.subr.mxu1 %v1027_v53  ;;  %v894_v58 = vld [vmem:[%s4052_s15 + $0x220] sm:$0xff]  ;;  %1141 = vmatpush2.msra.mxu0 %v898_v54  ;;  %v649_v37 = vld [vmem:[#allocation3 + $0xb8] sm:$0xff] }
  0x7f   : > { %v1023_v57 = vld [vmem:[%s4052_s15 + $0x628] sm:$0xff]  ;;  %v1022_v59 = vld [vmem:[%s4052_s15 + $0x620] sm:$0xff]  ;;  %1506 = vmatpush2.msra.mxu1 %v1026_v55  ;;  %1142 = vmatprep.subr.mxu0 %v895_v56  ;;  %v873_v38 = vld [vmem:[%s4052_s15 + $0x178] sm:$0xff] }
  0x80   : > { %v891_v60 = vld [vmem:[%s4052_s15 + $0x208] sm:$0xff]  ;;  %1507 = vmatprep.subr.mxu1 %v1023_v57  ;;  %v890_v62 = vld [vmem:[%s4052_s15 + $0x200] sm:$0xff]  ;;  %1143 = vmatpush2.msra.mxu0 %v894_v58  ;;  %v1001_v39 = vld [vmem:[%s4052_s15 + $0x578] sm:$0xff] }
  0x81   : > { %v1019_v61 = vld [vmem:[%s4052_s15 + $0x608] sm:$0xff]  ;;  %1508 = vmatpush2.msra.mxu1 %v1022_v59  ;;  %v1018_v0 = vld [vmem:[%s4052_s15 + $0x600] sm:$0xff]  ;;  %1144 = vmatprep.subr.mxu0 %v891_v60  ;;  %v872_v40 = vld [vmem:[%s4052_s15 + $0x170] sm:$0xff] }
  0x82   : > { %v627_v63 = vld [vmem:[#allocation3 + $0x8] sm:$0xff]  ;;  %1509 = vmatprep.subr.mxu1 %v1019_v61  ;;  %v626_v2 = vld [vmem:[#allocation3] sm:$0xff]  ;;  %1145 = vmatpush2.msra.mxu0 %v890_v62  ;;  %v1000_v41 = vld [vmem:[%s4052_s15 + $0x570] sm:$0xff] }
  0x83   : > { %1146 = vmatprep.mubr.f32.mxu0 %v627_v63  ;;  %1510 = vmatpush2.msra.mxu1 %v1018_v0  ;;  %v631_v8 = vld [vmem:[#allocation3 + $0x28] sm:$0xff]  ;;  %v630_v10 = vld [vmem:[#allocation3 + $0x20] sm:$0xff]  ;;  %v648_v43 = vld [vmem:[#allocation3 + $0xb0] sm:$0xff] }
  0x84   : > { %1511 = vmatprep.mubr.f32.mxu1 %v629_v1  ;;  %1147 = vmatmul.mubr.f32.vlgmr.msra.gmra.mxu0 %v626_v2  ;;  %v635_v12 = vld [vmem:[#allocation3 + $0x48] sm:$0xff]  ;;  %v634_v18 = vld [vmem:[#allocation3 + $0x40] sm:$0xff]  ;;  %v653_v45 = vld [vmem:[#allocation3 + $0xd8] sm:$0xff] }
  0x85   : > { %1512 = vmatmul.mubr.f32.vlgmr.msra.gmra.mxu1 %v628_v3  ;;  %1812 = vmatprep.subr.mxu0 %v889_v4  ;;  %v639_v20 = vld [vmem:[#allocation3 + $0x68] sm:$0xff]  ;;  %v638_v26 = vld [vmem:[#allocation3 + $0x60] sm:$0xff]  ;;  %v869_v46 = vld [vmem:[%s4052_s15 + $0x158] sm:$0xff] }
  0x86   : > { %2177 = vmatprep.subr.mxu1 %v1017_v5  ;;  %1813 = vmatpush1.msra.mxu0 %v888_v6  ;;  %v643_v28 = vld [vmem:[#allocation3 + $0x88] sm:$0xff]  ;;  %v642_v34 = vld [vmem:[#allocation3 + $0x80] sm:$0xff]  ;;  %v997_v47 = vld [vmem:[%s4052_s15 + $0x558] sm:$0xff] }
  0x87   : > { %2178 = vmatpush1.msra.mxu1 %v1016_v7  ;;  %1152 = vmatprep.mubr.f32.mxu0 %v631_v8  ;;  %v647_v36 = vld [vmem:[#allocation3 + $0xa8] sm:$0xff]  ;;  %v646_v42 = vld [vmem:[#allocation3 + $0xa0] sm:$0xff]  ;;  %v868_v48 = vld [vmem:[%s4052_s15 + $0x150] sm:$0xff] }
  0x88   : > { %1517 = vmatprep.mubr.f32.mxu1 %v633_v9  ;;  %1153 = vmatmul.mubr.f32.gmra.mxu0 %v630_v10  ;;  %v651_v44 = vld [vmem:[#allocation3 + $0xc8] sm:$0xff]  ;;  %v996_v49 = vld [vmem:[%s4052_s15 + $0x550] sm:$0xff]  ;;  %v650_v50 = vld [vmem:[#allocation3 + $0xc0] sm:$0xff] }
  0x89   : > { %1518 = vmatmul.mubr.f32.gmra.mxu1 %v632_v11  ;;  %1158 = vmatprep.mubr.f32.mxu0 %v635_v12  ;;  %v652_v51 = vld [vmem:[#allocation3 + $0xd0] sm:$0xff]  ;;  %v655_v52 = vld [vmem:[#allocation3 + $0xe8] sm:$0xff]  ;;  %v657_v53 = vld [vmem:[#allocation3 + $0xf8] sm:$0xff] }
  0x8a   : > { %1523 = vmatprep.mubr.f32.mxu1 %v637_v13  ;;  %1814 = vmatprep.subr.mxu0 %v885_v14  ;;  %v865_v54 = vld [vmem:[%s4052_s15 + $0x138] sm:$0xff]  ;;  %v864_v56 = vld [vmem:[%s4052_s15 + $0x130] sm:$0xff]  ;;  %v654_v58 = vld [vmem:[#allocation3 + $0xe0] sm:$0xff] }
  0x8b   : > { %2179 = vmatprep.subr.mxu1 %v1013_v15  ;;  %1815 = vmatpush1.msra.mxu0 %v884_v16  ;;  %v993_v55 = vld [vmem:[%s4052_s15 + $0x538] sm:$0xff]  ;;  %v992_v57 = vld [vmem:[%s4052_s15 + $0x530] sm:$0xff]  ;;  %v659_v60 = vld [vmem:[#allocation3 + $0x108] sm:$0xff] }
  0x8c   : > { %2180 = vmatpush1.msra.mxu1 %v1012_v17  ;;  %1159 = vmatmul.mubr.f32.gmra.mxu0 %v634_v18  ;;  %v656_v59 = vld [vmem:[#allocation3 + $0xf0] sm:$0xff]  ;;  %v661_v61 = vld [vmem:[#allocation3 + $0x118] sm:$0xff]  ;;  %v658_v2 = vld [vmem:[#allocation3 + $0x100] sm:$0xff] }
  0x8d   : > { %1524 = vmatmul.mubr.f32.gmra.mxu1 %v636_v19  ;;  %1164 = vmatprep.mubr.f32.mxu0 %v639_v20  ;;  %v861_v62 = vld [vmem:[%s4052_s15 + $0x118] sm:$0xff]  ;;  %v860_v0 = vld [vmem:[%s4052_s15 + $0x110] sm:$0xff]  ;;  %v663_v4 = vld [vmem:[#allocation3 + $0x128] sm:$0xff] }
  0x8e   : > { %1529 = vmatprep.mubr.f32.mxu1 %v641_v21  ;;  %1816 = vmatprep.subr.mxu0 %v881_v22  ;;  %v989_v63 = vld [vmem:[%s4052_s15 + $0x518] sm:$0xff]  ;;  %v988_v1 = vld [vmem:[%s4052_s15 + $0x510] sm:$0xff]  ;;  %v662_v10 = vld [vmem:[#allocation3 + $0x120] sm:$0xff] }
  0x8f   : > { %2181 = vmatprep.subr.mxu1 %v1009_v23  ;;  %1817 = vmatpush1.msra.mxu0 %v880_v24  ;;  %v660_v3 = vld [vmem:[#allocation3 + $0x110] sm:$0xff]  ;;  %v665_v5 = vld [vmem:[#allocation3 + $0x138] sm:$0xff]  ;;  %v667_v12 = vld [vmem:[#allocation3 + $0x148] sm:$0xff] }
  0x90   : > { %2182 = vmatpush1.msra.mxu1 %v1008_v25  ;;  %1165 = vmatmul.mubr.f32.gmra.mxu0 %v638_v26  ;;  %v857_v6 = vld [vmem:[%s4052_s15 + $0xf8] sm:$0xff]  ;;  %v856_v8 = vld [vmem:[%s4052_s15 + $0xf0] sm:$0xff]  ;;  %v666_v18 = vld [vmem:[#allocation3 + $0x140] sm:$0xff] }
  0x91   : > { %1530 = vmatmul.mubr.f32.gmra.mxu1 %v640_v27  ;;  %1170 = vmatprep.mubr.f32.mxu0 %v643_v28  ;;  %v985_v7 = vld [vmem:[%s4052_s15 + $0x4f8] sm:$0xff]  ;;  %v984_v9 = vld [vmem:[%s4052_s15 + $0x4f0] sm:$0xff]  ;;  %v671_v20 = vld [vmem:[#allocation3 + $0x168] sm:$0xff] }
  0x92   : > { %1535 = vmatprep.mubr.f32.mxu1 %v645_v29  ;;  %1818 = vmatprep.subr.mxu0 %v877_v30  ;;  %v664_v11 = vld [vmem:[#allocation3 + $0x130] sm:$0xff]  ;;  %v669_v13 = vld [vmem:[#allocation3 + $0x158] sm:$0xff]  ;;  %v670_v26 = vld [vmem:[#allocation3 + $0x160] sm:$0xff] }
  0x93   : > { %2183 = vmatprep.subr.mxu1 %v1005_v31  ;;  %1819 = vmatpush1.msra.mxu0 %v876_v32  ;;  %v853_v14 = vld [vmem:[%s4052_s15 + $0xd8] sm:$0xff]  ;;  %v852_v16 = vld [vmem:[%s4052_s15 + $0xd0] sm:$0xff]  ;;  %v675_v28 = vld [vmem:[#allocation3 + $0x188] sm:$0xff] }
  0x94   : > { %2184 = vmatpush1.msra.mxu1 %v1004_v33  ;;  %1171 = vmatmul.mubr.f32.gmra.mxu0 %v642_v34  ;;  %v981_v15 = vld [vmem:[%s4052_s15 + $0x4d8] sm:$0xff]  ;;  %v980_v17 = vld [vmem:[%s4052_s15 + $0x4d0] sm:$0xff]  ;;  %v674_v34 = vld [vmem:[#allocation3 + $0x180] sm:$0xff] }
  0x95   : > { %1536 = vmatmul.mubr.f32.gmra.mxu1 %v644_v35  ;;  %1176 = vmatprep.mubr.f32.mxu0 %v647_v36  ;;  %v668_v19 = vld [vmem:[#allocation3 + $0x150] sm:$0xff]  ;;  %v673_v21 = vld [vmem:[#allocation3 + $0x178] sm:$0xff]  ;;  %v679_v36 = vld [vmem:[#allocation3 + $0x1a8] sm:$0xff] }
  0x96   : > { %1541 = vmatprep.mubr.f32.mxu1 %v649_v37  ;;  %1820 = vmatprep.subr.mxu0 %v873_v38  ;;  %v849_v22 = vld [vmem:[%s4052_s15 + $0xb8] sm:$0xff]  ;;  %v848_v24 = vld [vmem:[%s4052_s15 + $0xb0] sm:$0xff] }
  0x97   : > { %2185 = vmatprep.subr.mxu1 %v1001_v39  ;;  %1821 = vmatpush1.msra.mxu0 %v872_v40  ;;  %v977_v23 = vld [vmem:[%s4052_s15 + $0x4b8] sm:$0xff]  ;;  %v976_v25 = vld [vmem:[%s4052_s15 + $0x4b0] sm:$0xff] }
  0x98   : > { %2186 = vmatpush1.msra.mxu1 %v1000_v41  ;;  %1177 = vmatmul.mubr.f32.gmra.mxu0 %v646_v42  ;;  %v672_v27 = vld [vmem:[#allocation3 + $0x170] sm:$0xff]  ;;  %v677_v29 = vld [vmem:[#allocation3 + $0x198] sm:$0xff]  ;;  %v678_v42 = vld [vmem:[#allocation3 + $0x1a0] sm:$0xff] }
  0x99   : > { %1542 = vmatmul.mubr.f32.gmra.mxu1 %v648_v43  ;;  %1182 = vmatprep.mubr.f32.mxu0 %v651_v44  ;;  %v845_v30 = vld [vmem:[%s4052_s15 + $0x98] sm:$0xff]  ;;  %v844_v32 = vld [vmem:[%s4052_s15 + $0x90] sm:$0xff]  ;;  %v683_v44 = vld [vmem:[#allocation3 + $0x1c8] sm:$0xff] }
  0x9a   : > { %1547 = vmatprep.mubr.f32.mxu1 %v653_v45  ;;  %1822 = vmatprep.subr.mxu0 %v869_v46  ;;  %v973_v31 = vld [vmem:[%s4052_s15 + $0x498] sm:$0xff]  ;;  %v972_v33 = vld [vmem:[%s4052_s15 + $0x490] sm:$0xff] }
  0x9b   : > { %2187 = vmatprep.subr.mxu1 %v997_v47  ;;  %1823 = vmatpush1.msra.mxu0 %v868_v48  ;;  %v676_v35 = vld [vmem:[#allocation3 + $0x190] sm:$0xff]  ;;  %v681_v37 = vld [vmem:[#allocation3 + $0x1b8] sm:$0xff] }
  0x9c   : > { %2188 = vmatpush1.msra.mxu1 %v996_v49  ;;  %1183 = vmatmul.mubr.f32.gmra.mxu0 %v650_v50  ;;  %v841_v38 = vld [vmem:[%s4052_s15 + $0x78] sm:$0xff]  ;;  %v840_v40 = vld [vmem:[%s4052_s15 + $0x70] sm:$0xff]  ;;  %v682_v50 = vld [vmem:[#allocation3 + $0x1c0] sm:$0xff] }
  0x9d   : > { %1548 = vmatmul.mubr.f32.gmra.mxu1 %v652_v51  ;;  %1188 = vmatprep.mubr.f32.mxu0 %v655_v52  ;;  %v969_v39 = vld [vmem:[%s4052_s15 + $0x478] sm:$0xff]  ;;  %v968_v41 = vld [vmem:[%s4052_s15 + $0x470] sm:$0xff]  ;;  %v687_v52 = vld [vmem:[#allocation3 + $0x1e8] sm:$0xff] }
  0x9e   : > { %1553 = vmatprep.mubr.f32.mxu1 %v657_v53  ;;  %1824 = vmatprep.subr.mxu0 %v865_v54  ;;  %v680_v43 = vld [vmem:[#allocation3 + $0x1b0] sm:$0xff]  ;;  %v685_v45 = vld [vmem:[#allocation3 + $0x1d8] sm:$0xff] }
  0x9f   : > { %2189 = vmatprep.subr.mxu1 %v993_v55  ;;  %1825 = vmatpush1.msra.mxu0 %v864_v56  ;;  %v837_v46 = vld [vmem:[%s4052_s15 + $0x58] sm:$0xff]  ;;  %v836_v48 = vld [vmem:[%s4052_s15 + $0x50] sm:$0xff] }
  0xa0   : > { %2190 = vmatpush1.msra.mxu1 %v992_v57  ;;  %1189 = vmatmul.mubr.f32.gmra.mxu0 %v654_v58  ;;  %v965_v47 = vld [vmem:[%s4052_s15 + $0x458] sm:$0xff]  ;;  %v964_v49 = vld [vmem:[%s4052_s15 + $0x450] sm:$0xff]  ;;  %v686_v58 = vld [vmem:[#allocation3 + $0x1e0] sm:$0xff] }
  0xa1   : > { %1554 = vmatmul.mubr.f32.gmra.mxu1 %v656_v59  ;;  %1194 = vmatprep.mubr.f32.mxu0 %v659_v60  ;;  %v684_v51 = vld [vmem:[#allocation3 + $0x1d0] sm:$0xff]  ;;  %v689_v53 = vld [vmem:[#allocation3 + $0x1f8] sm:$0xff]  ;;  %v691_v60 = vld [vmem:[#allocation3 + $0x208] sm:$0xff] }
  0xa2   : > { %1559 = vmatprep.mubr.f32.mxu1 %v661_v61  ;;  %1826 = vmatprep.subr.mxu0 %v861_v62  ;;  %v833_v54 = vld [vmem:[%s4052_s15 + $0x38] sm:$0xff]  ;;  %v832_v56 = vld [vmem:[%s4052_s15 + $0x30] sm:$0xff] }
  0xa3   : > { %2191 = vmatprep.subr.mxu1 %v989_v63  ;;  %1827 = vmatpush1.msra.mxu0 %v860_v0  ;;  %v961_v55 = vld [vmem:[%s4052_s15 + $0x438] sm:$0xff]  ;;  %v960_v57 = vld [vmem:[%s4052_s15 + $0x430] sm:$0xff] }
  0xa4   : > { %2192 = vmatpush1.msra.mxu1 %v988_v1  ;;  %1195 = vmatmul.mubr.f32.gmra.mxu0 %v658_v2  ;;  %v688_v59 = vld [vmem:[#allocation3 + $0x1f0] sm:$0xff]  ;;  %v693_v61 = vld [vmem:[#allocation3 + $0x218] sm:$0xff]  ;;  %v690_v2 = vld [vmem:[#allocation3 + $0x200] sm:$0xff] }
  0xa5   : > { %1560 = vmatmul.mubr.f32.gmra.mxu1 %v660_v3  ;;  %1200 = vmatprep.mubr.f32.mxu0 %v663_v4  ;;  %v829_v62 = vld [vmem:[%s4052_s15 + $0x18] sm:$0xff]  ;;  %v828_v0 = vld [vmem:[%s4052_s15 + $0x10] sm:$0xff]  ;;  %v695_v4 = vld [vmem:[#allocation3 + $0x228] sm:$0xff] }
  0xa6   : > { %1565 = vmatprep.mubr.f32.mxu1 %v665_v5  ;;  %1828 = vmatprep.subr.mxu0 %v857_v6  ;;  %v957_v63 = vld [vmem:[%s4052_s15 + $0x418] sm:$0xff]  ;;  %v956_v1 = vld [vmem:[%s4052_s15 + $0x410] sm:$0xff] }
  0xa7   : > { %2193 = vmatprep.subr.mxu1 %v985_v7  ;;  %1829 = vmatpush1.msra.mxu0 %v856_v8  ;;  %v692_v3 = vld [vmem:[#allocation3 + $0x210] sm:$0xff]  ;;  %v697_v5 = vld [vmem:[#allocation3 + $0x238] sm:$0xff] }
  0xa8   : > { %2194 = vmatpush1.msra.mxu1 %v984_v9  ;;  %1201 = vmatmul.mubr.f32.gmra.mxu0 %v662_v10  ;;  %v953_v6 = vld [vmem:[%s4052_s15 + $0x3f8] sm:$0xff]  ;;  %v952_v8 = vld [vmem:[%s4052_s15 + $0x3f0] sm:$0xff]  ;;  %v694_v10 = vld [vmem:[#allocation3 + $0x220] sm:$0xff] }
  0xa9   : > { %1566 = vmatmul.mubr.f32.gmra.mxu1 %v664_v11  ;;  %1206 = vmatprep.mubr.f32.mxu0 %v667_v12  ;;  %v1081_v7 = vld [vmem:[%s4052_s15 + $0x7f8] sm:$0xff]  ;;  %v1080_v9 = vld [vmem:[%s4052_s15 + $0x7f0] sm:$0xff]  ;;  %v699_v12 = vld [vmem:[#allocation3 + $0x248] sm:$0xff] }
  0xaa   : > { %1571 = vmatprep.mubr.f32.mxu1 %v669_v13  ;;  %1830 = vmatprep.subr.mxu0 %v853_v14  ;;  %v696_v11 = vld [vmem:[#allocation3 + $0x230] sm:$0xff]  ;;  %v701_v13 = vld [vmem:[#allocation3 + $0x258] sm:$0xff] }
  0xab   : > { %2195 = vmatprep.subr.mxu1 %v981_v15  ;;  %1831 = vmatpush1.msra.mxu0 %v852_v16  ;;  %v949_v14 = vld [vmem:[%s4052_s15 + $0x3d8] sm:$0xff]  ;;  %v948_v16 = vld [vmem:[%s4052_s15 + $0x3d0] sm:$0xff] }
  0xac   : > { %2196 = vmatpush1.msra.mxu1 %v980_v17  ;;  %1207 = vmatmul.mubr.f32.gmra.mxu0 %v666_v18  ;;  %v1077_v15 = vld [vmem:[%s4052_s15 + $0x7d8] sm:$0xff]  ;;  %v1076_v17 = vld [vmem:[%s4052_s15 + $0x7d0] sm:$0xff]  ;;  %v698_v18 = vld [vmem:[#allocation3 + $0x240] sm:$0xff] }
  0xad   : > { %1572 = vmatmul.mubr.f32.gmra.mxu1 %v668_v19  ;;  %1212 = vmatprep.mubr.f32.mxu0 %v671_v20  ;;  %v700_v19 = vld [vmem:[#allocation3 + $0x250] sm:$0xff]  ;;  %v703_v20 = vld [vmem:[#allocation3 + $0x268] sm:$0xff] }
  0xae   : > { %1577 = vmatprep.mubr.f32.mxu1 %v673_v21  ;;  %1832 = vmatprep.subr.mxu0 %v849_v22  ;;  %v705_v21 = vld [vmem:[#allocation3 + $0x278] sm:$0xff] }
  0xaf   : > { %2197 = vmatprep.subr.mxu1 %v977_v23  ;;  %1833 = vmatpush1.msra.mxu0 %v848_v24  ;;  %v945_v22 = vld [vmem:[%s4052_s15 + $0x3b8] sm:$0xff]  ;;  %v944_v24 = vld [vmem:[%s4052_s15 + $0x3b0] sm:$0xff] }
  0xb0   : > { %2198 = vmatpush1.msra.mxu1 %v976_v25  ;;  %1213 = vmatmul.mubr.f32.gmra.mxu0 %v670_v26  ;;  %v1073_v23 = vld [vmem:[%s4052_s15 + $0x7b8] sm:$0xff]  ;;  %v1072_v25 = vld [vmem:[%s4052_s15 + $0x7b0] sm:$0xff]  ;;  %v702_v26 = vld [vmem:[#allocation3 + $0x260] sm:$0xff] }
  0xb1   : > { %1578 = vmatmul.mubr.f32.gmra.mxu1 %v672_v27  ;;  %1218 = vmatprep.mubr.f32.mxu0 %v675_v28  ;;  %v704_v27 = vld [vmem:[#allocation3 + $0x270] sm:$0xff]  ;;  %v707_v28 = vld [vmem:[#allocation3 + $0x288] sm:$0xff] }
  0xb2   : > { %1583 = vmatprep.mubr.f32.mxu1 %v677_v29  ;;  %1834 = vmatprep.subr.mxu0 %v845_v30  ;;  %v709_v29 = vld [vmem:[#allocation3 + $0x298] sm:$0xff] }
  0xb3   : > { %2199 = vmatprep.subr.mxu1 %v973_v31  ;;  %1835 = vmatpush1.msra.mxu0 %v844_v32  ;;  %v941_v30 = vld [vmem:[%s4052_s15 + $0x398] sm:$0xff]  ;;  %v940_v32 = vld [vmem:[%s4052_s15 + $0x390] sm:$0xff] }
  0xb4   : > { %2200 = vmatpush1.msra.mxu1 %v972_v33  ;;  %1219 = vmatmul.mubr.f32.gmra.mxu0 %v674_v34  ;;  %v1069_v31 = vld [vmem:[%s4052_s15 + $0x798] sm:$0xff]  ;;  %v1068_v33 = vld [vmem:[%s4052_s15 + $0x790] sm:$0xff]  ;;  %v706_v34 = vld [vmem:[#allocation3 + $0x280] sm:$0xff] }
  0xb5   : > { %1584 = vmatmul.mubr.f32.gmra.mxu1 %v676_v35  ;;  %1224 = vmatprep.mubr.f32.mxu0 %v679_v36  ;;  %v708_v35 = vld [vmem:[#allocation3 + $0x290] sm:$0xff]  ;;  %v711_v36 = vld [vmem:[#allocation3 + $0x2a8] sm:$0xff] }
  0xb6   : > { %1589 = vmatprep.mubr.f32.mxu1 %v681_v37  ;;  %1836 = vmatprep.subr.mxu0 %v841_v38  ;;  %v713_v37 = vld [vmem:[#allocation3 + $0x2b8] sm:$0xff] }
  0xb7   : > { %2201 = vmatprep.subr.mxu1 %v969_v39  ;;  %1837 = vmatpush1.msra.mxu0 %v840_v40  ;;  %v937_v38 = vld [vmem:[%s4052_s15 + $0x378] sm:$0xff]  ;;  %v936_v40 = vld [vmem:[%s4052_s15 + $0x370] sm:$0xff] }
  0xb8   : > { %2202 = vmatpush1.msra.mxu1 %v968_v41  ;;  %1225 = vmatmul.mubr.f32.gmra.mxu0 %v678_v42  ;;  %v1065_v39 = vld [vmem:[%s4052_s15 + $0x778] sm:$0xff]  ;;  %v1064_v41 = vld [vmem:[%s4052_s15 + $0x770] sm:$0xff]  ;;  %v710_v42 = vld [vmem:[#allocation3 + $0x2a0] sm:$0xff] }
  0xb9   : > { %1590 = vmatmul.mubr.f32.gmra.mxu1 %v680_v43  ;;  %1230 = vmatprep.mubr.f32.mxu0 %v683_v44  ;;  %v712_v43 = vld [vmem:[#allocation3 + $0x2b0] sm:$0xff]  ;;  %v715_v44 = vld [vmem:[#allocation3 + $0x2c8] sm:$0xff] }
  0xba   : > { %1595 = vmatprep.mubr.f32.mxu1 %v685_v45  ;;  %1838 = vmatprep.subr.mxu0 %v837_v46  ;;  %v717_v45 = vld [vmem:[#allocation3 + $0x2d8] sm:$0xff] }
  0xbb   : > { %2203 = vmatprep.subr.mxu1 %v965_v47  ;;  %1839 = vmatpush1.msra.mxu0 %v836_v48  ;;  %v933_v46 = vld [vmem:[%s4052_s15 + $0x358] sm:$0xff]  ;;  %v932_v48 = vld [vmem:[%s4052_s15 + $0x350] sm:$0xff] }
  0xbc   : > { %2204 = vmatpush1.msra.mxu1 %v964_v49  ;;  %1231 = vmatmul.mubr.f32.gmra.mxu0 %v682_v50  ;;  %v1061_v47 = vld [vmem:[%s4052_s15 + $0x758] sm:$0xff]  ;;  %v1060_v49 = vld [vmem:[%s4052_s15 + $0x750] sm:$0xff]  ;;  %v714_v50 = vld [vmem:[#allocation3 + $0x2c0] sm:$0xff] }
  0xbd   : > { %1596 = vmatmul.mubr.f32.gmra.mxu1 %v684_v51  ;;  %1236 = vmatprep.mubr.f32.mxu0 %v687_v52  ;;  %v716_v51 = vld [vmem:[#allocation3 + $0x2d0] sm:$0xff]  ;;  %v719_v52 = vld [vmem:[#allocation3 + $0x2e8] sm:$0xff] }
  0xbe   : > { %1601 = vmatprep.mubr.f32.mxu1 %v689_v53  ;;  %1840 = vmatprep.subr.mxu0 %v833_v54  ;;  %v721_v53 = vld [vmem:[#allocation3 + $0x2f8] sm:$0xff] }
  0xbf   : > { %2205 = vmatprep.subr.mxu1 %v961_v55  ;;  %1841 = vmatpush1.msra.mxu0 %v832_v56  ;;  %v929_v54 = vld [vmem:[%s4052_s15 + $0x338] sm:$0xff]  ;;  %v928_v56 = vld [vmem:[%s4052_s15 + $0x330] sm:$0xff] }
  0xc0   : > { %2206 = vmatpush1.msra.mxu1 %v960_v57  ;;  %1237 = vmatmul.mubr.f32.gmra.mxu0 %v686_v58  ;;  %v1057_v55 = vld [vmem:[%s4052_s15 + $0x738] sm:$0xff]  ;;  %v1056_v57 = vld [vmem:[%s4052_s15 + $0x730] sm:$0xff]  ;;  %v718_v58 = vld [vmem:[#allocation3 + $0x2e0] sm:$0xff] }
  0xc1   : > { %1602 = vmatmul.mubr.f32.gmra.mxu1 %v688_v59  ;;  %1242 = vmatprep.mubr.f32.mxu0 %v691_v60  ;;  %v720_v59 = vld [vmem:[#allocation3 + $0x2f0] sm:$0xff]  ;;  %v723_v60 = vld [vmem:[#allocation3 + $0x308] sm:$0xff] }
  0xc2   : > { %1607 = vmatprep.mubr.f32.mxu1 %v693_v61  ;;  %1842 = vmatprep.subr.mxu0 %v829_v62  ;;  %v725_v61 = vld [vmem:[#allocation3 + $0x318] sm:$0xff] }
  0xc3   : > { %2207 = vmatprep.subr.mxu1 %v957_v63  ;;  %1843 = vmatpush1.msra.mxu0 %v828_v0  ;;  %v925_v62 = vld [vmem:[%s4052_s15 + $0x318] sm:$0xff]  ;;  %v924_v0 = vld [vmem:[%s4052_s15 + $0x310] sm:$0xff] }
  0xc4   : > { %2208 = vmatpush1.msra.mxu1 %v956_v1  ;;  %1243 = vmatmul.mubr.f32.gmra.mxu0 %v690_v2  ;;  %v1053_v63 = vld [vmem:[%s4052_s15 + $0x718] sm:$0xff]  ;;  %v1052_v1 = vld [vmem:[%s4052_s15 + $0x710] sm:$0xff]  ;;  %v722_v2 = vld [vmem:[#allocation3 + $0x300] sm:$0xff] }
  0xc5   : > { %1608 = vmatmul.mubr.f32.gmra.mxu1 %v692_v3  ;;  %1248 = vmatprep.mubr.f32.mxu0 %v695_v4  ;;  %v724_v3 = vld [vmem:[#allocation3 + $0x310] sm:$0xff]  ;;  %v727_v4 = vld [vmem:[#allocation3 + $0x328] sm:$0xff] }
  0xc6   : > { %1613 = vmatprep.mubr.f32.mxu1 %v697_v5  ;;  %1844 = vmatprep.subr.mxu0 %v953_v6  ;;  %v729_v5 = vld [vmem:[#allocation3 + $0x338] sm:$0xff] }
  0xc7   : > { %2209 = vmatprep.subr.mxu1 %v1081_v7  ;;  %1845 = vmatpush2.msra.mxu0 %v952_v8  ;;  %v921_v6 = vld [vmem:[%s4052_s15 + $0x2f8] sm:$0xff]  ;;  %v920_v8 = vld [vmem:[%s4052_s15 + $0x2f0] sm:$0xff] }
  0xc8   : > { %2210 = vmatpush2.msra.mxu1 %v1080_v9  ;;  %1249 = vmatmul.mubr.f32.gmra.mxu0 %v694_v10  ;;  %v1049_v7 = vld [vmem:[%s4052_s15 + $0x6f8] sm:$0xff]  ;;  %v1048_v9 = vld [vmem:[%s4052_s15 + $0x6f0] sm:$0xff]  ;;  %v726_v10 = vld [vmem:[#allocation3 + $0x320] sm:$0xff] }
  0xc9   : > { %1614 = vmatmul.mubr.f32.gmra.mxu1 %v696_v11  ;;  %1254 = vmatprep.mubr.f32.mxu0 %v699_v12  ;;  %v728_v11 = vld [vmem:[#allocation3 + $0x330] sm:$0xff]  ;;  %v731_v12 = vld [vmem:[#allocation3 + $0x348] sm:$0xff] }
  0xca   : > { %1619 = vmatprep.mubr.f32.mxu1 %v701_v13  ;;  %1846 = vmatprep.subr.mxu0 %v949_v14  ;;  %v733_v13 = vld [vmem:[#allocation3 + $0x358] sm:$0xff] }
  0xcb   : > { %2211 = vmatprep.subr.mxu1 %v1077_v15  ;;  %1847 = vmatpush2.msra.mxu0 %v948_v16  ;;  %v917_v14 = vld [vmem:[%s4052_s15 + $0x2d8] sm:$0xff]  ;;  %v916_v16 = vld [vmem:[%s4052_s15 + $0x2d0] sm:$0xff] }
  0xcc   : > { %2212 = vmatpush2.msra.mxu1 %v1076_v17  ;;  %1255 = vmatmul.mubr.f32.gmra.mxu0 %v698_v18  ;;  %v1045_v15 = vld [vmem:[%s4052_s15 + $0x6d8] sm:$0xff]  ;;  %v1044_v17 = vld [vmem:[%s4052_s15 + $0x6d0] sm:$0xff]  ;;  %v730_v18 = vld [vmem:[#allocation3 + $0x340] sm:$0xff] }
  0xcd   : > { %1620 = vmatmul.mubr.f32.gmra.mxu1 %v700_v19  ;;  %1260 = vmatprep.mubr.f32.mxu0 %v703_v20  ;;  %v732_v19 = vld [vmem:[#allocation3 + $0x350] sm:$0xff]  ;;  %v735_v20 = vld [vmem:[#allocation3 + $0x368] sm:$0xff] }
  0xce   : > { %1625 = vmatprep.mubr.f32.mxu1 %v705_v21  ;;  %1848 = vmatprep.subr.mxu0 %v945_v22  ;;  %v737_v21 = vld [vmem:[#allocation3 + $0x378] sm:$0xff] }
  0xcf   : > { %2213 = vmatprep.subr.mxu1 %v1073_v23  ;;  %1849 = vmatpush2.msra.mxu0 %v944_v24  ;;  %v913_v22 = vld [vmem:[%s4052_s15 + $0x2b8] sm:$0xff]  ;;  %v912_v24 = vld [vmem:[%s4052_s15 + $0x2b0] sm:$0xff] }
  0xd0   : > { %2214 = vmatpush2.msra.mxu1 %v1072_v25  ;;  %1261 = vmatmul.mubr.f32.gmra.mxu0 %v702_v26  ;;  %v1041_v23 = vld [vmem:[%s4052_s15 + $0x6b8] sm:$0xff]  ;;  %v1040_v25 = vld [vmem:[%s4052_s15 + $0x6b0] sm:$0xff]  ;;  %v734_v26 = vld [vmem:[#allocation3 + $0x360] sm:$0xff] }
  0xd1   : > { %1626 = vmatmul.mubr.f32.gmra.mxu1 %v704_v27  ;;  %1266 = vmatprep.mubr.f32.mxu0 %v707_v28  ;;  %v736_v27 = vld [vmem:[#allocation3 + $0x370] sm:$0xff]  ;;  %v739_v28 = vld [vmem:[#allocation3 + $0x388] sm:$0xff] }
  0xd2   : > { %1631 = vmatprep.mubr.f32.mxu1 %v709_v29  ;;  %1850 = vmatprep.subr.mxu0 %v941_v30  ;;  %v741_v29 = vld [vmem:[#allocation3 + $0x398] sm:$0xff] }
  0xd3   : > { %2215 = vmatprep.subr.mxu1 %v1069_v31  ;;  %1851 = vmatpush2.msra.mxu0 %v940_v32  ;;  %v909_v30 = vld [vmem:[%s4052_s15 + $0x298] sm:$0xff]  ;;  %v908_v32 = vld [vmem:[%s4052_s15 + $0x290] sm:$0xff] }
  0xd4   : > { %2216 = vmatpush2.msra.mxu1 %v1068_v33  ;;  %1267 = vmatmul.mubr.f32.gmra.mxu0 %v706_v34  ;;  %v1037_v31 = vld [vmem:[%s4052_s15 + $0x698] sm:$0xff]  ;;  %v1036_v33 = vld [vmem:[%s4052_s15 + $0x690] sm:$0xff]  ;;  %v738_v34 = vld [vmem:[#allocation3 + $0x380] sm:$0xff] }
  0xd5   : > { %1632 = vmatmul.mubr.f32.gmra.mxu1 %v708_v35  ;;  %1272 = vmatprep.mubr.f32.mxu0 %v711_v36  ;;  %v740_v35 = vld [vmem:[#allocation3 + $0x390] sm:$0xff]  ;;  %v743_v36 = vld [vmem:[#allocation3 + $0x3a8] sm:$0xff] }
  0xd6   : > { %1637 = vmatprep.mubr.f32.mxu1 %v713_v37  ;;  %1852 = vmatprep.subr.mxu0 %v937_v38  ;;  %v745_v37 = vld [vmem:[#allocation3 + $0x3b8] sm:$0xff] }
  0xd7   : > { %2217 = vmatprep.subr.mxu1 %v1065_v39  ;;  %1853 = vmatpush2.msra.mxu0 %v936_v40  ;;  %v905_v38 = vld [vmem:[%s4052_s15 + $0x278] sm:$0xff]  ;;  %v904_v40 = vld [vmem:[%s4052_s15 + $0x270] sm:$0xff] }
  0xd8   : > { %2218 = vmatpush2.msra.mxu1 %v1064_v41  ;;  %1273 = vmatmul.mubr.f32.gmra.mxu0 %v710_v42  ;;  %v1033_v39 = vld [vmem:[%s4052_s15 + $0x678] sm:$0xff]  ;;  %v1032_v41 = vld [vmem:[%s4052_s15 + $0x670] sm:$0xff]  ;;  %v742_v42 = vld [vmem:[#allocation3 + $0x3a0] sm:$0xff] }
  0xd9   : > { %1638 = vmatmul.mubr.f32.gmra.mxu1 %v712_v43  ;;  %1278 = vmatprep.mubr.f32.mxu0 %v715_v44  ;;  %v744_v43 = vld [vmem:[#allocation3 + $0x3b0] sm:$0xff]  ;;  %v747_v44 = vld [vmem:[#allocation3 + $0x3c8] sm:$0xff] }
  0xda   : > { %1643 = vmatprep.mubr.f32.mxu1 %v717_v45  ;;  %1854 = vmatprep.subr.mxu0 %v933_v46  ;;  %v749_v45 = vld [vmem:[#allocation3 + $0x3d8] sm:$0xff] }
  0xdb   : > { %2219 = vmatprep.subr.mxu1 %v1061_v47  ;;  %1855 = vmatpush2.msra.mxu0 %v932_v48  ;;  %v901_v46 = vld [vmem:[%s4052_s15 + $0x258] sm:$0xff]  ;;  %v900_v48 = vld [vmem:[%s4052_s15 + $0x250] sm:$0xff] }
  0xdc   : > { %2220 = vmatpush2.msra.mxu1 %v1060_v49  ;;  %1279 = vmatmul.mubr.f32.gmra.mxu0 %v714_v50  ;;  %v1029_v47 = vld [vmem:[%s4052_s15 + $0x658] sm:$0xff]  ;;  %v1028_v49 = vld [vmem:[%s4052_s15 + $0x650] sm:$0xff]  ;;  %v746_v50 = vld [vmem:[#allocation3 + $0x3c0] sm:$0xff] }
  0xdd   : > { %1644 = vmatmul.mubr.f32.gmra.mxu1 %v716_v51  ;;  %1284 = vmatprep.mubr.f32.mxu0 %v719_v52  ;;  %v748_v51 = vld [vmem:[#allocation3 + $0x3d0] sm:$0xff]  ;;  %v751_v52 = vld [vmem:[#allocation3 + $0x3e8] sm:$0xff] }
  0xde   : > { %1649 = vmatprep.mubr.f32.mxu1 %v721_v53  ;;  %1856 = vmatprep.subr.mxu0 %v929_v54  ;;  %v753_v53 = vld [vmem:[#allocation3 + $0x3f8] sm:$0xff] }
  0xdf   : > { %2221 = vmatprep.subr.mxu1 %v1057_v55  ;;  %1857 = vmatpush2.msra.mxu0 %v928_v56  ;;  %v897_v54 = vld [vmem:[%s4052_s15 + $0x238] sm:$0xff]  ;;  %v896_v56 = vld [vmem:[%s4052_s15 + $0x230] sm:$0xff] }
  0xe0   : > { %2222 = vmatpush2.msra.mxu1 %v1056_v57  ;;  %1285 = vmatmul.mubr.f32.gmra.mxu0 %v718_v58  ;;  %v1025_v55 = vld [vmem:[%s4052_s15 + $0x638] sm:$0xff]  ;;  %v1024_v57 = vld [vmem:[%s4052_s15 + $0x630] sm:$0xff]  ;;  %v750_v58 = vld [vmem:[#allocation3 + $0x3e0] sm:$0xff] }
  0xe1   : > { %1650 = vmatmul.mubr.f32.gmra.mxu1 %v720_v59  ;;  %1290 = vmatprep.mubr.f32.mxu0 %v723_v60  ;;  %v752_v59 = vld [vmem:[#allocation3 + $0x3f0] sm:$0xff]  ;;  %v755_v60 = vld [vmem:[#allocation3 + $0x408] sm:$0xff] }
  0xe2   : > { %1655 = vmatprep.mubr.f32.mxu1 %v725_v61  ;;  %1858 = vmatprep.subr.mxu0 %v925_v62  ;;  %v757_v61 = vld [vmem:[#allocation3 + $0x418] sm:$0xff] }
  0xe3   : > { %2223 = vmatprep.subr.mxu1 %v1053_v63  ;;  %1859 = vmatpush2.msra.mxu0 %v924_v0  ;;  %v893_v62 = vld [vmem:[%s4052_s15 + $0x218] sm:$0xff]  ;;  %v892_v0 = vld [vmem:[%s4052_s15 + $0x210] sm:$0xff] }
  0xe4   : > { %2224 = vmatpush2.msra.mxu1 %v1052_v1  ;;  %1291 = vmatmul.mubr.f32.gmra.mxu0 %v722_v2  ;;  %v1021_v63 = vld [vmem:[%s4052_s15 + $0x618] sm:$0xff]  ;;  %v1020_v1 = vld [vmem:[%s4052_s15 + $0x610] sm:$0xff]  ;;  %v754_v2 = vld [vmem:[#allocation3 + $0x400] sm:$0xff] }
  0xe5   : > { %1656 = vmatmul.mubr.f32.gmra.mxu1 %v724_v3  ;;  %1296 = vmatprep.mubr.f32.mxu0 %v727_v4  ;;  %v756_v3 = vld [vmem:[#allocation3 + $0x410] sm:$0xff]  ;;  %v759_v4 = vld [vmem:[#allocation3 + $0x428] sm:$0xff] }
  0xe6   : > { %1661 = vmatprep.mubr.f32.mxu1 %v729_v5  ;;  %1860 = vmatprep.subr.mxu0 %v921_v6  ;;  %v761_v5 = vld [vmem:[#allocation3 + $0x438] sm:$0xff]  ;;  %v758_v6 = vld [vmem:[#allocation3 + $0x420] sm:$0xff] }
  0xe7   : > { %2225 = vmatprep.subr.mxu1 %v1049_v7  ;;  %1861 = vmatpush2.msra.mxu0 %v920_v8  ;;  %v760_v7 = vld [vmem:[#allocation3 + $0x430] sm:$0xff]  ;;  %v763_v8 = vld [vmem:[#allocation3 + $0x448] sm:$0xff] }
  0xe8   : > { %2226 = vmatpush2.msra.mxu1 %v1048_v9  ;;  %1297 = vmatmul.mubr.f32.gmra.mxu0 %v726_v10  ;;  %v765_v9 = vld [vmem:[#allocation3 + $0x458] sm:$0xff]  ;;  %v762_v10 = vld [vmem:[#allocation3 + $0x440] sm:$0xff] }
  0xe9   : > { %1662 = vmatmul.mubr.f32.gmra.mxu1 %v728_v11  ;;  %1302 = vmatprep.mubr.f32.mxu0 %v731_v12  ;;  %v764_v11 = vld [vmem:[#allocation3 + $0x450] sm:$0xff]  ;;  %v767_v12 = vld [vmem:[#allocation3 + $0x468] sm:$0xff] }
  0xea   : > { %1667 = vmatprep.mubr.f32.mxu1 %v733_v13  ;;  %1862 = vmatprep.subr.mxu0 %v917_v14  ;;  %v769_v13 = vld [vmem:[#allocation3 + $0x478] sm:$0xff]  ;;  %v766_v14 = vld [vmem:[#allocation3 + $0x460] sm:$0xff] }
  0xeb   : > { %2227 = vmatprep.subr.mxu1 %v1045_v15  ;;  %1863 = vmatpush2.msra.mxu0 %v916_v16  ;;  %v768_v15 = vld [vmem:[#allocation3 + $0x470] sm:$0xff]  ;;  %v771_v16 = vld [vmem:[#allocation3 + $0x488] sm:$0xff] }
  0xec   : > { %2228 = vmatpush2.msra.mxu1 %v1044_v17  ;;  %1303 = vmatmul.mubr.f32.gmra.mxu0 %v730_v18  ;;  %v773_v17 = vld [vmem:[#allocation3 + $0x498] sm:$0xff]  ;;  %v770_v18 = vld [vmem:[#allocation3 + $0x480] sm:$0xff] }
  0xed   : > { %1668 = vmatmul.mubr.f32.gmra.mxu1 %v732_v19  ;;  %1308 = vmatprep.mubr.f32.mxu0 %v735_v20  ;;  %v772_v19 = vld [vmem:[#allocation3 + $0x490] sm:$0xff]  ;;  %v775_v20 = vld [vmem:[#allocation3 + $0x4a8] sm:$0xff] }
  0xee   : > { %1673 = vmatprep.mubr.f32.mxu1 %v737_v21  ;;  %1864 = vmatprep.subr.mxu0 %v913_v22  ;;  %v777_v21 = vld [vmem:[#allocation3 + $0x4b8] sm:$0xff]  ;;  %v774_v22 = vld [vmem:[#allocation3 + $0x4a0] sm:$0xff] }
  0xef   : > { %2229 = vmatprep.subr.mxu1 %v1041_v23  ;;  %1865 = vmatpush2.msra.mxu0 %v912_v24  ;;  %v776_v23 = vld [vmem:[#allocation3 + $0x4b0] sm:$0xff]  ;;  %v779_v24 = vld [vmem:[#allocation3 + $0x4c8] sm:$0xff] }
  0xf0   : > { %2230 = vmatpush2.msra.mxu1 %v1040_v25  ;;  %1309 = vmatmul.mubr.f32.gmra.mxu0 %v734_v26  ;;  %v781_v25 = vld [vmem:[#allocation3 + $0x4d8] sm:$0xff]  ;;  %v778_v26 = vld [vmem:[#allocation3 + $0x4c0] sm:$0xff] }
  0xf1   : > { %1674 = vmatmul.mubr.f32.gmra.mxu1 %v736_v27  ;;  %1314 = vmatprep.mubr.f32.mxu0 %v739_v28  ;;  %v780_v27 = vld [vmem:[#allocation3 + $0x4d0] sm:$0xff]  ;;  %v783_v28 = vld [vmem:[#allocation3 + $0x4e8] sm:$0xff] }
  0xf2   : > { %1679 = vmatprep.mubr.f32.mxu1 %v741_v29  ;;  %1866 = vmatprep.subr.mxu0 %v909_v30  ;;  %v785_v29 = vld [vmem:[#allocation3 + $0x4f8] sm:$0xff]  ;;  %v782_v30 = vld [vmem:[#allocation3 + $0x4e0] sm:$0xff] }
  0xf3   : > { %2231 = vmatprep.subr.mxu1 %v1037_v31  ;;  %1867 = vmatpush2.msra.mxu0 %v908_v32  ;;  %v784_v31 = vld [vmem:[#allocation3 + $0x4f0] sm:$0xff]  ;;  %v787_v32 = vld [vmem:[#allocation3 + $0x508] sm:$0xff] }
  0xf4   : > { %2232 = vmatpush2.msra.mxu1 %v1036_v33  ;;  %1315 = vmatmul.mubr.f32.gmra.mxu0 %v738_v34  ;;  %v789_v33 = vld [vmem:[#allocation3 + $0x518] sm:$0xff]  ;;  %v786_v34 = vld [vmem:[#allocation3 + $0x500] sm:$0xff] }
  0xf5   : > { %1680 = vmatmul.mubr.f32.gmra.mxu1 %v740_v35  ;;  %1320 = vmatprep.mubr.f32.mxu0 %v743_v36  ;;  %v788_v35 = vld [vmem:[#allocation3 + $0x510] sm:$0xff]  ;;  %v791_v36 = vld [vmem:[#allocation3 + $0x528] sm:$0xff] }
  0xf6   : > { %1685 = vmatprep.mubr.f32.mxu1 %v745_v37  ;;  %1868 = vmatprep.subr.mxu0 %v905_v38  ;;  %v793_v37 = vld [vmem:[#allocation3 + $0x538] sm:$0xff]  ;;  %v790_v38 = vld [vmem:[#allocation3 + $0x520] sm:$0xff] }
  0xf7   : > { %2233 = vmatprep.subr.mxu1 %v1033_v39  ;;  %1869 = vmatpush2.msra.mxu0 %v904_v40  ;;  %v792_v39 = vld [vmem:[#allocation3 + $0x530] sm:$0xff]  ;;  %v795_v40 = vld [vmem:[#allocation3 + $0x548] sm:$0xff] }
  0xf8   : > { %2234 = vmatpush2.msra.mxu1 %v1032_v41  ;;  %1321 = vmatmul.mubr.f32.gmra.mxu0 %v742_v42  ;;  %v797_v41 = vld [vmem:[#allocation3 + $0x558] sm:$0xff]  ;;  %v794_v42 = vld [vmem:[#allocation3 + $0x540] sm:$0xff] }
  0xf9   : > { %1686 = vmatmul.mubr.f32.gmra.mxu1 %v744_v43  ;;  %1326 = vmatprep.mubr.f32.mxu0 %v747_v44  ;;  %v796_v43 = vld [vmem:[#allocation3 + $0x550] sm:$0xff]  ;;  %v799_v44 = vld [vmem:[#allocation3 + $0x568] sm:$0xff] }
  0xfa   : > { %1691 = vmatprep.mubr.f32.mxu1 %v749_v45  ;;  %1870 = vmatprep.subr.mxu0 %v901_v46  ;;  %v801_v45 = vld [vmem:[#allocation3 + $0x578] sm:$0xff]  ;;  %v798_v46 = vld [vmem:[#allocation3 + $0x560] sm:$0xff] }
  0xfb   : > { %2235 = vmatprep.subr.mxu1 %v1029_v47  ;;  %1871 = vmatpush2.msra.mxu0 %v900_v48  ;;  %v800_v47 = vld [vmem:[#allocation3 + $0x570] sm:$0xff]  ;;  %v803_v48 = vld [vmem:[#allocation3 + $0x588] sm:$0xff] }
  0xfc   : > { %2236 = vmatpush2.msra.mxu1 %v1028_v49  ;;  %1327 = vmatmul.mubr.f32.gmra.mxu0 %v746_v50  ;;  %v805_v49 = vld [vmem:[#allocation3 + $0x598] sm:$0xff]  ;;  %v802_v50 = vld [vmem:[#allocation3 + $0x580] sm:$0xff] }
  0xfd   : > { %1692 = vmatmul.mubr.f32.gmra.mxu1 %v748_v51  ;;  %1332 = vmatprep.mubr.f32.mxu0 %v751_v52  ;;  %v804_v51 = vld [vmem:[#allocation3 + $0x590] sm:$0xff]  ;;  %v807_v52 = vld [vmem:[#allocation3 + $0x5a8] sm:$0xff] }
  0xfe   : > { %1697 = vmatprep.mubr.f32.mxu1 %v753_v53  ;;  %1872 = vmatprep.subr.mxu0 %v897_v54  ;;  %v809_v53 = vld [vmem:[#allocation3 + $0x5b8] sm:$0xff]  ;;  %v806_v54 = vld [vmem:[#allocation3 + $0x5a0] sm:$0xff] }
  0xff   : > { %2237 = vmatprep.subr.mxu1 %v1025_v55  ;;  %1873 = vmatpush2.msra.mxu0 %v896_v56  ;;  %v808_v55 = vld [vmem:[#allocation3 + $0x5b0] sm:$0xff]  ;;  %v811_v56 = vld [vmem:[#allocation3 + $0x5c8] sm:$0xff] }
 0x100   : > { %2238 = vmatpush2.msra.mxu1 %v1024_v57  ;;  %1333 = vmatmul.mubr.f32.gmra.mxu0 %v750_v58  ;;  %v813_v57 = vld [vmem:[#allocation3 + $0x5d8] sm:$0xff]  ;;  %v810_v58 = vld [vmem:[#allocation3 + $0x5c0] sm:$0xff] }
 0x101   : > { %1698 = vmatmul.mubr.f32.gmra.mxu1 %v752_v59  ;;  %1338 = vmatprep.mubr.f32.mxu0 %v755_v60  ;;  %v812_v59 = vld [vmem:[#allocation3 + $0x5d0] sm:$0xff]  ;;  %v815_v60 = vld [vmem:[#allocation3 + $0x5e8] sm:$0xff] }
 0x102   : > { %1703 = vmatprep.mubr.f32.mxu1 %v757_v61  ;;  %1874 = vmatprep.subr.mxu0 %v893_v62  ;;  %v817_v61 = vld [vmem:[#allocation3 + $0x5f8] sm:$0xff]  ;;  %v814_v62 = vld [vmem:[#allocation3 + $0x5e0] sm:$0xff] }
 0x103   : > { %2239 = vmatprep.subr.mxu1 %v1021_v63  ;;  %1875 = vmatpush2.msra.mxu0 %v892_v0  ;;  %v816_v63 = vld [vmem:[#allocation3 + $0x5f0] sm:$0xff]  ;;  %v819_v0 = vld [vmem:[#allocation3 + $0x608] sm:$0xff] }
 0x104   : > { %2240 = vmatpush2.msra.mxu1 %v1020_v1  ;;  %1339 = vmatmul.mubr.f32.gmra.mxu0 %v754_v2  ;;  %v821_v1 = vld [vmem:[#allocation3 + $0x618] sm:$0xff]  ;;  %v818_v2 = vld [vmem:[#allocation3 + $0x600] sm:$0xff] }
 0x105   : > { %1704 = vmatmul.mubr.f32.gmra.mxu1 %v756_v3  ;;  %1344 = vmatprep.mubr.f32.mxu0 %v759_v4  ;;  %v820_v3 = vld [vmem:[#allocation3 + $0x610] sm:$0xff]  ;;  %v823_v4 = vld [vmem:[#allocation3 + $0x628] sm:$0xff] }
 0x106   : > { %1709 = vmatprep.mubr.f32.mxu1 %v761_v5  ;;  %v825_v5 = vld [vmem:[#allocation3 + $0x638] sm:$0xff] }
 0x108   : > { %1345 = vmatmul.mubr.f32.gmra.mxu0 %v758_v6 }
 0x109   : > { %1710 = vmatmul.mubr.f32.gmra.mxu1 %v760_v7  ;;  %1350 = vmatprep.mubr.f32.mxu0 %v763_v8 }
 0x10a   : > { %1715 = vmatprep.mubr.f32.mxu1 %v765_v9  ;;  %v822_v9 = vld [vmem:[#allocation3 + $0x620] sm:$0xff] }
 0x10c   : > { %1351 = vmatmul.mubr.f32.gmra.mxu0 %v762_v10  ;;  %v824_v10 = vld [vmem:[#allocation3 + $0x630] sm:$0xff] }
 0x10d   : > { %1716 = vmatmul.mubr.f32.gmra.mxu1 %v764_v11  ;;  %1356 = vmatprep.mubr.f32.mxu0 %v767_v12 }
 0x10e   : > { %1721 = vmatprep.mubr.f32.mxu1 %v769_v13 }
 0x110   : > { %1357 = vmatmul.mubr.f32.gmra.mxu0 %v766_v14 }
 0x111   : > { %1722 = vmatmul.mubr.f32.gmra.mxu1 %v768_v15  ;;  %1362 = vmatprep.mubr.f32.mxu0 %v771_v16 }
 0x112   : > { %1727 = vmatprep.mubr.f32.mxu1 %v773_v17  ;;  %v3566_v17 = vld [vmem:[#allocation3 + $0x8] sm:$0xff] }
 0x114   : > { %1363 = vmatmul.mubr.f32.gmra.mxu0 %v770_v18  ;;  %v3567_v18 = vld [vmem:[#allocation3 + $0x18] sm:$0xff] }
 0x115   : > { %1728 = vmatmul.mubr.f32.gmra.mxu1 %v772_v19  ;;  %1368 = vmatprep.mubr.f32.mxu0 %v775_v20 }
 0x116   : > { %1733 = vmatprep.mubr.f32.mxu1 %v777_v21 }
 0x118   : > { %1369 = vmatmul.mubr.f32.gmra.mxu0 %v774_v22 }
 0x119   : > { %1734 = vmatmul.mubr.f32.gmra.mxu1 %v776_v23  ;;  %1374 = vmatprep.mubr.f32.mxu0 %v779_v24  ;;  %v3568_v24 = vld [vmem:[#allocation3] sm:$0xff] }
 0x11a   : > { %1739 = vmatprep.mubr.f32.mxu1 %v781_v25  ;;  %v3569_v25 = vld [vmem:[#allocation3 + $0x10] sm:$0xff] }
 0x11c   : > { %1375 = vmatmul.mubr.f32.gmra.mxu0 %v778_v26 }
 0x11d   : > { %1740 = vmatmul.mubr.f32.gmra.mxu1 %v780_v27  ;;  %1380 = vmatprep.mubr.f32.mxu0 %v783_v28  ;;  %v3570_v27 = vld [vmem:[#allocation3 + $0x28] sm:$0xff]  ;;  %v3571_v28 = vld [vmem:[#allocation3 + $0x38] sm:$0xff] }
 0x11e   : > { %1745 = vmatprep.mubr.f32.mxu1 %v785_v29 }
 0x120   : > { %1381 = vmatmul.mubr.f32.gmra.mxu0 %v782_v30 }
 0x121   : > { %1746 = vmatmul.mubr.f32.gmra.mxu1 %v784_v31  ;;  %1386 = vmatprep.mubr.f32.mxu0 %v787_v32 }
 0x122   : > { %1751 = vmatprep.mubr.f32.mxu1 %v789_v33 }
 0x124   : > { %1387 = vmatmul.mubr.f32.gmra.mxu0 %v786_v34  ;;  %v3572_v34 = vld [vmem:[#allocation3 + $0x20] sm:$0xff] }
 0x125   : > { %1752 = vmatmul.mubr.f32.gmra.mxu1 %v788_v35  ;;  %1392 = vmatprep.mubr.f32.mxu0 %v791_v36  ;;  %v3573_v35 = vld [vmem:[#allocation3 + $0x30] sm:$0xff] }
 0x126   : > { %1757 = vmatprep.mubr.f32.mxu1 %v793_v37  ;;  %v3574_v37 = vld [vmem:[#allocation3 + $0x48] sm:$0xff] }
 0x128   : > { %1393 = vmatmul.mubr.f32.gmra.mxu0 %v790_v38  ;;  %v3575_v38 = vld [vmem:[#allocation3 + $0x58] sm:$0xff] }
 0x129   : > { %1758 = vmatmul.mubr.f32.gmra.mxu1 %v792_v39  ;;  %1398 = vmatprep.mubr.f32.mxu0 %v795_v40 }
 0x12a   : > { %1763 = vmatprep.mubr.f32.mxu1 %v797_v41 }
 0x12c   : > { %1399 = vmatmul.mubr.f32.gmra.mxu0 %v794_v42 }
 0x12d   : > { %1764 = vmatmul.mubr.f32.gmra.mxu1 %v796_v43  ;;  %1404 = vmatprep.mubr.f32.mxu0 %v799_v44  ;;  %v3576_v44 = vld [vmem:[#allocation3 + $0x40] sm:$0xff] }
 0x12e   : > { %1769 = vmatprep.mubr.f32.mxu1 %v801_v45  ;;  %v3577_v45 = vld [vmem:[#allocation3 + $0x50] sm:$0xff] }
 0x130   : > { %1405 = vmatmul.mubr.f32.gmra.mxu0 %v798_v46 }
 0x131   : > { %1770 = vmatmul.mubr.f32.gmra.mxu1 %v800_v47  ;;  %1410 = vmatprep.mubr.f32.mxu0 %v803_v48  ;;  %v3578_v47 = vld [vmem:[#allocation3 + $0x68] sm:$0xff]  ;;  %v3579_v48 = vld [vmem:[#allocation3 + $0x78] sm:$0xff] }
 0x132   : > { %1775 = vmatprep.mubr.f32.mxu1 %v805_v49 }
 0x134   : > { %1411 = vmatmul.mubr.f32.gmra.mxu0 %v802_v50 }
 0x135   : > { %1776 = vmatmul.mubr.f32.gmra.mxu1 %v804_v51  ;;  %1416 = vmatprep.mubr.f32.mxu0 %v807_v52 }
 0x136   : > { %1781 = vmatprep.mubr.f32.mxu1 %v809_v53 }
 0x138   : > { %1417 = vmatmul.mubr.f32.gmra.mxu0 %v806_v54  ;;  %v3580_v54 = vld [vmem:[#allocation3 + $0x60] sm:$0xff] }
 0x139   : > { %1782 = vmatmul.mubr.f32.gmra.mxu1 %v808_v55  ;;  %1422 = vmatprep.mubr.f32.mxu0 %v811_v56  ;;  %v3581_v55 = vld [vmem:[#allocation3 + $0x70] sm:$0xff] }
 0x13a   : > { %1787 = vmatprep.mubr.f32.mxu1 %v813_v57  ;;  %v3582_v57 = vld [vmem:[#allocation3 + $0x88] sm:$0xff] }
 0x13c   : > { %1423 = vmatmul.mubr.f32.gmra.mxu0 %v810_v58  ;;  %v3583_v58 = vld [vmem:[#allocation3 + $0x98] sm:$0xff] }
 0x13d   : > { %1788 = vmatmul.mubr.f32.gmra.mxu1 %v812_v59  ;;  %1428 = vmatprep.mubr.f32.mxu0 %v815_v60 }
 0x13e   : > { %1793 = vmatprep.mubr.f32.mxu1 %v817_v61 }
 0x140   : > { %1429 = vmatmul.mubr.f32.gmra.mxu0 %v814_v62 }
 0x141   : > { %1794 = vmatmul.mubr.f32.gmra.mxu1 %v816_v63  ;;  %1434 = vmatprep.mubr.f32.mxu0 %v819_v0  ;;  %v3584_v0 = vld [vmem:[#allocation3 + $0x80] sm:$0xff] }
 0x142   : > { %1799 = vmatprep.mubr.f32.mxu1 %v821_v1  ;;  %v3585_v1 = vld [vmem:[#allocation3 + $0x90] sm:$0xff] }
 0x144   : > { %v1148_v6 = vpop.f32.mrf.mxu0  ;;  %1435 = vmatmul.mubr.f32.gmra.mxu0 %v818_v2 }
 0x145   : > { %v1513_v7 = vpop.f32.mrf.mxu1  ;;  %1800 = vmatmul.mubr.f32.gmra.mxu1 %v820_v3  ;;  %1440 = vmatprep.mubr.f32.mxu0 %v823_v4  ;;  %v3586_v3 = vld [vmem:[#allocation3 + $0xa8] sm:$0xff]  ;;  %v3587_v4 = vld [vmem:[#allocation3 + $0xb8] sm:$0xff] }
 0x146   : > { %v1514_v8 = vadd.f32 %v1513_v7, %v1148_v6  ;;  %1805 = vmatprep.mubr.f32.mxu1 %v825_v5  ;;  %v1150_v11 = vpop.f32.mrf.mxu0 }
 0x147   : > { %v1515_v12 = vpop.f32.mrf.mxu1 }
 0x148   : > { %3145 = vst [vmem:[%s4315_s19] sm:$0xff] %v1514_v8  ;;  %v1516_v13 = vadd.f32 %v1515_v12, %v1150_v11  ;;  %v1154_v14 = vpop.f32.mrf.mxu0  ;;  %1441 = vmatmul.mubr.f32.gmra.mxu0 %v822_v9  ;;  %v3589_v11 = vld [vmem:[#allocation3 + $0xb0] sm:$0xff] }
 0x149   : > { %v1519_v15 = vpop.f32.mrf.mxu1  ;;  %1806 = vmatmul.mubr.f32.gmra.mxu1 %v824_v10  ;;  %1876 = vmatprep.mubr.f32.mxu0 %v3566_v17  ;;  %v3588_v10 = vld [vmem:[#allocation3 + $0xa0] sm:$0xff] }
 0x14a   : > { %3146 = vst [vmem:[%s4315_s19 + $0x8] sm:$0xff] %v1516_v13  ;;  %v1520_v16 = vadd.f32 %v1519_v15, %v1154_v14  ;;  %2241 = vmatprep.mubr.f32.mxu1 %v3567_v18  ;;  %v1156_v19 = vpop.f32.mrf.mxu0  ;;  %v3590_v13 = vld [vmem:[#allocation3 + $0xc8] sm:$0xff]  ;;  %v3591_v14 = vld [vmem:[#allocation3 + $0xd8] sm:$0xff] }
 0x14b   : > { %v1521_v20 = vpop.f32.mrf.mxu1 }
 0x14c   : > { %3149 = vst [vmem:[%s4315_s19 + $0x20] sm:$0xff] %v1520_v16  ;;  %v1522_v21 = vadd.f32 %v1521_v20, %v1156_v19  ;;  %v1160_v22 = vpop.f32.mrf.mxu0  ;;  %1877 = vmatmul.mubr.f32.vlgmr.msra.gmra.mxu0 %v3568_v24  ;;  %v3592_v20 = vld [vmem:[#allocation3 + $0xc0] sm:$0xff]  ;;  %v3595_v24 = vld [vmem:[#allocation3 + $0xf8] sm:$0xff] }
 0x14d   : > { %v1525_v23 = vpop.f32.mrf.mxu1  ;;  %2242 = vmatmul.mubr.f32.vlgmr.msra.gmra.mxu1 %v3569_v25  ;;  %1882 = vmatprep.mubr.f32.mxu0 %v3570_v27 }
 0x14e   : > { %3150 = vst [vmem:[%s4315_s19 + $0x28] sm:$0xff] %v1522_v21  ;;  %v1526_v26 = vadd.f32 %v1525_v23, %v1160_v22  ;;  %2247 = vmatprep.mubr.f32.mxu1 %v3571_v28  ;;  %v1162_v29 = vpop.f32.mrf.mxu0  ;;  %v3593_v21 = vld [vmem:[#allocation3 + $0xd0] sm:$0xff]  ;;  %v3594_v23 = vld [vmem:[#allocation3 + $0xe8] sm:$0xff] }
 0x14f   : > { %v1527_v30 = vpop.f32.mrf.mxu1 }
 0x150   : > { %3153 = vst [vmem:[%s4315_s19 + $0x40] sm:$0xff] %v1526_v26  ;;  %v1528_v31 = vadd.f32 %v1527_v30, %v1162_v29  ;;  %v1166_v32 = vpop.f32.mrf.mxu0  ;;  %1883 = vmatmul.mubr.f32.gmra.mxu0 %v3572_v34  ;;  %v3596_v30 = vld [vmem:[#allocation3 + $0xe0] sm:$0xff]  ;;  %v3599_v34 = vld [vmem:[#allocation3 + $0x118] sm:$0xff] }
 0x151   : > { %v1531_v33 = vpop.f32.mrf.mxu1  ;;  %2248 = vmatmul.mubr.f32.gmra.mxu1 %v3573_v35  ;;  %1888 = vmatprep.mubr.f32.mxu0 %v3574_v37 }
 0x152   : > { %3154 = vst [vmem:[%s4315_s19 + $0x48] sm:$0xff] %v1528_v31  ;;  %v1532_v36 = vadd.f32 %v1531_v33, %v1166_v32  ;;  %2253 = vmatprep.mubr.f32.mxu1 %v3575_v38  ;;  %v1168_v39 = vpop.f32.mrf.mxu0  ;;  %v3597_v31 = vld [vmem:[#allocation3 + $0xf0] sm:$0xff]  ;;  %v3598_v33 = vld [vmem:[#allocation3 + $0x108] sm:$0xff] }
 0x153   : > { %v1533_v40 = vpop.f32.mrf.mxu1 }
 0x154   : > { %3157 = vst [vmem:[%s4315_s19 + $0x60] sm:$0xff] %v1532_v36  ;;  %v1534_v41 = vadd.f32 %v1533_v40, %v1168_v39  ;;  %v1172_v42 = vpop.f32.mrf.mxu0  ;;  %1889 = vmatmul.mubr.f32.gmra.mxu0 %v3576_v44  ;;  %v3600_v40 = vld [vmem:[#allocation3 + $0x100] sm:$0xff]  ;;  %v3603_v44 = vld [vmem:[#allocation3 + $0x138] sm:$0xff] }
 0x155   : > { %v1537_v43 = vpop.f32.mrf.mxu1  ;;  %2254 = vmatmul.mubr.f32.gmra.mxu1 %v3577_v45  ;;  %1894 = vmatprep.mubr.f32.mxu0 %v3578_v47 }
 0x156   : > { %3158 = vst [vmem:[%s4315_s19 + $0x68] sm:$0xff] %v1534_v41  ;;  %v1538_v46 = vadd.f32 %v1537_v43, %v1172_v42  ;;  %2259 = vmatprep.mubr.f32.mxu1 %v3579_v48  ;;  %v1174_v49 = vpop.f32.mrf.mxu0  ;;  %v3601_v41 = vld [vmem:[#allocation3 + $0x110] sm:$0xff]  ;;  %v3602_v43 = vld [vmem:[#allocation3 + $0x128] sm:$0xff] }
 0x157   : > { %v1539_v50 = vpop.f32.mrf.mxu1 }
 0x158   : > { %3161 = vst [vmem:[%s4315_s19 + $0x80] sm:$0xff] %v1538_v46  ;;  %v1540_v51 = vadd.f32 %v1539_v50, %v1174_v49  ;;  %v1178_v52 = vpop.f32.mrf.mxu0  ;;  %1895 = vmatmul.mubr.f32.gmra.mxu0 %v3580_v54  ;;  %v3604_v50 = vld [vmem:[#allocation3 + $0x120] sm:$0xff]  ;;  %v3607_v54 = vld [vmem:[#allocation3 + $0x158] sm:$0xff] }
 0x159   : > { %v1543_v53 = vpop.f32.mrf.mxu1  ;;  %2260 = vmatmul.mubr.f32.gmra.mxu1 %v3581_v55  ;;  %1900 = vmatprep.mubr.f32.mxu0 %v3582_v57 }
 0x15a   : > { %3162 = vst [vmem:[%s4315_s19 + $0x88] sm:$0xff] %v1540_v51  ;;  %v1544_v56 = vadd.f32 %v1543_v53, %v1178_v52  ;;  %2265 = vmatprep.mubr.f32.mxu1 %v3583_v58  ;;  %v1180_v59 = vpop.f32.mrf.mxu0  ;;  %v3605_v51 = vld [vmem:[#allocation3 + $0x130] sm:$0xff]  ;;  %v3606_v53 = vld [vmem:[#allocation3 + $0x148] sm:$0xff] }
 0x15b   : > { %v1545_v60 = vpop.f32.mrf.mxu1 }
 0x15c   : > { %3165 = vst [vmem:[%s4315_s19 + $0xa0] sm:$0xff] %v1544_v56  ;;  %v1546_v61 = vadd.f32 %v1545_v60, %v1180_v59  ;;  %v1184_v62 = vpop.f32.mrf.mxu0  ;;  %1901 = vmatmul.mubr.f32.gmra.mxu0 %v3584_v0  ;;  %v3608_v60 = vld [vmem:[#allocation3 + $0x140] sm:$0xff]  ;;  %v3611_v0 = vld [vmem:[#allocation3 + $0x178] sm:$0xff] }
 0x15d   : > { %v1549_v63 = vpop.f32.mrf.mxu1  ;;  %2266 = vmatmul.mubr.f32.gmra.mxu1 %v3585_v1  ;;  %1906 = vmatprep.mubr.f32.mxu0 %v3586_v3 }
 0x15e   : > { %3166 = vst [vmem:[%s4315_s19 + $0xa8] sm:$0xff] %v1546_v61  ;;  %v1550_v2 = vadd.f32 %v1549_v63, %v1184_v62  ;;  %2271 = vmatprep.mubr.f32.mxu1 %v3587_v4  ;;  %v1186_v5 = vpop.f32.mrf.mxu0  ;;  %v3609_v61 = vld [vmem:[#allocation3 + $0x150] sm:$0xff]  ;;  %v3610_v63 = vld [vmem:[#allocation3 + $0x168] sm:$0xff] }
 0x15f   : > { %v1551_v6 = vpop.f32.mrf.mxu1 }
 0x160   : > { %3169 = vst [vmem:[%s4315_s19 + $0xc0] sm:$0xff] %v1550_v2  ;;  %v1552_v7 = vadd.f32 %v1551_v6, %v1186_v5  ;;  %v1190_v8 = vpop.f32.mrf.mxu0  ;;  %1907 = vmatmul.mubr.f32.gmra.mxu0 %v3588_v10  ;;  %v3612_v6 = vld [vmem:[#allocation3 + $0x160] sm:$0xff]  ;;  %v3615_v10 = vld [vmem:[#allocation3 + $0x198] sm:$0xff] }
 0x161   : > { %v1555_v9 = vpop.f32.mrf.mxu1  ;;  %2272 = vmatmul.mubr.f32.gmra.mxu1 %v3589_v11  ;;  %1912 = vmatprep.mubr.f32.mxu0 %v3590_v13 }
 0x162   : > { %3170 = vst [vmem:[%s4315_s19 + $0xc8] sm:$0xff] %v1552_v7  ;;  %v1556_v12 = vadd.f32 %v1555_v9, %v1190_v8  ;;  %2277 = vmatprep.mubr.f32.mxu1 %v3591_v14  ;;  %v1192_v15 = vpop.f32.mrf.mxu0  ;;  %v3613_v7 = vld [vmem:[#allocation3 + $0x170] sm:$0xff]  ;;  %v3614_v9 = vld [vmem:[#allocation3 + $0x188] sm:$0xff] }
 0x163   : > { %v1557_v16 = vpop.f32.mrf.mxu1 }
 0x164   : > { %3173 = vst [vmem:[%s4315_s19 + $0xe0] sm:$0xff] %v1556_v12  ;;  %v1558_v17 = vadd.f32 %v1557_v16, %v1192_v15  ;;  %v1196_v18 = vpop.f32.mrf.mxu0  ;;  %1913 = vmatmul.mubr.f32.gmra.mxu0 %v3592_v20  ;;  %v3616_v16 = vld [vmem:[#allocation3 + $0x180] sm:$0xff]  ;;  %v3619_v20 = vld [vmem:[#allocation3 + $0x1b8] sm:$0xff] }
 0x165   : > { %v1561_v19 = vpop.f32.mrf.mxu1  ;;  %2278 = vmatmul.mubr.f32.gmra.mxu1 %v3593_v21  ;;  %1918 = vmatprep.mubr.f32.mxu0 %v3594_v23 }
 0x166   : > { %3174 = vst [vmem:[%s4315_s19 + $0xe8] sm:$0xff] %v1558_v17  ;;  %v1562_v22 = vadd.f32 %v1561_v19, %v1196_v18  ;;  %2283 = vmatprep.mubr.f32.mxu1 %v3595_v24  ;;  %v1198_v25 = vpop.f32.mrf.mxu0  ;;  %v3617_v17 = vld [vmem:[#allocation3 + $0x190] sm:$0xff]  ;;  %v3618_v19 = vld [vmem:[#allocation3 + $0x1a8] sm:$0xff] }
 0x167   : > { %v1563_v26 = vpop.f32.mrf.mxu1 }
 0x168   : > { %3177 = vst [vmem:[%s4315_s19 + $0x100] sm:$0xff] %v1562_v22  ;;  %v1564_v27 = vadd.f32 %v1563_v26, %v1198_v25  ;;  %v1202_v28 = vpop.f32.mrf.mxu0  ;;  %1919 = vmatmul.mubr.f32.gmra.mxu0 %v3596_v30  ;;  %v3620_v26 = vld [vmem:[#allocation3 + $0x1a0] sm:$0xff]  ;;  %v3623_v30 = vld [vmem:[#allocation3 + $0x1d8] sm:$0xff] }
 0x169   : > { %v1567_v29 = vpop.f32.mrf.mxu1  ;;  %2284 = vmatmul.mubr.f32.gmra.mxu1 %v3597_v31  ;;  %1924 = vmatprep.mubr.f32.mxu0 %v3598_v33 }
 0x16a   : > { %3178 = vst [vmem:[%s4315_s19 + $0x108] sm:$0xff] %v1564_v27  ;;  %v1568_v32 = vadd.f32 %v1567_v29, %v1202_v28  ;;  %2289 = vmatprep.mubr.f32.mxu1 %v3599_v34  ;;  %v1204_v35 = vpop.f32.mrf.mxu0  ;;  %v3621_v27 = vld [vmem:[#allocation3 + $0x1b0] sm:$0xff]  ;;  %v3622_v29 = vld [vmem:[#allocation3 + $0x1c8] sm:$0xff] }
 0x16b   : > { %v1569_v36 = vpop.f32.mrf.mxu1 }
 0x16c   : > { %3181 = vst [vmem:[%s4315_s19 + $0x120] sm:$0xff] %v1568_v32  ;;  %v1570_v37 = vadd.f32 %v1569_v36, %v1204_v35  ;;  %v1208_v38 = vpop.f32.mrf.mxu0  ;;  %1925 = vmatmul.mubr.f32.gmra.mxu0 %v3600_v40  ;;  %v3624_v36 = vld [vmem:[#allocation3 + $0x1c0] sm:$0xff]  ;;  %v3627_v40 = vld [vmem:[#allocation3 + $0x1f8] sm:$0xff] }
 0x16d   : > { %v1573_v39 = vpop.f32.mrf.mxu1  ;;  %2290 = vmatmul.mubr.f32.gmra.mxu1 %v3601_v41  ;;  %1930 = vmatprep.mubr.f32.mxu0 %v3602_v43 }
 0x16e   : > { %3182 = vst [vmem:[%s4315_s19 + $0x128] sm:$0xff] %v1570_v37  ;;  %v1574_v42 = vadd.f32 %v1573_v39, %v1208_v38  ;;  %2295 = vmatprep.mubr.f32.mxu1 %v3603_v44  ;;  %v1210_v45 = vpop.f32.mrf.mxu0  ;;  %v3625_v37 = vld [vmem:[#allocation3 + $0x1d0] sm:$0xff]  ;;  %v3626_v39 = vld [vmem:[#allocation3 + $0x1e8] sm:$0xff] }
 0x16f   : > { %v1575_v46 = vpop.f32.mrf.mxu1 }
 0x170   : > { %3185 = vst [vmem:[%s4315_s19 + $0x140] sm:$0xff] %v1574_v42  ;;  %v1576_v47 = vadd.f32 %v1575_v46, %v1210_v45  ;;  %v1214_v48 = vpop.f32.mrf.mxu0  ;;  %1931 = vmatmul.mubr.f32.gmra.mxu0 %v3604_v50  ;;  %v3628_v46 = vld [vmem:[#allocation3 + $0x1e0] sm:$0xff]  ;;  %v3631_v50 = vld [vmem:[#allocation3 + $0x218] sm:$0xff] }
 0x171   : > { %v1579_v49 = vpop.f32.mrf.mxu1  ;;  %2296 = vmatmul.mubr.f32.gmra.mxu1 %v3605_v51  ;;  %1936 = vmatprep.mubr.f32.mxu0 %v3606_v53 }
 0x172   : > { %3186 = vst [vmem:[%s4315_s19 + $0x148] sm:$0xff] %v1576_v47  ;;  %v1580_v52 = vadd.f32 %v1579_v49, %v1214_v48  ;;  %2301 = vmatprep.mubr.f32.mxu1 %v3607_v54  ;;  %v1216_v55 = vpop.f32.mrf.mxu0  ;;  %v3629_v47 = vld [vmem:[#allocation3 + $0x1f0] sm:$0xff]  ;;  %v3630_v49 = vld [vmem:[#allocation3 + $0x208] sm:$0xff] }
 0x173   : > { %v1581_v56 = vpop.f32.mrf.mxu1 }
 0x174   : > { %3189 = vst [vmem:[%s4315_s19 + $0x160] sm:$0xff] %v1580_v52  ;;  %v1582_v57 = vadd.f32 %v1581_v56, %v1216_v55  ;;  %v1220_v58 = vpop.f32.mrf.mxu0  ;;  %1937 = vmatmul.mubr.f32.gmra.mxu0 %v3608_v60  ;;  %v3632_v56 = vld [vmem:[#allocation3 + $0x200] sm:$0xff]  ;;  %v3635_v60 = vld [vmem:[#allocation3 + $0x238] sm:$0xff] }
 0x175   : > { %v1585_v59 = vpop.f32.mrf.mxu1  ;;  %2302 = vmatmul.mubr.f32.gmra.mxu1 %v3609_v61  ;;  %1942 = vmatprep.mubr.f32.mxu0 %v3610_v63 }
 0x176   : > { %3190 = vst [vmem:[%s4315_s19 + $0x168] sm:$0xff] %v1582_v57  ;;  %v1586_v62 = vadd.f32 %v1585_v59, %v1220_v58  ;;  %2307 = vmatprep.mubr.f32.mxu1 %v3611_v0  ;;  %v1222_v1 = vpop.f32.mrf.mxu0  ;;  %v3633_v57 = vld [vmem:[#allocation3 + $0x210] sm:$0xff]  ;;  %v3634_v59 = vld [vmem:[#allocation3 + $0x228] sm:$0xff] }
 0x177   : > { %v1587_v2 = vpop.f32.mrf.mxu1 }
 0x178   : > { %3193 = vst [vmem:[%s4315_s19 + $0x180] sm:$0xff] %v1586_v62  ;;  %v1588_v3 = vadd.f32 %v1587_v2, %v1222_v1  ;;  %v1226_v4 = vpop.f32.mrf.mxu0  ;;  %1943 = vmatmul.mubr.f32.gmra.mxu0 %v3612_v6  ;;  %v3636_v2 = vld [vmem:[#allocation3 + $0x220] sm:$0xff]  ;;  %v3639_v6 = vld [vmem:[#allocation3 + $0x258] sm:$0xff] }
 0x179   : > { %v1591_v5 = vpop.f32.mrf.mxu1  ;;  %2308 = vmatmul.mubr.f32.gmra.mxu1 %v3613_v7  ;;  %1948 = vmatprep.mubr.f32.mxu0 %v3614_v9 }
 0x17a   : > { %3194 = vst [vmem:[%s4315_s19 + $0x188] sm:$0xff] %v1588_v3  ;;  %v1592_v8 = vadd.f32 %v1591_v5, %v1226_v4  ;;  %2313 = vmatprep.mubr.f32.mxu1 %v3615_v10  ;;  %v1228_v11 = vpop.f32.mrf.mxu0  ;;  %v3637_v3 = vld [vmem:[#allocation3 + $0x230] sm:$0xff]  ;;  %v3638_v5 = vld [vmem:[#allocation3 + $0x248] sm:$0xff] }
 0x17b   : > { %v1593_v12 = vpop.f32.mrf.mxu1 }
 0x17c   : > { %3197 = vst [vmem:[%s4315_s19 + $0x1a0] sm:$0xff] %v1592_v8  ;;  %v1594_v13 = vadd.f32 %v1593_v12, %v1228_v11  ;;  %v1232_v14 = vpop.f32.mrf.mxu0  ;;  %1949 = vmatmul.mubr.f32.gmra.mxu0 %v3616_v16  ;;  %v3640_v12 = vld [vmem:[#allocation3 + $0x240] sm:$0xff]  ;;  %v3643_v16 = vld [vmem:[#allocation3 + $0x278] sm:$0xff] }
 0x17d   : > { %v1597_v15 = vpop.f32.mrf.mxu1  ;;  %2314 = vmatmul.mubr.f32.gmra.mxu1 %v3617_v17  ;;  %1954 = vmatprep.mubr.f32.mxu0 %v3618_v19 }
 0x17e   : > { %3198 = vst [vmem:[%s4315_s19 + $0x1a8] sm:$0xff] %v1594_v13  ;;  %v1598_v18 = vadd.f32 %v1597_v15, %v1232_v14  ;;  %2319 = vmatprep.mubr.f32.mxu1 %v3619_v20  ;;  %v1234_v21 = vpop.f32.mrf.mxu0  ;;  %v3641_v13 = vld [vmem:[#allocation3 + $0x250] sm:$0xff]  ;;  %v3642_v15 = vld [vmem:[#allocation3 + $0x268] sm:$0xff] }
 0x17f   : > { %v1599_v22 = vpop.f32.mrf.mxu1 }
 0x180   : > { %3201 = vst [vmem:[%s4315_s19 + $0x1c0] sm:$0xff] %v1598_v18  ;;  %v1600_v23 = vadd.f32 %v1599_v22, %v1234_v21  ;;  %v1238_v24 = vpop.f32.mrf.mxu0  ;;  %1955 = vmatmul.mubr.f32.gmra.mxu0 %v3620_v26  ;;  %v3644_v22 = vld [vmem:[#allocation3 + $0x260] sm:$0xff]  ;;  %v3647_v26 = vld [vmem:[#allocation3 + $0x298] sm:$0xff] }
 0x181   : > { %v1603_v25 = vpop.f32.mrf.mxu1  ;;  %2320 = vmatmul.mubr.f32.gmra.mxu1 %v3621_v27  ;;  %1960 = vmatprep.mubr.f32.mxu0 %v3622_v29 }
 0x182   : > { %3202 = vst [vmem:[%s4315_s19 + $0x1c8] sm:$0xff] %v1600_v23  ;;  %v1604_v28 = vadd.f32 %v1603_v25, %v1238_v24  ;;  %2325 = vmatprep.mubr.f32.mxu1 %v3623_v30  ;;  %v1240_v31 = vpop.f32.mrf.mxu0  ;;  %v3645_v23 = vld [vmem:[#allocation3 + $0x270] sm:$0xff]  ;;  %v3646_v25 = vld [vmem:[#allocation3 + $0x288] sm:$0xff] }
 0x183   : > { %v1605_v32 = vpop.f32.mrf.mxu1 }
 0x184   : > { %3205 = vst [vmem:[%s4315_s19 + $0x1e0] sm:$0xff] %v1604_v28  ;;  %v1606_v33 = vadd.f32 %v1605_v32, %v1240_v31  ;;  %v1244_v34 = vpop.f32.mrf.mxu0  ;;  %1961 = vmatmul.mubr.f32.gmra.mxu0 %v3624_v36  ;;  %v3648_v32 = vld [vmem:[#allocation3 + $0x280] sm:$0xff]  ;;  %v3651_v36 = vld [vmem:[#allocation3 + $0x2b8] sm:$0xff] }
 0x185   : > { %v1609_v35 = vpop.f32.mrf.mxu1  ;;  %2326 = vmatmul.mubr.f32.gmra.mxu1 %v3625_v37  ;;  %1966 = vmatprep.mubr.f32.mxu0 %v3626_v39 }
 0x186   : > { %3206 = vst [vmem:[%s4315_s19 + $0x1e8] sm:$0xff] %v1606_v33  ;;  %v1610_v38 = vadd.f32 %v1609_v35, %v1244_v34  ;;  %2331 = vmatprep.mubr.f32.mxu1 %v3627_v40  ;;  %v1246_v41 = vpop.f32.mrf.mxu0  ;;  %v3649_v33 = vld [vmem:[#allocation3 + $0x290] sm:$0xff]  ;;  %v3650_v35 = vld [vmem:[#allocation3 + $0x2a8] sm:$0xff] }
 0x187   : > { %v1611_v42 = vpop.f32.mrf.mxu1 }
 0x188   : > { %3209 = vst [vmem:[%s4315_s19 + $0x200] sm:$0xff] %v1610_v38  ;;  %v1612_v43 = vadd.f32 %v1611_v42, %v1246_v41  ;;  %v1250_v44 = vpop.f32.mrf.mxu0  ;;  %1967 = vmatmul.mubr.f32.gmra.mxu0 %v3628_v46  ;;  %v3652_v42 = vld [vmem:[#allocation3 + $0x2a0] sm:$0xff]  ;;  %v3655_v46 = vld [vmem:[#allocation3 + $0x2d8] sm:$0xff] }
 0x189   : > { %v1615_v45 = vpop.f32.mrf.mxu1  ;;  %2332 = vmatmul.mubr.f32.gmra.mxu1 %v3629_v47  ;;  %1972 = vmatprep.mubr.f32.mxu0 %v3630_v49 }
 0x18a   : > { %3210 = vst [vmem:[%s4315_s19 + $0x208] sm:$0xff] %v1612_v43  ;;  %v1616_v48 = vadd.f32 %v1615_v45, %v1250_v44  ;;  %2337 = vmatprep.mubr.f32.mxu1 %v3631_v50  ;;  %v1252_v51 = vpop.f32.mrf.mxu0  ;;  %v3653_v43 = vld [vmem:[#allocation3 + $0x2b0] sm:$0xff]  ;;  %v3654_v45 = vld [vmem:[#allocation3 + $0x2c8] sm:$0xff] }
 0x18b   : > { %v1617_v52 = vpop.f32.mrf.mxu1 }
 0x18c   : > { %3213 = vst [vmem:[%s4315_s19 + $0x220] sm:$0xff] %v1616_v48  ;;  %v1618_v53 = vadd.f32 %v1617_v52, %v1252_v51  ;;  %v1256_v54 = vpop.f32.mrf.mxu0  ;;  %1973 = vmatmul.mubr.f32.gmra.mxu0 %v3632_v56  ;;  %v3656_v52 = vld [vmem:[#allocation3 + $0x2c0] sm:$0xff]  ;;  %v3659_v56 = vld [vmem:[#allocation3 + $0x2f8] sm:$0xff] }
 0x18d   : > { %v1621_v55 = vpop.f32.mrf.mxu1  ;;  %2338 = vmatmul.mubr.f32.gmra.mxu1 %v3633_v57  ;;  %1978 = vmatprep.mubr.f32.mxu0 %v3634_v59 }
 0x18e   : > { %3214 = vst [vmem:[%s4315_s19 + $0x228] sm:$0xff] %v1618_v53  ;;  %v1622_v58 = vadd.f32 %v1621_v55, %v1256_v54  ;;  %2343 = vmatprep.mubr.f32.mxu1 %v3635_v60  ;;  %v1258_v61 = vpop.f32.mrf.mxu0  ;;  %v3657_v53 = vld [vmem:[#allocation3 + $0x2d0] sm:$0xff]  ;;  %v3658_v55 = vld [vmem:[#allocation3 + $0x2e8] sm:$0xff] }
 0x18f   : > { %v1623_v62 = vpop.f32.mrf.mxu1 }
 0x190   : > { %3217 = vst [vmem:[%s4315_s19 + $0x240] sm:$0xff] %v1622_v58  ;;  %v1624_v63 = vadd.f32 %v1623_v62, %v1258_v61  ;;  %v1262_v0 = vpop.f32.mrf.mxu0  ;;  %1979 = vmatmul.mubr.f32.gmra.mxu0 %v3636_v2  ;;  %v3660_v62 = vld [vmem:[#allocation3 + $0x2e0] sm:$0xff]  ;;  %v3663_v2 = vld [vmem:[#allocation3 + $0x318] sm:$0xff] }
 0x191   : > { %v1627_v1 = vpop.f32.mrf.mxu1  ;;  %2344 = vmatmul.mubr.f32.gmra.mxu1 %v3637_v3  ;;  %1984 = vmatprep.mubr.f32.mxu0 %v3638_v5 }
 0x192   : > { %3218 = vst [vmem:[%s4315_s19 + $0x248] sm:$0xff] %v1624_v63  ;;  %v1628_v4 = vadd.f32 %v1627_v1, %v1262_v0  ;;  %2349 = vmatprep.mubr.f32.mxu1 %v3639_v6  ;;  %v1264_v7 = vpop.f32.mrf.mxu0  ;;  %v3661_v63 = vld [vmem:[#allocation3 + $0x2f0] sm:$0xff]  ;;  %v3662_v1 = vld [vmem:[#allocation3 + $0x308] sm:$0xff] }
 0x193   : > { %v1629_v8 = vpop.f32.mrf.mxu1 }
 0x194   : > { %3221 = vst [vmem:[%s4315_s19 + $0x260] sm:$0xff] %v1628_v4  ;;  %v1630_v9 = vadd.f32 %v1629_v8, %v1264_v7  ;;  %v1268_v10 = vpop.f32.mrf.mxu0  ;;  %1985 = vmatmul.mubr.f32.gmra.mxu0 %v3640_v12  ;;  %v3664_v8 = vld [vmem:[#allocation3 + $0x300] sm:$0xff]  ;;  %v3667_v12 = vld [vmem:[#allocation3 + $0x338] sm:$0xff] }
 0x195   : > { %v1633_v11 = vpop.f32.mrf.mxu1  ;;  %2350 = vmatmul.mubr.f32.gmra.mxu1 %v3641_v13  ;;  %1990 = vmatprep.mubr.f32.mxu0 %v3642_v15 }
 0x196   : > { %3222 = vst [vmem:[%s4315_s19 + $0x268] sm:$0xff] %v1630_v9  ;;  %v1634_v14 = vadd.f32 %v1633_v11, %v1268_v10  ;;  %2355 = vmatprep.mubr.f32.mxu1 %v3643_v16  ;;  %v1270_v17 = vpop.f32.mrf.mxu0  ;;  %v3665_v9 = vld [vmem:[#allocation3 + $0x310] sm:$0xff]  ;;  %v3666_v11 = vld [vmem:[#allocation3 + $0x328] sm:$0xff] }
 0x197   : > { %v1635_v18 = vpop.f32.mrf.mxu1 }
 0x198   : > { %3225 = vst [vmem:[%s4315_s19 + $0x280] sm:$0xff] %v1634_v14  ;;  %v1636_v19 = vadd.f32 %v1635_v18, %v1270_v17  ;;  %v1274_v20 = vpop.f32.mrf.mxu0  ;;  %1991 = vmatmul.mubr.f32.gmra.mxu0 %v3644_v22  ;;  %v3668_v18 = vld [vmem:[#allocation3 + $0x320] sm:$0xff]  ;;  %v3671_v22 = vld [vmem:[#allocation3 + $0x358] sm:$0xff] }
 0x199   : > { %v1639_v21 = vpop.f32.mrf.mxu1  ;;  %2356 = vmatmul.mubr.f32.gmra.mxu1 %v3645_v23  ;;  %1996 = vmatprep.mubr.f32.mxu0 %v3646_v25 }
 0x19a   : > { %3226 = vst [vmem:[%s4315_s19 + $0x288] sm:$0xff] %v1636_v19  ;;  %v1640_v24 = vadd.f32 %v1639_v21, %v1274_v20  ;;  %2361 = vmatprep.mubr.f32.mxu1 %v3647_v26  ;;  %v1276_v27 = vpop.f32.mrf.mxu0  ;;  %v3669_v19 = vld [vmem:[#allocation3 + $0x330] sm:$0xff]  ;;  %v3670_v21 = vld [vmem:[#allocation3 + $0x348] sm:$0xff] }
 0x19b   : > { %v1641_v28 = vpop.f32.mrf.mxu1 }
 0x19c   : > { %3229 = vst [vmem:[%s4315_s19 + $0x2a0] sm:$0xff] %v1640_v24  ;;  %v1642_v29 = vadd.f32 %v1641_v28, %v1276_v27  ;;  %v1280_v30 = vpop.f32.mrf.mxu0  ;;  %1997 = vmatmul.mubr.f32.gmra.mxu0 %v3648_v32  ;;  %v3672_v28 = vld [vmem:[#allocation3 + $0x340] sm:$0xff]  ;;  %v3675_v32 = vld [vmem:[#allocation3 + $0x378] sm:$0xff] }
 0x19d   : > { %v1645_v31 = vpop.f32.mrf.mxu1  ;;  %2362 = vmatmul.mubr.f32.gmra.mxu1 %v3649_v33  ;;  %2002 = vmatprep.mubr.f32.mxu0 %v3650_v35 }
 0x19e   : > { %3230 = vst [vmem:[%s4315_s19 + $0x2a8] sm:$0xff] %v1642_v29  ;;  %v1646_v34 = vadd.f32 %v1645_v31, %v1280_v30  ;;  %2367 = vmatprep.mubr.f32.mxu1 %v3651_v36  ;;  %v1282_v37 = vpop.f32.mrf.mxu0  ;;  %v3673_v29 = vld [vmem:[#allocation3 + $0x350] sm:$0xff]  ;;  %v3674_v31 = vld [vmem:[#allocation3 + $0x368] sm:$0xff] }
 0x19f   : > { %v1647_v38 = vpop.f32.mrf.mxu1 }
 0x1a0   : > { %3233 = vst [vmem:[%s4315_s19 + $0x2c0] sm:$0xff] %v1646_v34  ;;  %v1648_v39 = vadd.f32 %v1647_v38, %v1282_v37  ;;  %v1286_v40 = vpop.f32.mrf.mxu0  ;;  %2003 = vmatmul.mubr.f32.gmra.mxu0 %v3652_v42  ;;  %v3676_v38 = vld [vmem:[#allocation3 + $0x360] sm:$0xff]  ;;  %v3679_v42 = vld [vmem:[#allocation3 + $0x398] sm:$0xff] }
 0x1a1   : > { %v1651_v41 = vpop.f32.mrf.mxu1  ;;  %2368 = vmatmul.mubr.f32.gmra.mxu1 %v3653_v43  ;;  %2008 = vmatprep.mubr.f32.mxu0 %v3654_v45 }
 0x1a2   : > { %3234 = vst [vmem:[%s4315_s19 + $0x2c8] sm:$0xff] %v1648_v39  ;;  %v1652_v44 = vadd.f32 %v1651_v41, %v1286_v40  ;;  %2373 = vmatprep.mubr.f32.mxu1 %v3655_v46  ;;  %v1288_v47 = vpop.f32.mrf.mxu0  ;;  %v3677_v39 = vld [vmem:[#allocation3 + $0x370] sm:$0xff]  ;;  %v3678_v41 = vld [vmem:[#allocation3 + $0x388] sm:$0xff] }
 0x1a3   : > { %v1653_v48 = vpop.f32.mrf.mxu1 }
 0x1a4   : > { %3237 = vst [vmem:[%s4315_s19 + $0x2e0] sm:$0xff] %v1652_v44  ;;  %v1654_v49 = vadd.f32 %v1653_v48, %v1288_v47  ;;  %v1292_v50 = vpop.f32.mrf.mxu0  ;;  %2009 = vmatmul.mubr.f32.gmra.mxu0 %v3656_v52  ;;  %v3680_v48 = vld [vmem:[#allocation3 + $0x380] sm:$0xff]  ;;  %v3683_v52 = vld [vmem:[#allocation3 + $0x3b8] sm:$0xff] }
 0x1a5   : > { %v1657_v51 = vpop.f32.mrf.mxu1  ;;  %2374 = vmatmul.mubr.f32.gmra.mxu1 %v3657_v53  ;;  %2014 = vmatprep.mubr.f32.mxu0 %v3658_v55 }
 0x1a6   : > { %3238 = vst [vmem:[%s4315_s19 + $0x2e8] sm:$0xff] %v1654_v49  ;;  %v1658_v54 = vadd.f32 %v1657_v51, %v1292_v50  ;;  %2379 = vmatprep.mubr.f32.mxu1 %v3659_v56  ;;  %v1294_v57 = vpop.f32.mrf.mxu0  ;;  %v3681_v49 = vld [vmem:[#allocation3 + $0x390] sm:$0xff]  ;;  %v3682_v51 = vld [vmem:[#allocation3 + $0x3a8] sm:$0xff] }
 0x1a7   : > { %v1659_v58 = vpop.f32.mrf.mxu1 }
 0x1a8   : > { %3241 = vst [vmem:[%s4315_s19 + $0x300] sm:$0xff] %v1658_v54  ;;  %v1660_v59 = vadd.f32 %v1659_v58, %v1294_v57  ;;  %v1298_v60 = vpop.f32.mrf.mxu0  ;;  %2015 = vmatmul.mubr.f32.gmra.mxu0 %v3660_v62  ;;  %v3684_v58 = vld [vmem:[#allocation3 + $0x3a0] sm:$0xff]  ;;  %v3687_v62 = vld [vmem:[#allocation3 + $0x3d8] sm:$0xff] }
 0x1a9   : > { %v1663_v61 = vpop.f32.mrf.mxu1  ;;  %2380 = vmatmul.mubr.f32.gmra.mxu1 %v3661_v63  ;;  %2020 = vmatprep.mubr.f32.mxu0 %v3662_v1 }
 0x1aa   : > { %3242 = vst [vmem:[%s4315_s19 + $0x308] sm:$0xff] %v1660_v59  ;;  %v1664_v0 = vadd.f32 %v1663_v61, %v1298_v60  ;;  %2385 = vmatprep.mubr.f32.mxu1 %v3663_v2  ;;  %v1300_v3 = vpop.f32.mrf.mxu0  ;;  %v3685_v59 = vld [vmem:[#allocation3 + $0x3b0] sm:$0xff]  ;;  %v3686_v61 = vld [vmem:[#allocation3 + $0x3c8] sm:$0xff] }
 0x1ab   : > { %v1665_v4 = vpop.f32.mrf.mxu1 }
 0x1ac   : > { %3245 = vst [vmem:[%s4315_s19 + $0x320] sm:$0xff] %v1664_v0  ;;  %v1666_v5 = vadd.f32 %v1665_v4, %v1300_v3  ;;  %v1304_v6 = vpop.f32.mrf.mxu0  ;;  %2021 = vmatmul.mubr.f32.gmra.mxu0 %v3664_v8  ;;  %v3688_v4 = vld [vmem:[#allocation3 + $0x3c0] sm:$0xff]  ;;  %v3691_v8 = vld [vmem:[#allocation3 + $0x3f8] sm:$0xff] }
 0x1ad   : > { %v1669_v7 = vpop.f32.mrf.mxu1  ;;  %2386 = vmatmul.mubr.f32.gmra.mxu1 %v3665_v9  ;;  %2026 = vmatprep.mubr.f32.mxu0 %v3666_v11 }
 0x1ae   : > { %3246 = vst [vmem:[%s4315_s19 + $0x328] sm:$0xff] %v1666_v5  ;;  %v1670_v10 = vadd.f32 %v1669_v7, %v1304_v6  ;;  %2391 = vmatprep.mubr.f32.mxu1 %v3667_v12  ;;  %v1306_v13 = vpop.f32.mrf.mxu0  ;;  %v3689_v5 = vld [vmem:[#allocation3 + $0x3d0] sm:$0xff]  ;;  %v3690_v7 = vld [vmem:[#allocation3 + $0x3e8] sm:$0xff] }
 0x1af   : > { %v1671_v14 = vpop.f32.mrf.mxu1 }
 0x1b0   : > { %3249 = vst [vmem:[%s4315_s19 + $0x340] sm:$0xff] %v1670_v10  ;;  %v1672_v15 = vadd.f32 %v1671_v14, %v1306_v13  ;;  %v1310_v16 = vpop.f32.mrf.mxu0  ;;  %2027 = vmatmul.mubr.f32.gmra.mxu0 %v3668_v18  ;;  %v3692_v14 = vld [vmem:[#allocation3 + $0x3e0] sm:$0xff]  ;;  %v3695_v18 = vld [vmem:[#allocation3 + $0x418] sm:$0xff] }
 0x1b1   : > { %v1675_v17 = vpop.f32.mrf.mxu1  ;;  %2392 = vmatmul.mubr.f32.gmra.mxu1 %v3669_v19  ;;  %2032 = vmatprep.mubr.f32.mxu0 %v3670_v21 }
 0x1b2   : > { %3250 = vst [vmem:[%s4315_s19 + $0x348] sm:$0xff] %v1672_v15  ;;  %v1676_v20 = vadd.f32 %v1675_v17, %v1310_v16  ;;  %2397 = vmatprep.mubr.f32.mxu1 %v3671_v22  ;;  %v1312_v23 = vpop.f32.mrf.mxu0  ;;  %v3693_v15 = vld [vmem:[#allocation3 + $0x3f0] sm:$0xff]  ;;  %v3694_v17 = vld [vmem:[#allocation3 + $0x408] sm:$0xff] }
 0x1b3   : > { %v1677_v24 = vpop.f32.mrf.mxu1 }
 0x1b4   : > { %3253 = vst [vmem:[%s4315_s19 + $0x360] sm:$0xff] %v1676_v20  ;;  %v1678_v25 = vadd.f32 %v1677_v24, %v1312_v23  ;;  %v1316_v26 = vpop.f32.mrf.mxu0  ;;  %2033 = vmatmul.mubr.f32.gmra.mxu0 %v3672_v28  ;;  %v3696_v24 = vld [vmem:[#allocation3 + $0x400] sm:$0xff]  ;;  %v3699_v28 = vld [vmem:[#allocation3 + $0x438] sm:$0xff] }
 0x1b5   : > { %v1681_v27 = vpop.f32.mrf.mxu1  ;;  %2398 = vmatmul.mubr.f32.gmra.mxu1 %v3673_v29  ;;  %2038 = vmatprep.mubr.f32.mxu0 %v3674_v31 }
 0x1b6   : > { %3254 = vst [vmem:[%s4315_s19 + $0x368] sm:$0xff] %v1678_v25  ;;  %v1682_v30 = vadd.f32 %v1681_v27, %v1316_v26  ;;  %2403 = vmatprep.mubr.f32.mxu1 %v3675_v32  ;;  %v1318_v33 = vpop.f32.mrf.mxu0  ;;  %v3697_v25 = vld [vmem:[#allocation3 + $0x410] sm:$0xff]  ;;  %v3698_v27 = vld [vmem:[#allocation3 + $0x428] sm:$0xff] }
 0x1b7   : > { %v1683_v34 = vpop.f32.mrf.mxu1 }
 0x1b8   : > { %3257 = vst [vmem:[%s4315_s19 + $0x380] sm:$0xff] %v1682_v30  ;;  %v1684_v35 = vadd.f32 %v1683_v34, %v1318_v33  ;;  %v1322_v36 = vpop.f32.mrf.mxu0  ;;  %2039 = vmatmul.mubr.f32.gmra.mxu0 %v3676_v38  ;;  %v3700_v34 = vld [vmem:[#allocation3 + $0x420] sm:$0xff]  ;;  %v3703_v38 = vld [vmem:[#allocation3 + $0x458] sm:$0xff] }
 0x1b9   : > { %v1687_v37 = vpop.f32.mrf.mxu1  ;;  %2404 = vmatmul.mubr.f32.gmra.mxu1 %v3677_v39  ;;  %2044 = vmatprep.mubr.f32.mxu0 %v3678_v41 }
 0x1ba   : > { %3258 = vst [vmem:[%s4315_s19 + $0x388] sm:$0xff] %v1684_v35  ;;  %v1688_v40 = vadd.f32 %v1687_v37, %v1322_v36  ;;  %2409 = vmatprep.mubr.f32.mxu1 %v3679_v42  ;;  %v1324_v43 = vpop.f32.mrf.mxu0  ;;  %v3701_v35 = vld [vmem:[#allocation3 + $0x430] sm:$0xff]  ;;  %v3702_v37 = vld [vmem:[#allocation3 + $0x448] sm:$0xff] }
 0x1bb   : > { %v1689_v44 = vpop.f32.mrf.mxu1 }
 0x1bc   : > { %3261 = vst [vmem:[%s4315_s19 + $0x3a0] sm:$0xff] %v1688_v40  ;;  %v1690_v45 = vadd.f32 %v1689_v44, %v1324_v43  ;;  %v1328_v46 = vpop.f32.mrf.mxu0  ;;  %2045 = vmatmul.mubr.f32.gmra.mxu0 %v3680_v48  ;;  %v3704_v44 = vld [vmem:[#allocation3 + $0x440] sm:$0xff]  ;;  %v3707_v48 = vld [vmem:[#allocation3 + $0x478] sm:$0xff] }
 0x1bd   : > { %v1693_v47 = vpop.f32.mrf.mxu1  ;;  %2410 = vmatmul.mubr.f32.gmra.mxu1 %v3681_v49  ;;  %2050 = vmatprep.mubr.f32.mxu0 %v3682_v51 }
 0x1be   : > { %3262 = vst [vmem:[%s4315_s19 + $0x3a8] sm:$0xff] %v1690_v45  ;;  %v1694_v50 = vadd.f32 %v1693_v47, %v1328_v46  ;;  %2415 = vmatprep.mubr.f32.mxu1 %v3683_v52  ;;  %v1330_v53 = vpop.f32.mrf.mxu0  ;;  %v3705_v45 = vld [vmem:[#allocation3 + $0x450] sm:$0xff]  ;;  %v3706_v47 = vld [vmem:[#allocation3 + $0x468] sm:$0xff] }
 0x1bf   : > { %v1695_v54 = vpop.f32.mrf.mxu1 }
 0x1c0   : > { %3265 = vst [vmem:[%s4315_s19 + $0x3c0] sm:$0xff] %v1694_v50  ;;  %v1696_v55 = vadd.f32 %v1695_v54, %v1330_v53  ;;  %v1334_v56 = vpop.f32.mrf.mxu0  ;;  %2051 = vmatmul.mubr.f32.gmra.mxu0 %v3684_v58  ;;  %v3708_v54 = vld [vmem:[#allocation3 + $0x460] sm:$0xff]  ;;  %v3711_v58 = vld [vmem:[#allocation3 + $0x498] sm:$0xff] }
 0x1c1   : > { %v1699_v57 = vpop.f32.mrf.mxu1  ;;  %2416 = vmatmul.mubr.f32.gmra.mxu1 %v3685_v59  ;;  %2056 = vmatprep.mubr.f32.mxu0 %v3686_v61 }
 0x1c2   : > { %3266 = vst [vmem:[%s4315_s19 + $0x3c8] sm:$0xff] %v1696_v55  ;;  %v1700_v60 = vadd.f32 %v1699_v57, %v1334_v56  ;;  %2421 = vmatprep.mubr.f32.mxu1 %v3687_v62  ;;  %v1336_v63 = vpop.f32.mrf.mxu0  ;;  %v3709_v55 = vld [vmem:[#allocation3 + $0x470] sm:$0xff]  ;;  %v3710_v57 = vld [vmem:[#allocation3 + $0x488] sm:$0xff] }
 0x1c3   : > { %v1701_v0 = vpop.f32.mrf.mxu1 }
 0x1c4   : > { %3269 = vst [vmem:[%s4315_s19 + $0x3e0] sm:$0xff] %v1700_v60  ;;  %v1702_v1 = vadd.f32 %v1701_v0, %v1336_v63  ;;  %v1340_v2 = vpop.f32.mrf.mxu0  ;;  %2057 = vmatmul.mubr.f32.gmra.mxu0 %v3688_v4  ;;  %v3712_v0 = vld [vmem:[#allocation3 + $0x480] sm:$0xff]  ;;  %v3715_v4 = vld [vmem:[#allocation3 + $0x4b8] sm:$0xff] }
 0x1c5   : > { %v1705_v3 = vpop.f32.mrf.mxu1  ;;  %2422 = vmatmul.mubr.f32.gmra.mxu1 %v3689_v5  ;;  %2062 = vmatprep.mubr.f32.mxu0 %v3690_v7 }
 0x1c6   : > { %3270 = vst [vmem:[%s4315_s19 + $0x3e8] sm:$0xff] %v1702_v1  ;;  %v1706_v6 = vadd.f32 %v1705_v3, %v1340_v2  ;;  %2427 = vmatprep.mubr.f32.mxu1 %v3691_v8  ;;  %v1342_v9 = vpop.f32.mrf.mxu0  ;;  %v3713_v1 = vld [vmem:[#allocation3 + $0x490] sm:$0xff]  ;;  %v3714_v3 = vld [vmem:[#allocation3 + $0x4a8] sm:$0xff] }
 0x1c7   : > { %v1707_v10 = vpop.f32.mrf.mxu1 }
 0x1c8   : > { %3273 = vst [vmem:[%s4315_s19 + $0x400] sm:$0xff] %v1706_v6  ;;  %v1708_v11 = vadd.f32 %v1707_v10, %v1342_v9  ;;  %v1346_v12 = vpop.f32.mrf.mxu0  ;;  %2063 = vmatmul.mubr.f32.gmra.mxu0 %v3692_v14  ;;  %v3716_v10 = vld [vmem:[#allocation3 + $0x4a0] sm:$0xff]  ;;  %v3719_v14 = vld [vmem:[#allocation3 + $0x4d8] sm:$0xff] }
 0x1c9   : > { %v1711_v13 = vpop.f32.mrf.mxu1  ;;  %2428 = vmatmul.mubr.f32.gmra.mxu1 %v3693_v15  ;;  %2068 = vmatprep.mubr.f32.mxu0 %v3694_v17 }
 0x1ca   : > { %3274 = vst [vmem:[%s4315_s19 + $0x408] sm:$0xff] %v1708_v11  ;;  %v1712_v16 = vadd.f32 %v1711_v13, %v1346_v12  ;;  %2433 = vmatprep.mubr.f32.mxu1 %v3695_v18  ;;  %v1348_v19 = vpop.f32.mrf.mxu0  ;;  %v3717_v11 = vld [vmem:[#allocation3 + $0x4b0] sm:$0xff]  ;;  %v3718_v13 = vld [vmem:[#allocation3 + $0x4c8] sm:$0xff] }
 0x1cb   : > { %v1713_v20 = vpop.f32.mrf.mxu1 }
 0x1cc   : > { %3277 = vst [vmem:[%s4315_s19 + $0x420] sm:$0xff] %v1712_v16  ;;  %v1714_v21 = vadd.f32 %v1713_v20, %v1348_v19  ;;  %v1352_v22 = vpop.f32.mrf.mxu0  ;;  %2069 = vmatmul.mubr.f32.gmra.mxu0 %v3696_v24  ;;  %v3720_v20 = vld [vmem:[#allocation3 + $0x4c0] sm:$0xff]  ;;  %v3723_v24 = vld [vmem:[#allocation3 + $0x4f8] sm:$0xff] }
 0x1cd   : > { %v1717_v23 = vpop.f32.mrf.mxu1  ;;  %2434 = vmatmul.mubr.f32.gmra.mxu1 %v3697_v25  ;;  %2074 = vmatprep.mubr.f32.mxu0 %v3698_v27 }
 0x1ce   : > { %3278 = vst [vmem:[%s4315_s19 + $0x428] sm:$0xff] %v1714_v21  ;;  %v1718_v26 = vadd.f32 %v1717_v23, %v1352_v22  ;;  %2439 = vmatprep.mubr.f32.mxu1 %v3699_v28  ;;  %v1354_v29 = vpop.f32.mrf.mxu0  ;;  %v3721_v21 = vld [vmem:[#allocation3 + $0x4d0] sm:$0xff]  ;;  %v3722_v23 = vld [vmem:[#allocation3 + $0x4e8] sm:$0xff] }
 0x1cf   : > { %v1719_v30 = vpop.f32.mrf.mxu1 }
 0x1d0   : > { %3281 = vst [vmem:[%s4315_s19 + $0x440] sm:$0xff] %v1718_v26  ;;  %v1720_v31 = vadd.f32 %v1719_v30, %v1354_v29  ;;  %v1358_v32 = vpop.f32.mrf.mxu0  ;;  %2075 = vmatmul.mubr.f32.gmra.mxu0 %v3700_v34  ;;  %v3724_v30 = vld [vmem:[#allocation3 + $0x4e0] sm:$0xff]  ;;  %v3727_v34 = vld [vmem:[#allocation3 + $0x518] sm:$0xff] }
 0x1d1   : > { %v1723_v33 = vpop.f32.mrf.mxu1  ;;  %2440 = vmatmul.mubr.f32.gmra.mxu1 %v3701_v35  ;;  %2080 = vmatprep.mubr.f32.mxu0 %v3702_v37 }
 0x1d2   : > { %3282 = vst [vmem:[%s4315_s19 + $0x448] sm:$0xff] %v1720_v31  ;;  %v1724_v36 = vadd.f32 %v1723_v33, %v1358_v32  ;;  %2445 = vmatprep.mubr.f32.mxu1 %v3703_v38  ;;  %v1360_v39 = vpop.f32.mrf.mxu0  ;;  %v3725_v31 = vld [vmem:[#allocation3 + $0x4f0] sm:$0xff]  ;;  %v3726_v33 = vld [vmem:[#allocation3 + $0x508] sm:$0xff] }
 0x1d3   : > { %v1725_v40 = vpop.f32.mrf.mxu1 }
 0x1d4   : > { %3285 = vst [vmem:[%s4315_s19 + $0x460] sm:$0xff] %v1724_v36  ;;  %v1726_v41 = vadd.f32 %v1725_v40, %v1360_v39  ;;  %v1364_v42 = vpop.f32.mrf.mxu0  ;;  %2081 = vmatmul.mubr.f32.gmra.mxu0 %v3704_v44  ;;  %v3728_v40 = vld [vmem:[#allocation3 + $0x500] sm:$0xff]  ;;  %v3731_v44 = vld [vmem:[#allocation3 + $0x538] sm:$0xff] }
 0x1d5   : > { %v1729_v43 = vpop.f32.mrf.mxu1  ;;  %2446 = vmatmul.mubr.f32.gmra.mxu1 %v3705_v45  ;;  %2086 = vmatprep.mubr.f32.mxu0 %v3706_v47 }
 0x1d6   : > { %3286 = vst [vmem:[%s4315_s19 + $0x468] sm:$0xff] %v1726_v41  ;;  %v1730_v46 = vadd.f32 %v1729_v43, %v1364_v42  ;;  %2451 = vmatprep.mubr.f32.mxu1 %v3707_v48  ;;  %v1366_v49 = vpop.f32.mrf.mxu0  ;;  %v3729_v41 = vld [vmem:[#allocation3 + $0x510] sm:$0xff]  ;;  %v3730_v43 = vld [vmem:[#allocation3 + $0x528] sm:$0xff] }
 0x1d7   : > { %v1731_v50 = vpop.f32.mrf.mxu1 }
 0x1d8   : > { %3289 = vst [vmem:[%s4315_s19 + $0x480] sm:$0xff] %v1730_v46  ;;  %v1732_v51 = vadd.f32 %v1731_v50, %v1366_v49  ;;  %v1370_v52 = vpop.f32.mrf.mxu0  ;;  %2087 = vmatmul.mubr.f32.gmra.mxu0 %v3708_v54  ;;  %v3732_v50 = vld [vmem:[#allocation3 + $0x520] sm:$0xff]  ;;  %v3735_v54 = vld [vmem:[#allocation3 + $0x558] sm:$0xff] }
 0x1d9   : > { %v1735_v53 = vpop.f32.mrf.mxu1  ;;  %2452 = vmatmul.mubr.f32.gmra.mxu1 %v3709_v55  ;;  %2092 = vmatprep.mubr.f32.mxu0 %v3710_v57 }
 0x1da   : > { %3290 = vst [vmem:[%s4315_s19 + $0x488] sm:$0xff] %v1732_v51  ;;  %v1736_v56 = vadd.f32 %v1735_v53, %v1370_v52  ;;  %2457 = vmatprep.mubr.f32.mxu1 %v3711_v58  ;;  %v1372_v59 = vpop.f32.mrf.mxu0  ;;  %v3733_v51 = vld [vmem:[#allocation3 + $0x530] sm:$0xff]  ;;  %v3734_v53 = vld [vmem:[#allocation3 + $0x548] sm:$0xff] }
 0x1db   : > { %v1737_v60 = vpop.f32.mrf.mxu1 }
 0x1dc   : > { %3293 = vst [vmem:[%s4315_s19 + $0x4a0] sm:$0xff] %v1736_v56  ;;  %v1738_v61 = vadd.f32 %v1737_v60, %v1372_v59  ;;  %v1376_v62 = vpop.f32.mrf.mxu0  ;;  %2093 = vmatmul.mubr.f32.gmra.mxu0 %v3712_v0  ;;  %v3736_v60 = vld [vmem:[#allocation3 + $0x540] sm:$0xff]  ;;  %v3739_v0 = vld [vmem:[#allocation3 + $0x578] sm:$0xff] }
 0x1dd   : > { %v1741_v63 = vpop.f32.mrf.mxu1  ;;  %2458 = vmatmul.mubr.f32.gmra.mxu1 %v3713_v1  ;;  %2098 = vmatprep.mubr.f32.mxu0 %v3714_v3 }
 0x1de   : > { %3294 = vst [vmem:[%s4315_s19 + $0x4a8] sm:$0xff] %v1738_v61  ;;  %v1742_v2 = vadd.f32 %v1741_v63, %v1376_v62  ;;  %2463 = vmatprep.mubr.f32.mxu1 %v3715_v4  ;;  %v1378_v5 = vpop.f32.mrf.mxu0  ;;  %v3737_v61 = vld [vmem:[#allocation3 + $0x550] sm:$0xff]  ;;  %v3738_v63 = vld [vmem:[#allocation3 + $0x568] sm:$0xff] }
 0x1df   : > { %v1743_v6 = vpop.f32.mrf.mxu1 }
 0x1e0   : > { %3297 = vst [vmem:[%s4315_s19 + $0x4c0] sm:$0xff] %v1742_v2  ;;  %v1744_v7 = vadd.f32 %v1743_v6, %v1378_v5  ;;  %v1382_v8 = vpop.f32.mrf.mxu0  ;;  %2099 = vmatmul.mubr.f32.gmra.mxu0 %v3716_v10  ;;  %v3740_v6 = vld [vmem:[#allocation3 + $0x560] sm:$0xff]  ;;  %v3743_v10 = vld [vmem:[#allocation3 + $0x598] sm:$0xff] }
 0x1e1   : > { %v1747_v9 = vpop.f32.mrf.mxu1  ;;  %2464 = vmatmul.mubr.f32.gmra.mxu1 %v3717_v11  ;;  %2104 = vmatprep.mubr.f32.mxu0 %v3718_v13 }
 0x1e2   : > { %3298 = vst [vmem:[%s4315_s19 + $0x4c8] sm:$0xff] %v1744_v7  ;;  %v1748_v12 = vadd.f32 %v1747_v9, %v1382_v8  ;;  %2469 = vmatprep.mubr.f32.mxu1 %v3719_v14  ;;  %v1384_v15 = vpop.f32.mrf.mxu0  ;;  %v3741_v7 = vld [vmem:[#allocation3 + $0x570] sm:$0xff]  ;;  %v3742_v9 = vld [vmem:[#allocation3 + $0x588] sm:$0xff] }
 0x1e3   : > { %v1749_v16 = vpop.f32.mrf.mxu1 }
 0x1e4   : > { %3301 = vst [vmem:[%s4315_s19 + $0x4e0] sm:$0xff] %v1748_v12  ;;  %v1750_v17 = vadd.f32 %v1749_v16, %v1384_v15  ;;  %v1388_v18 = vpop.f32.mrf.mxu0  ;;  %2105 = vmatmul.mubr.f32.gmra.mxu0 %v3720_v20  ;;  %v3744_v16 = vld [vmem:[#allocation3 + $0x580] sm:$0xff]  ;;  %v3747_v20 = vld [vmem:[#allocation3 + $0x5b8] sm:$0xff] }
 0x1e5   : > { %v1753_v19 = vpop.f32.mrf.mxu1  ;;  %2470 = vmatmul.mubr.f32.gmra.mxu1 %v3721_v21  ;;  %2110 = vmatprep.mubr.f32.mxu0 %v3722_v23 }
 0x1e6   : > { %3302 = vst [vmem:[%s4315_s19 + $0x4e8] sm:$0xff] %v1750_v17  ;;  %v1754_v22 = vadd.f32 %v1753_v19, %v1388_v18  ;;  %2475 = vmatprep.mubr.f32.mxu1 %v3723_v24  ;;  %v1390_v25 = vpop.f32.mrf.mxu0  ;;  %v3745_v17 = vld [vmem:[#allocation3 + $0x590] sm:$0xff]  ;;  %v3746_v19 = vld [vmem:[#allocation3 + $0x5a8] sm:$0xff] }
 0x1e7   : > { %v1755_v26 = vpop.f32.mrf.mxu1 }
 0x1e8   : > { %3305 = vst [vmem:[%s4315_s19 + $0x500] sm:$0xff] %v1754_v22  ;;  %v1756_v27 = vadd.f32 %v1755_v26, %v1390_v25  ;;  %v1394_v28 = vpop.f32.mrf.mxu0  ;;  %2111 = vmatmul.mubr.f32.gmra.mxu0 %v3724_v30  ;;  %v3748_v26 = vld [vmem:[#allocation3 + $0x5a0] sm:$0xff]  ;;  %v3751_v30 = vld [vmem:[#allocation3 + $0x5d8] sm:$0xff] }
 0x1e9   : > { %v1759_v29 = vpop.f32.mrf.mxu1  ;;  %2476 = vmatmul.mubr.f32.gmra.mxu1 %v3725_v31  ;;  %2116 = vmatprep.mubr.f32.mxu0 %v3726_v33 }
 0x1ea   : > { %3306 = vst [vmem:[%s4315_s19 + $0x508] sm:$0xff] %v1756_v27  ;;  %v1760_v32 = vadd.f32 %v1759_v29, %v1394_v28  ;;  %2481 = vmatprep.mubr.f32.mxu1 %v3727_v34  ;;  %v1396_v35 = vpop.f32.mrf.mxu0  ;;  %v3749_v27 = vld [vmem:[#allocation3 + $0x5b0] sm:$0xff]  ;;  %v3750_v29 = vld [vmem:[#allocation3 + $0x5c8] sm:$0xff] }
 0x1eb   : > { %v1761_v36 = vpop.f32.mrf.mxu1 }
 0x1ec   : > { %3309 = vst [vmem:[%s4315_s19 + $0x520] sm:$0xff] %v1760_v32  ;;  %v1762_v37 = vadd.f32 %v1761_v36, %v1396_v35  ;;  %v1400_v38 = vpop.f32.mrf.mxu0  ;;  %2117 = vmatmul.mubr.f32.gmra.mxu0 %v3728_v40  ;;  %v3752_v36 = vld [vmem:[#allocation3 + $0x5c0] sm:$0xff]  ;;  %v3755_v40 = vld [vmem:[#allocation3 + $0x5f8] sm:$0xff] }
 0x1ed   : > { %v1765_v39 = vpop.f32.mrf.mxu1  ;;  %2482 = vmatmul.mubr.f32.gmra.mxu1 %v3729_v41  ;;  %2122 = vmatprep.mubr.f32.mxu0 %v3730_v43 }
 0x1ee   : > { %3310 = vst [vmem:[%s4315_s19 + $0x528] sm:$0xff] %v1762_v37  ;;  %v1766_v42 = vadd.f32 %v1765_v39, %v1400_v38  ;;  %2487 = vmatprep.mubr.f32.mxu1 %v3731_v44  ;;  %v1402_v45 = vpop.f32.mrf.mxu0  ;;  %v3753_v37 = vld [vmem:[#allocation3 + $0x5d0] sm:$0xff]  ;;  %v3754_v39 = vld [vmem:[#allocation3 + $0x5e8] sm:$0xff] }
 0x1ef   : > { %v1767_v46 = vpop.f32.mrf.mxu1 }
 0x1f0   : > { %3313 = vst [vmem:[%s4315_s19 + $0x540] sm:$0xff] %v1766_v42  ;;  %v1768_v47 = vadd.f32 %v1767_v46, %v1402_v45  ;;  %v1406_v48 = vpop.f32.mrf.mxu0  ;;  %2123 = vmatmul.mubr.f32.gmra.mxu0 %v3732_v50  ;;  %v3756_v46 = vld [vmem:[#allocation3 + $0x5e0] sm:$0xff]  ;;  %v3759_v50 = vld [vmem:[#allocation3 + $0x618] sm:$0xff] }
 0x1f1   : > { %v1771_v49 = vpop.f32.mrf.mxu1  ;;  %2488 = vmatmul.mubr.f32.gmra.mxu1 %v3733_v51  ;;  %2128 = vmatprep.mubr.f32.mxu0 %v3734_v53 }
 0x1f2   : > { %3314 = vst [vmem:[%s4315_s19 + $0x548] sm:$0xff] %v1768_v47  ;;  %v1772_v52 = vadd.f32 %v1771_v49, %v1406_v48  ;;  %2493 = vmatprep.mubr.f32.mxu1 %v3735_v54  ;;  %v1408_v55 = vpop.f32.mrf.mxu0  ;;  %v3757_v47 = vld [vmem:[#allocation3 + $0x5f0] sm:$0xff]  ;;  %v3758_v49 = vld [vmem:[#allocation3 + $0x608] sm:$0xff] }
 0x1f3   : > { %v1773_v56 = vpop.f32.mrf.mxu1 }
 0x1f4   : > { %3317 = vst [vmem:[%s4315_s19 + $0x560] sm:$0xff] %v1772_v52  ;;  %v1774_v57 = vadd.f32 %v1773_v56, %v1408_v55  ;;  %v1412_v58 = vpop.f32.mrf.mxu0  ;;  %2129 = vmatmul.mubr.f32.gmra.mxu0 %v3736_v60  ;;  %v3760_v55 = vld [vmem:[#allocation3 + $0x600] sm:$0xff]  ;;  %v3763_v60 = vld [vmem:[#allocation3 + $0x638] sm:$0xff] }
 0x1f5   : > { %v1777_v59 = vpop.f32.mrf.mxu1  ;;  %2494 = vmatmul.mubr.f32.gmra.mxu1 %v3737_v61  ;;  %2134 = vmatprep.mubr.f32.mxu0 %v3738_v63 }
 0x1f6   : > { %3318 = vst [vmem:[%s4315_s19 + $0x568] sm:$0xff] %v1774_v57  ;;  %v1778_v62 = vadd.f32 %v1777_v59, %v1412_v58  ;;  %2499 = vmatprep.mubr.f32.mxu1 %v3739_v0  ;;  %v1414_v1 = vpop.f32.mrf.mxu0  ;;  %v3761_v57 = vld [vmem:[#allocation3 + $0x610] sm:$0xff]  ;;  %v3762_v59 = vld [vmem:[#allocation3 + $0x628] sm:$0xff] }
 0x1f7   : > { %v1779_v2 = vpop.f32.mrf.mxu1 }
 0x1f8   : > { %3321 = vst [vmem:[%s4315_s19 + $0x580] sm:$0xff] %v1778_v62  ;;  %v1780_v3 = vadd.f32 %v1779_v2, %v1414_v1  ;;  %v1418_v4 = vpop.f32.mrf.mxu0  ;;  %2135 = vmatmul.mubr.f32.gmra.mxu0 %v3740_v6  ;;  %v3764_v1 = vld [vmem:[#allocation3 + $0x620] sm:$0xff] }
 0x1f9   : > { %v1783_v5 = vpop.f32.mrf.mxu1  ;;  %2500 = vmatmul.mubr.f32.gmra.mxu1 %v3741_v7  ;;  %2140 = vmatprep.mubr.f32.mxu0 %v3742_v9 }
 0x1fa   : > { %3322 = vst [vmem:[%s4315_s19 + $0x588] sm:$0xff] %v1780_v3  ;;  %v1784_v8 = vadd.f32 %v1783_v5, %v1418_v4  ;;  %2505 = vmatprep.mubr.f32.mxu1 %v3743_v10  ;;  %v1420_v11 = vpop.f32.mrf.mxu0  ;;  %v3765_v3 = vld [vmem:[#allocation3 + $0x630] sm:$0xff] }
 0x1fb   : > { %v1785_v12 = vpop.f32.mrf.mxu1 }
 0x1fc   : > { %3325 = vst [vmem:[%s4315_s19 + $0x5a0] sm:$0xff] %v1784_v8  ;;  %v1786_v13 = vadd.f32 %v1785_v12, %v1420_v11  ;;  %v1424_v14 = vpop.f32.mrf.mxu0  ;;  %2141 = vmatmul.mubr.f32.gmra.mxu0 %v3744_v16 }
 0x1fd   : > { %v1789_v15 = vpop.f32.mrf.mxu1  ;;  %2506 = vmatmul.mubr.f32.gmra.mxu1 %v3745_v17  ;;  %2146 = vmatprep.mubr.f32.mxu0 %v3746_v19 }
 0x1fe   : > { %3326 = vst [vmem:[%s4315_s19 + $0x5a8] sm:$0xff] %v1786_v13  ;;  %v1790_v18 = vadd.f32 %v1789_v15, %v1424_v14  ;;  %2511 = vmatprep.mubr.f32.mxu1 %v3747_v20  ;;  %v1426_v21 = vpop.f32.mrf.mxu0 }
 0x1ff   : > { %v1791_v22 = vpop.f32.mrf.mxu1 }
 0x200   : > { %3329 = vst [vmem:[%s4315_s19 + $0x5c0] sm:$0xff] %v1790_v18  ;;  %v1792_v23 = vadd.f32 %v1791_v22, %v1426_v21  ;;  %v1430_v24 = vpop.f32.mrf.mxu0  ;;  %2147 = vmatmul.mubr.f32.gmra.mxu0 %v3748_v26 }
 0x201   : > { %v1795_v25 = vpop.f32.mrf.mxu1  ;;  %2512 = vmatmul.mubr.f32.gmra.mxu1 %v3749_v27  ;;  %2152 = vmatprep.mubr.f32.mxu0 %v3750_v29 }
 0x202   : > { %3330 = vst [vmem:[%s4315_s19 + $0x5c8] sm:$0xff] %v1792_v23  ;;  %v1796_v28 = vadd.f32 %v1795_v25, %v1430_v24  ;;  %2517 = vmatprep.mubr.f32.mxu1 %v3751_v30  ;;  %v1432_v31 = vpop.f32.mrf.mxu0 }
 0x203   : > { %v1797_v32 = vpop.f32.mrf.mxu1 }
 0x204   : > { %3333 = vst [vmem:[%s4315_s19 + $0x5e0] sm:$0xff] %v1796_v28  ;;  %v1798_v33 = vadd.f32 %v1797_v32, %v1432_v31  ;;  %v1436_v34 = vpop.f32.mrf.mxu0  ;;  %2153 = vmatmul.mubr.f32.gmra.mxu0 %v3752_v36 }
 0x205   : > { %v1801_v35 = vpop.f32.mrf.mxu1  ;;  %2518 = vmatmul.mubr.f32.gmra.mxu1 %v3753_v37  ;;  %2158 = vmatprep.mubr.f32.mxu0 %v3754_v39 }
 0x206   : > { %3334 = vst [vmem:[%s4315_s19 + $0x5e8] sm:$0xff] %v1798_v33  ;;  %v1802_v38 = vadd.f32 %v1801_v35, %v1436_v34  ;;  %2523 = vmatprep.mubr.f32.mxu1 %v3755_v40  ;;  %v1438_v41 = vpop.f32.mrf.mxu0 }
 0x207   : > { %v1803_v42 = vpop.f32.mrf.mxu1 }
 0x208   : > { %3337 = vst [vmem:[%s4315_s19 + $0x600] sm:$0xff] %v1802_v38  ;;  %v1804_v43 = vadd.f32 %v1803_v42, %v1438_v41  ;;  %v1442_v44 = vpop.f32.mrf.mxu0  ;;  %2159 = vmatmul.mubr.f32.gmra.mxu0 %v3756_v46 }
 0x209   : > { %v1807_v45 = vpop.f32.mrf.mxu1  ;;  %2524 = vmatmul.mubr.f32.gmra.mxu1 %v3757_v47  ;;  %2164 = vmatprep.mubr.f32.mxu0 %v3758_v49 }
 0x20a   : > { %3338 = vst [vmem:[%s4315_s19 + $0x608] sm:$0xff] %v1804_v43  ;;  %v1808_v48 = vadd.f32 %v1807_v45, %v1442_v44  ;;  %2529 = vmatprep.mubr.f32.mxu1 %v3759_v50  ;;  %v1444_v51 = vpop.f32.mrf.mxu0 }
 0x20b   : > { %v1809_v52 = vpop.f32.mrf.mxu1 }
 0x20c   : > { %3341 = vst [vmem:[%s4315_s19 + $0x620] sm:$0xff] %v1808_v48  ;;  %v1810_v53 = vadd.f32 %v1809_v52, %v1444_v51  ;;  %v1878_v54 = vpop.f32.mrf.mxu0  ;;  %2165 = vmatmul.mubr.f32.gmra.mxu0 %v3760_v55 }
 0x20d   : > { %v2243_v56 = vpop.f32.mrf.mxu1  ;;  %2530 = vmatmul.mubr.f32.gmra.mxu1 %v3761_v57  ;;  %2170 = vmatprep.mubr.f32.mxu0 %v3762_v59 }
 0x20e   : > { %3342 = vst [vmem:[%s4315_s19 + $0x628] sm:$0xff] %v1810_v53  ;;  %v2244_v58 = vadd.f32 %v2243_v56, %v1878_v54  ;;  %2535 = vmatprep.mubr.f32.mxu1 %v3763_v60  ;;  %v1880_v61 = vpop.f32.mrf.mxu0 }
 0x20f   : > { %v2245_v62 = vpop.f32.mrf.mxu1 }
 0x210   : > { %3147 = vst [vmem:[%s4315_s19 + $0x10] sm:$0xff] %v2244_v58  ;;  %v2246_v63 = vadd.f32 %v2245_v62, %v1880_v61  ;;  %v1884_v0 = vpop.f32.mrf.mxu0  ;;  %2171 = vmatmul.mubr.f32.gmra.mxu0 %v3764_v1 }
 0x211   : > { %v2249_v2 = vpop.f32.mrf.mxu1  ;;  %2536 = vmatmul.mubr.f32.gmra.mxu1 %v3765_v3 }
 0x212   : > { %3148 = vst [vmem:[%s4315_s19 + $0x18] sm:$0xff] %v2246_v63  ;;  %v2250_v4 = vadd.f32 %v2249_v2, %v1884_v0  ;;  %v1886_v5 = vpop.f32.mrf.mxu0 }
 0x213   : > { %v2251_v6 = vpop.f32.mrf.mxu1 }
 0x214   : > { %3151 = vst [vmem:[%s4315_s19 + $0x30] sm:$0xff] %v2250_v4  ;;  %v2252_v7 = vadd.f32 %v2251_v6, %v1886_v5  ;;  %v1890_v8 = vpop.f32.mrf.mxu0 }
 0x215   : > { %v2255_v9 = vpop.f32.mrf.mxu1 }
 0x216   : > { %3152 = vst [vmem:[%s4315_s19 + $0x38] sm:$0xff] %v2252_v7  ;;  %v2256_v10 = vadd.f32 %v2255_v9, %v1890_v8  ;;  %v1892_v11 = vpop.f32.mrf.mxu0 }
 0x217   : > { %v2257_v12 = vpop.f32.mrf.mxu1 }
 0x218   : > { %3155 = vst [vmem:[%s4315_s19 + $0x50] sm:$0xff] %v2256_v10  ;;  %v2258_v13 = vadd.f32 %v2257_v12, %v1892_v11  ;;  %v1896_v14 = vpop.f32.mrf.mxu0 }
 0x219   : > { %v2261_v15 = vpop.f32.mrf.mxu1 }
 0x21a   : > { %3156 = vst [vmem:[%s4315_s19 + $0x58] sm:$0xff] %v2258_v13  ;;  %v2262_v16 = vadd.f32 %v2261_v15, %v1896_v14  ;;  %v1898_v17 = vpop.f32.mrf.mxu0 }
 0x21b   : > { %v2263_v18 = vpop.f32.mrf.mxu1 }
 0x21c   : > { %3159 = vst [vmem:[%s4315_s19 + $0x70] sm:$0xff] %v2262_v16  ;;  %v2264_v19 = vadd.f32 %v2263_v18, %v1898_v17  ;;  %v1902_v20 = vpop.f32.mrf.mxu0 }
 0x21d   : > { %v2267_v21 = vpop.f32.mrf.mxu1 }
 0x21e   : > { %3160 = vst [vmem:[%s4315_s19 + $0x78] sm:$0xff] %v2264_v19  ;;  %v2268_v22 = vadd.f32 %v2267_v21, %v1902_v20  ;;  %v1904_v23 = vpop.f32.mrf.mxu0 }
 0x21f   : > { %v2269_v24 = vpop.f32.mrf.mxu1 }
 0x220   : > { %3163 = vst [vmem:[%s4315_s19 + $0x90] sm:$0xff] %v2268_v22  ;;  %v2270_v25 = vadd.f32 %v2269_v24, %v1904_v23  ;;  %v1908_v26 = vpop.f32.mrf.mxu0 }
 0x221   : > { %v2273_v27 = vpop.f32.mrf.mxu1 }
 0x222   : > { %3164 = vst [vmem:[%s4315_s19 + $0x98] sm:$0xff] %v2270_v25  ;;  %v2274_v28 = vadd.f32 %v2273_v27, %v1908_v26  ;;  %v1910_v29 = vpop.f32.mrf.mxu0 }
 0x223   : > { %v2275_v30 = vpop.f32.mrf.mxu1 }
 0x224   : > { %3167 = vst [vmem:[%s4315_s19 + $0xb0] sm:$0xff] %v2274_v28  ;;  %v2276_v31 = vadd.f32 %v2275_v30, %v1910_v29  ;;  %v1914_v32 = vpop.f32.mrf.mxu0 }
 0x225   : > { %v2279_v33 = vpop.f32.mrf.mxu1 }
 0x226   : > { %3168 = vst [vmem:[%s4315_s19 + $0xb8] sm:$0xff] %v2276_v31  ;;  %v2280_v34 = vadd.f32 %v2279_v33, %v1914_v32  ;;  %v1916_v35 = vpop.f32.mrf.mxu0 }
 0x227   : > { %v2281_v36 = vpop.f32.mrf.mxu1 }
 0x228   : > { %3171 = vst [vmem:[%s4315_s19 + $0xd0] sm:$0xff] %v2280_v34  ;;  %v2282_v37 = vadd.f32 %v2281_v36, %v1916_v35  ;;  %v1920_v38 = vpop.f32.mrf.mxu0 }
 0x229   : > { %v2285_v39 = vpop.f32.mrf.mxu1 }
 0x22a   : > { %3172 = vst [vmem:[%s4315_s19 + $0xd8] sm:$0xff] %v2282_v37  ;;  %v2286_v40 = vadd.f32 %v2285_v39, %v1920_v38  ;;  %v1922_v41 = vpop.f32.mrf.mxu0 }
 0x22b   : > { %v2287_v42 = vpop.f32.mrf.mxu1 }
 0x22c   : > { %3175 = vst [vmem:[%s4315_s19 + $0xf0] sm:$0xff] %v2286_v40  ;;  %v2288_v43 = vadd.f32 %v2287_v42, %v1922_v41  ;;  %v1926_v44 = vpop.f32.mrf.mxu0 }
 0x22d   : > { %v2291_v45 = vpop.f32.mrf.mxu1 }
 0x22e   : > { %3176 = vst [vmem:[%s4315_s19 + $0xf8] sm:$0xff] %v2288_v43  ;;  %v2292_v46 = vadd.f32 %v2291_v45, %v1926_v44  ;;  %v1928_v47 = vpop.f32.mrf.mxu0 }
 0x22f   : > { %v2293_v48 = vpop.f32.mrf.mxu1 }
 0x230   : > { %3179 = vst [vmem:[%s4315_s19 + $0x110] sm:$0xff] %v2292_v46  ;;  %v2294_v49 = vadd.f32 %v2293_v48, %v1928_v47  ;;  %v1932_v50 = vpop.f32.mrf.mxu0 }
 0x231   : > { %v2297_v51 = vpop.f32.mrf.mxu1 }
 0x232   : > { %3180 = vst [vmem:[%s4315_s19 + $0x118] sm:$0xff] %v2294_v49  ;;  %v2298_v52 = vadd.f32 %v2297_v51, %v1932_v50  ;;  %v1934_v53 = vpop.f32.mrf.mxu0 }
 0x233   : > { %v2299_v54 = vpop.f32.mrf.mxu1 }
 0x234   : > { %3183 = vst [vmem:[%s4315_s19 + $0x130] sm:$0xff] %v2298_v52  ;;  %v2300_v55 = vadd.f32 %v2299_v54, %v1934_v53  ;;  %v1938_v56 = vpop.f32.mrf.mxu0 }
 0x235   : > { %v2303_v57 = vpop.f32.mrf.mxu1 }
 0x236   : > { %3184 = vst [vmem:[%s4315_s19 + $0x138] sm:$0xff] %v2300_v55  ;;  %v2304_v58 = vadd.f32 %v2303_v57, %v1938_v56  ;;  %v1940_v59 = vpop.f32.mrf.mxu0 }
 0x237   : > { %v2305_v60 = vpop.f32.mrf.mxu1 }
 0x238   : > { %3187 = vst [vmem:[%s4315_s19 + $0x150] sm:$0xff] %v2304_v58  ;;  %v2306_v61 = vadd.f32 %v2305_v60, %v1940_v59  ;;  %v1944_v62 = vpop.f32.mrf.mxu0 }
 0x239   : > { %v2309_v63 = vpop.f32.mrf.mxu1 }
 0x23a   : > { %3188 = vst [vmem:[%s4315_s19 + $0x158] sm:$0xff] %v2306_v61  ;;  %v2310_v0 = vadd.f32 %v2309_v63, %v1944_v62  ;;  %v1946_v1 = vpop.f32.mrf.mxu0 }
 0x23b   : > { %v2311_v2 = vpop.f32.mrf.mxu1 }
 0x23c   : > { %3191 = vst [vmem:[%s4315_s19 + $0x170] sm:$0xff] %v2310_v0  ;;  %v2312_v3 = vadd.f32 %v2311_v2, %v1946_v1  ;;  %v1950_v4 = vpop.f32.mrf.mxu0 }
 0x23d   : > { %v2315_v5 = vpop.f32.mrf.mxu1 }
 0x23e   : > { %3192 = vst [vmem:[%s4315_s19 + $0x178] sm:$0xff] %v2312_v3  ;;  %v2316_v6 = vadd.f32 %v2315_v5, %v1950_v4  ;;  %v1952_v7 = vpop.f32.mrf.mxu0 }
 0x23f   : > { %v2317_v8 = vpop.f32.mrf.mxu1 }
 0x240   : > { %3195 = vst [vmem:[%s4315_s19 + $0x190] sm:$0xff] %v2316_v6  ;;  %v2318_v9 = vadd.f32 %v2317_v8, %v1952_v7  ;;  %v1956_v10 = vpop.f32.mrf.mxu0 }
 0x241   : > { %v2321_v11 = vpop.f32.mrf.mxu1 }
 0x242   : > { %3196 = vst [vmem:[%s4315_s19 + $0x198] sm:$0xff] %v2318_v9  ;;  %v2322_v12 = vadd.f32 %v2321_v11, %v1956_v10  ;;  %v1958_v13 = vpop.f32.mrf.mxu0 }
 0x243   : > { %v2323_v14 = vpop.f32.mrf.mxu1 }
 0x244   : > { %3199 = vst [vmem:[%s4315_s19 + $0x1b0] sm:$0xff] %v2322_v12  ;;  %v2324_v15 = vadd.f32 %v2323_v14, %v1958_v13  ;;  %v1962_v16 = vpop.f32.mrf.mxu0 }
 0x245   : > { %v2327_v17 = vpop.f32.mrf.mxu1 }
 0x246   : > { %3200 = vst [vmem:[%s4315_s19 + $0x1b8] sm:$0xff] %v2324_v15  ;;  %v2328_v18 = vadd.f32 %v2327_v17, %v1962_v16  ;;  %v1964_v19 = vpop.f32.mrf.mxu0 }
 0x247   : > { %v2329_v20 = vpop.f32.mrf.mxu1 }
 0x248   : > { %3203 = vst [vmem:[%s4315_s19 + $0x1d0] sm:$0xff] %v2328_v18  ;;  %v2330_v21 = vadd.f32 %v2329_v20, %v1964_v19  ;;  %v1968_v22 = vpop.f32.mrf.mxu0 }
 0x249   : > { %v2333_v23 = vpop.f32.mrf.mxu1 }
 0x24a   : > { %3204 = vst [vmem:[%s4315_s19 + $0x1d8] sm:$0xff] %v2330_v21  ;;  %v2334_v24 = vadd.f32 %v2333_v23, %v1968_v22  ;;  %v1970_v25 = vpop.f32.mrf.mxu0 }
 0x24b   : > { %v2335_v26 = vpop.f32.mrf.mxu1 }
 0x24c   : > { %3207 = vst [vmem:[%s4315_s19 + $0x1f0] sm:$0xff] %v2334_v24  ;;  %v2336_v27 = vadd.f32 %v2335_v26, %v1970_v25  ;;  %v1974_v28 = vpop.f32.mrf.mxu0 }
 0x24d   : > { %v2339_v29 = vpop.f32.mrf.mxu1 }
 0x24e   : > { %3208 = vst [vmem:[%s4315_s19 + $0x1f8] sm:$0xff] %v2336_v27  ;;  %v2340_v30 = vadd.f32 %v2339_v29, %v1974_v28  ;;  %v1976_v31 = vpop.f32.mrf.mxu0 }
 0x24f   : > { %v2341_v32 = vpop.f32.mrf.mxu1 }
 0x250   : > { %3211 = vst [vmem:[%s4315_s19 + $0x210] sm:$0xff] %v2340_v30  ;;  %v2342_v33 = vadd.f32 %v2341_v32, %v1976_v31  ;;  %v1980_v34 = vpop.f32.mrf.mxu0 }
 0x251   : > { %v2345_v35 = vpop.f32.mrf.mxu1 }
 0x252   : > { %3212 = vst [vmem:[%s4315_s19 + $0x218] sm:$0xff] %v2342_v33  ;;  %v2346_v36 = vadd.f32 %v2345_v35, %v1980_v34  ;;  %v1982_v37 = vpop.f32.mrf.mxu0 }
 0x253   : > { %v2347_v38 = vpop.f32.mrf.mxu1 }
 0x254   : > { %3215 = vst [vmem:[%s4315_s19 + $0x230] sm:$0xff] %v2346_v36  ;;  %v2348_v39 = vadd.f32 %v2347_v38, %v1982_v37  ;;  %v1986_v40 = vpop.f32.mrf.mxu0 }
 0x255   : > { %v2351_v41 = vpop.f32.mrf.mxu1 }
 0x256   : > { %3216 = vst [vmem:[%s4315_s19 + $0x238] sm:$0xff] %v2348_v39  ;;  %v2352_v42 = vadd.f32 %v2351_v41, %v1986_v40  ;;  %v1988_v43 = vpop.f32.mrf.mxu0 }
 0x257   : > { %v2353_v44 = vpop.f32.mrf.mxu1 }
 0x258   : > { %3219 = vst [vmem:[%s4315_s19 + $0x250] sm:$0xff] %v2352_v42  ;;  %v2354_v45 = vadd.f32 %v2353_v44, %v1988_v43  ;;  %v1992_v46 = vpop.f32.mrf.mxu0 }
 0x259   : > { %v2357_v47 = vpop.f32.mrf.mxu1 }
 0x25a   : > { %3220 = vst [vmem:[%s4315_s19 + $0x258] sm:$0xff] %v2354_v45  ;;  %v2358_v48 = vadd.f32 %v2357_v47, %v1992_v46  ;;  %v1994_v49 = vpop.f32.mrf.mxu0 }
 0x25b   : > { %v2359_v50 = vpop.f32.mrf.mxu1 }
 0x25c   : > { %3223 = vst [vmem:[%s4315_s19 + $0x270] sm:$0xff] %v2358_v48  ;;  %v2360_v51 = vadd.f32 %v2359_v50, %v1994_v49  ;;  %v1998_v52 = vpop.f32.mrf.mxu0 }
 0x25d   : > { %v2363_v53 = vpop.f32.mrf.mxu1 }
 0x25e   : > { %3224 = vst [vmem:[%s4315_s19 + $0x278] sm:$0xff] %v2360_v51  ;;  %v2364_v54 = vadd.f32 %v2363_v53, %v1998_v52  ;;  %v2000_v55 = vpop.f32.mrf.mxu0 }
 0x25f   : > { %v2365_v56 = vpop.f32.mrf.mxu1 }
 0x260   : > { %3227 = vst [vmem:[%s4315_s19 + $0x290] sm:$0xff] %v2364_v54  ;;  %v2366_v57 = vadd.f32 %v2365_v56, %v2000_v55  ;;  %v2004_v58 = vpop.f32.mrf.mxu0 }
 0x261   : > { %v2369_v59 = vpop.f32.mrf.mxu1 }
 0x262   : > { %3228 = vst [vmem:[%s4315_s19 + $0x298] sm:$0xff] %v2366_v57  ;;  %v2370_v60 = vadd.f32 %v2369_v59, %v2004_v58  ;;  %v2006_v61 = vpop.f32.mrf.mxu0 }
 0x263   : > { %v2371_v62 = vpop.f32.mrf.mxu1 }
 0x264   : > { %3231 = vst [vmem:[%s4315_s19 + $0x2b0] sm:$0xff] %v2370_v60  ;;  %v2372_v63 = vadd.f32 %v2371_v62, %v2006_v61  ;;  %v2010_v0 = vpop.f32.mrf.mxu0 }
 0x265   : > { %v2375_v1 = vpop.f32.mrf.mxu1 }
 0x266   : > { %3232 = vst [vmem:[%s4315_s19 + $0x2b8] sm:$0xff] %v2372_v63  ;;  %v2376_v2 = vadd.f32 %v2375_v1, %v2010_v0  ;;  %v2012_v3 = vpop.f32.mrf.mxu0 }
 0x267   : > { %v2377_v4 = vpop.f32.mrf.mxu1 }
 0x268   : > { %3235 = vst [vmem:[%s4315_s19 + $0x2d0] sm:$0xff] %v2376_v2  ;;  %v2378_v5 = vadd.f32 %v2377_v4, %v2012_v3  ;;  %v2016_v6 = vpop.f32.mrf.mxu0 }
 0x269   : > { %v2381_v7 = vpop.f32.mrf.mxu1 }
 0x26a   : > { %3236 = vst [vmem:[%s4315_s19 + $0x2d8] sm:$0xff] %v2378_v5  ;;  %v2382_v8 = vadd.f32 %v2381_v7, %v2016_v6  ;;  %v2018_v9 = vpop.f32.mrf.mxu0 }
 0x26b   : > { %v2383_v10 = vpop.f32.mrf.mxu1 }
 0x26c   : > { %3239 = vst [vmem:[%s4315_s19 + $0x2f0] sm:$0xff] %v2382_v8  ;;  %v2384_v11 = vadd.f32 %v2383_v10, %v2018_v9  ;;  %v2022_v12 = vpop.f32.mrf.mxu0 }
 0x26d   : > { %v2387_v13 = vpop.f32.mrf.mxu1 }
 0x26e   : > { %3240 = vst [vmem:[%s4315_s19 + $0x2f8] sm:$0xff] %v2384_v11  ;;  %v2388_v14 = vadd.f32 %v2387_v13, %v2022_v12  ;;  %v2024_v15 = vpop.f32.mrf.mxu0 }
 0x26f   : > { %v2389_v16 = vpop.f32.mrf.mxu1 }
 0x270   : > { %3243 = vst [vmem:[%s4315_s19 + $0x310] sm:$0xff] %v2388_v14  ;;  %v2390_v17 = vadd.f32 %v2389_v16, %v2024_v15  ;;  %v2028_v18 = vpop.f32.mrf.mxu0 }
 0x271   : > { %v2393_v19 = vpop.f32.mrf.mxu1 }
 0x272   : > { %3244 = vst [vmem:[%s4315_s19 + $0x318] sm:$0xff] %v2390_v17  ;;  %v2394_v20 = vadd.f32 %v2393_v19, %v2028_v18  ;;  %v2030_v21 = vpop.f32.mrf.mxu0 }
 0x273   : > { %v2395_v22 = vpop.f32.mrf.mxu1 }
 0x274   : > { %3247 = vst [vmem:[%s4315_s19 + $0x330] sm:$0xff] %v2394_v20  ;;  %v2396_v23 = vadd.f32 %v2395_v22, %v2030_v21  ;;  %v2034_v24 = vpop.f32.mrf.mxu0 }
 0x275   : > { %v2399_v25 = vpop.f32.mrf.mxu1 }
 0x276   : > { %3248 = vst [vmem:[%s4315_s19 + $0x338] sm:$0xff] %v2396_v23  ;;  %v2400_v26 = vadd.f32 %v2399_v25, %v2034_v24  ;;  %v2036_v27 = vpop.f32.mrf.mxu0 }
 0x277   : > { %v2401_v28 = vpop.f32.mrf.mxu1 }
 0x278   : > { %3251 = vst [vmem:[%s4315_s19 + $0x350] sm:$0xff] %v2400_v26  ;;  %v2402_v29 = vadd.f32 %v2401_v28, %v2036_v27  ;;  %v2040_v30 = vpop.f32.mrf.mxu0 }
 0x279   : > { %v2405_v31 = vpop.f32.mrf.mxu1 }
 0x27a   : > { %3252 = vst [vmem:[%s4315_s19 + $0x358] sm:$0xff] %v2402_v29  ;;  %v2406_v32 = vadd.f32 %v2405_v31, %v2040_v30  ;;  %v2042_v33 = vpop.f32.mrf.mxu0 }
 0x27b   : > { %v2407_v34 = vpop.f32.mrf.mxu1 }
 0x27c   : > { %3255 = vst [vmem:[%s4315_s19 + $0x370] sm:$0xff] %v2406_v32  ;;  %v2408_v35 = vadd.f32 %v2407_v34, %v2042_v33  ;;  %v2046_v36 = vpop.f32.mrf.mxu0 }
 0x27d   : > { %v2411_v37 = vpop.f32.mrf.mxu1 }
 0x27e   : > { %3256 = vst [vmem:[%s4315_s19 + $0x378] sm:$0xff] %v2408_v35  ;;  %v2412_v38 = vadd.f32 %v2411_v37, %v2046_v36  ;;  %v2048_v39 = vpop.f32.mrf.mxu0 }
 0x27f   : > { %v2413_v40 = vpop.f32.mrf.mxu1 }
 0x280   : > { %3259 = vst [vmem:[%s4315_s19 + $0x390] sm:$0xff] %v2412_v38  ;;  %v2414_v41 = vadd.f32 %v2413_v40, %v2048_v39  ;;  %v2052_v42 = vpop.f32.mrf.mxu0 }
 0x281   : > { %v2417_v43 = vpop.f32.mrf.mxu1 }
 0x282   : > { %3260 = vst [vmem:[%s4315_s19 + $0x398] sm:$0xff] %v2414_v41  ;;  %v2418_v44 = vadd.f32 %v2417_v43, %v2052_v42  ;;  %v2054_v45 = vpop.f32.mrf.mxu0 }
 0x283   : > { %v2419_v46 = vpop.f32.mrf.mxu1 }
 0x284   : > { %3263 = vst [vmem:[%s4315_s19 + $0x3b0] sm:$0xff] %v2418_v44  ;;  %v2420_v47 = vadd.f32 %v2419_v46, %v2054_v45  ;;  %v2058_v48 = vpop.f32.mrf.mxu0 }
 0x285   : > { %v2423_v49 = vpop.f32.mrf.mxu1 }
 0x286   : > { %3264 = vst [vmem:[%s4315_s19 + $0x3b8] sm:$0xff] %v2420_v47  ;;  %v2424_v50 = vadd.f32 %v2423_v49, %v2058_v48  ;;  %v2060_v51 = vpop.f32.mrf.mxu0 }
 0x287   : > { %v2425_v52 = vpop.f32.mrf.mxu1 }
 0x288   : > { %3267 = vst [vmem:[%s4315_s19 + $0x3d0] sm:$0xff] %v2424_v50  ;;  %v2426_v53 = vadd.f32 %v2425_v52, %v2060_v51  ;;  %v2064_v54 = vpop.f32.mrf.mxu0 }
 0x289   : > { %v2429_v55 = vpop.f32.mrf.mxu1 }
 0x28a   : > { %3268 = vst [vmem:[%s4315_s19 + $0x3d8] sm:$0xff] %v2426_v53  ;;  %v2430_v56 = vadd.f32 %v2429_v55, %v2064_v54  ;;  %v2066_v57 = vpop.f32.mrf.mxu0 }
 0x28b   : > { %v2431_v58 = vpop.f32.mrf.mxu1 }
 0x28c   : > { %3271 = vst [vmem:[%s4315_s19 + $0x3f0] sm:$0xff] %v2430_v56  ;;  %v2432_v59 = vadd.f32 %v2431_v58, %v2066_v57  ;;  %v2070_v60 = vpop.f32.mrf.mxu0 }
 0x28d   : > { %v2435_v61 = vpop.f32.mrf.mxu1 }
 0x28e   : > { %3272 = vst [vmem:[%s4315_s19 + $0x3f8] sm:$0xff] %v2432_v59  ;;  %v2436_v62 = vadd.f32 %v2435_v61, %v2070_v60  ;;  %v2072_v63 = vpop.f32.mrf.mxu0 }
 0x28f   : > { %v2437_v0 = vpop.f32.mrf.mxu1 }
 0x290   : > { %3275 = vst [vmem:[%s4315_s19 + $0x410] sm:$0xff] %v2436_v62  ;;  %v2438_v1 = vadd.f32 %v2437_v0, %v2072_v63  ;;  %v2076_v2 = vpop.f32.mrf.mxu0 }
 0x291   : > { %v2441_v3 = vpop.f32.mrf.mxu1 }
 0x292   : > { %3276 = vst [vmem:[%s4315_s19 + $0x418] sm:$0xff] %v2438_v1  ;;  %v2442_v4 = vadd.f32 %v2441_v3, %v2076_v2  ;;  %v2078_v5 = vpop.f32.mrf.mxu0 }
 0x293   : > { %v2443_v6 = vpop.f32.mrf.mxu1 }
 0x294   : > { %3279 = vst [vmem:[%s4315_s19 + $0x430] sm:$0xff] %v2442_v4  ;;  %v2444_v7 = vadd.f32 %v2443_v6, %v2078_v5  ;;  %v2082_v8 = vpop.f32.mrf.mxu0 }
 0x295   : > { %v2447_v9 = vpop.f32.mrf.mxu1 }
 0x296   : > { %3280 = vst [vmem:[%s4315_s19 + $0x438] sm:$0xff] %v2444_v7  ;;  %v2448_v10 = vadd.f32 %v2447_v9, %v2082_v8  ;;  %v2084_v11 = vpop.f32.mrf.mxu0 }
 0x297   : > { %v2449_v12 = vpop.f32.mrf.mxu1 }
 0x298   : > { %3283 = vst [vmem:[%s4315_s19 + $0x450] sm:$0xff] %v2448_v10  ;;  %v2450_v13 = vadd.f32 %v2449_v12, %v2084_v11  ;;  %v2088_v14 = vpop.f32.mrf.mxu0 }
 0x299   : > { %v2453_v15 = vpop.f32.mrf.mxu1 }
 0x29a   : > { %3284 = vst [vmem:[%s4315_s19 + $0x458] sm:$0xff] %v2450_v13  ;;  %v2454_v16 = vadd.f32 %v2453_v15, %v2088_v14  ;;  %v2090_v17 = vpop.f32.mrf.mxu0 }
 0x29b   : > { %v2455_v18 = vpop.f32.mrf.mxu1 }
 0x29c   : > { %3287 = vst [vmem:[%s4315_s19 + $0x470] sm:$0xff] %v2454_v16  ;;  %v2456_v19 = vadd.f32 %v2455_v18, %v2090_v17  ;;  %v2094_v20 = vpop.f32.mrf.mxu0 }
 0x29d   : > { %v2459_v21 = vpop.f32.mrf.mxu1 }
 0x29e   : > { %3288 = vst [vmem:[%s4315_s19 + $0x478] sm:$0xff] %v2456_v19  ;;  %v2460_v22 = vadd.f32 %v2459_v21, %v2094_v20  ;;  %v2096_v23 = vpop.f32.mrf.mxu0 }
 0x29f   : > { %v2461_v24 = vpop.f32.mrf.mxu1 }
 0x2a0   : > { %3291 = vst [vmem:[%s4315_s19 + $0x490] sm:$0xff] %v2460_v22  ;;  %v2462_v25 = vadd.f32 %v2461_v24, %v2096_v23  ;;  %v2100_v26 = vpop.f32.mrf.mxu0 }
 0x2a1   : > { %v2465_v27 = vpop.f32.mrf.mxu1 }
 0x2a2   : > { %3292 = vst [vmem:[%s4315_s19 + $0x498] sm:$0xff] %v2462_v25  ;;  %v2466_v28 = vadd.f32 %v2465_v27, %v2100_v26  ;;  %v2102_v29 = vpop.f32.mrf.mxu0 }
 0x2a3   : > { %v2467_v30 = vpop.f32.mrf.mxu1 }
 0x2a4   : > { %3295 = vst [vmem:[%s4315_s19 + $0x4b0] sm:$0xff] %v2466_v28  ;;  %v2468_v31 = vadd.f32 %v2467_v30, %v2102_v29  ;;  %v2106_v32 = vpop.f32.mrf.mxu0 }
 0x2a5   : > { %v2471_v33 = vpop.f32.mrf.mxu1 }
 0x2a6   : > { %3296 = vst [vmem:[%s4315_s19 + $0x4b8] sm:$0xff] %v2468_v31  ;;  %v2472_v34 = vadd.f32 %v2471_v33, %v2106_v32  ;;  %v2108_v35 = vpop.f32.mrf.mxu0 }
 0x2a7   : > { %v2473_v36 = vpop.f32.mrf.mxu1 }
 0x2a8   : > { %3299 = vst [vmem:[%s4315_s19 + $0x4d0] sm:$0xff] %v2472_v34  ;;  %v2474_v37 = vadd.f32 %v2473_v36, %v2108_v35  ;;  %v2112_v38 = vpop.f32.mrf.mxu0 }
 0x2a9   : > { %v2477_v39 = vpop.f32.mrf.mxu1 }
 0x2aa   : > { %3300 = vst [vmem:[%s4315_s19 + $0x4d8] sm:$0xff] %v2474_v37  ;;  %v2478_v40 = vadd.f32 %v2477_v39, %v2112_v38  ;;  %v2114_v41 = vpop.f32.mrf.mxu0 }
 0x2ab   : > { %v2479_v42 = vpop.f32.mrf.mxu1 }
 0x2ac   : > { %3303 = vst [vmem:[%s4315_s19 + $0x4f0] sm:$0xff] %v2478_v40  ;;  %v2480_v43 = vadd.f32 %v2479_v42, %v2114_v41  ;;  %v2118_v44 = vpop.f32.mrf.mxu0 }
 0x2ad   : > { %v2483_v45 = vpop.f32.mrf.mxu1 }
 0x2ae   : > { %3304 = vst [vmem:[%s4315_s19 + $0x4f8] sm:$0xff] %v2480_v43  ;;  %v2484_v46 = vadd.f32 %v2483_v45, %v2118_v44  ;;  %v2120_v47 = vpop.f32.mrf.mxu0 }
 0x2af   : > { %v2485_v48 = vpop.f32.mrf.mxu1 }
 0x2b0   : > { %3307 = vst [vmem:[%s4315_s19 + $0x510] sm:$0xff] %v2484_v46  ;;  %v2486_v49 = vadd.f32 %v2485_v48, %v2120_v47  ;;  %v2124_v50 = vpop.f32.mrf.mxu0 }
 0x2b1   : > { %v2489_v51 = vpop.f32.mrf.mxu1 }
 0x2b2   : > { %3308 = vst [vmem:[%s4315_s19 + $0x518] sm:$0xff] %v2486_v49  ;;  %v2490_v52 = vadd.f32 %v2489_v51, %v2124_v50  ;;  %v2126_v53 = vpop.f32.mrf.mxu0 }
 0x2b3   : > { %v2491_v54 = vpop.f32.mrf.mxu1 }
 0x2b4   : > { %3311 = vst [vmem:[%s4315_s19 + $0x530] sm:$0xff] %v2490_v52  ;;  %v2492_v55 = vadd.f32 %v2491_v54, %v2126_v53  ;;  %v2130_v56 = vpop.f32.mrf.mxu0 }
 0x2b5   : > { %v2495_v57 = vpop.f32.mrf.mxu1 }
 0x2b6   : > { %3312 = vst [vmem:[%s4315_s19 + $0x538] sm:$0xff] %v2492_v55  ;;  %v2496_v58 = vadd.f32 %v2495_v57, %v2130_v56  ;;  %v2132_v59 = vpop.f32.mrf.mxu0 }
 0x2b7   : > { %v2497_v60 = vpop.f32.mrf.mxu1 }
 0x2b8   : > { %3315 = vst [vmem:[%s4315_s19 + $0x550] sm:$0xff] %v2496_v58  ;;  %v2498_v61 = vadd.f32 %v2497_v60, %v2132_v59  ;;  %v2136_v62 = vpop.f32.mrf.mxu0 }
 0x2b9   : > { %v2501_v63 = vpop.f32.mrf.mxu1 }
 0x2ba   : > { %3316 = vst [vmem:[%s4315_s19 + $0x558] sm:$0xff] %v2498_v61  ;;  %v2502_v0 = vadd.f32 %v2501_v63, %v2136_v62  ;;  %v2138_v1 = vpop.f32.mrf.mxu0 }
 0x2bb   : > { %v2503_v2 = vpop.f32.mrf.mxu1 }
 0x2bc   : > { %3319 = vst [vmem:[%s4315_s19 + $0x570] sm:$0xff] %v2502_v0  ;;  %v2504_v3 = vadd.f32 %v2503_v2, %v2138_v1  ;;  %v2142_v4 = vpop.f32.mrf.mxu0 }
 0x2bd   : > { %v2507_v5 = vpop.f32.mrf.mxu1 }
 0x2be   : > { %3320 = vst [vmem:[%s4315_s19 + $0x578] sm:$0xff] %v2504_v3  ;;  %v2508_v6 = vadd.f32 %v2507_v5, %v2142_v4  ;;  %v2144_v7 = vpop.f32.mrf.mxu0 }
 0x2bf   : > { %v2509_v8 = vpop.f32.mrf.mxu1 }
 0x2c0   : > { %3323 = vst [vmem:[%s4315_s19 + $0x590] sm:$0xff] %v2508_v6  ;;  %v2510_v9 = vadd.f32 %v2509_v8, %v2144_v7  ;;  %v2148_v10 = vpop.f32.mrf.mxu0 }
 0x2c1   : > { %v2513_v11 = vpop.f32.mrf.mxu1 }
 0x2c2   : > { %3324 = vst [vmem:[%s4315_s19 + $0x598] sm:$0xff] %v2510_v9  ;;  %v2514_v12 = vadd.f32 %v2513_v11, %v2148_v10  ;;  %v2150_v13 = vpop.f32.mrf.mxu0 }
 0x2c3   : > { %v2515_v14 = vpop.f32.mrf.mxu1 }
 0x2c4   : > { %3327 = vst [vmem:[%s4315_s19 + $0x5b0] sm:$0xff] %v2514_v12  ;;  %v2516_v15 = vadd.f32 %v2515_v14, %v2150_v13  ;;  %v2154_v16 = vpop.f32.mrf.mxu0 }
 0x2c5   : > { %v2519_v17 = vpop.f32.mrf.mxu1 }
 0x2c6   : > { %3328 = vst [vmem:[%s4315_s19 + $0x5b8] sm:$0xff] %v2516_v15  ;;  %v2520_v18 = vadd.f32 %v2519_v17, %v2154_v16  ;;  %v2156_v19 = vpop.f32.mrf.mxu0 }
 0x2c7   : > { %v2521_v20 = vpop.f32.mrf.mxu1 }
 0x2c8   : > { %3331 = vst [vmem:[%s4315_s19 + $0x5d0] sm:$0xff] %v2520_v18  ;;  %v2522_v21 = vadd.f32 %v2521_v20, %v2156_v19  ;;  %v2160_v22 = vpop.f32.mrf.mxu0 }
 0x2c9   : > { %v2525_v23 = vpop.f32.mrf.mxu1 }
 0x2ca   : > { %3332 = vst [vmem:[%s4315_s19 + $0x5d8] sm:$0xff] %v2522_v21  ;;  %v2526_v24 = vadd.f32 %v2525_v23, %v2160_v22  ;;  %v2162_v25 = vpop.f32.mrf.mxu0 }
 0x2cb   : > { %v2527_v26 = vpop.f32.mrf.mxu1 }
 0x2cc   : > { %3335 = vst [vmem:[%s4315_s19 + $0x5f0] sm:$0xff] %v2526_v24  ;;  %v2528_v27 = vadd.f32 %v2527_v26, %v2162_v25  ;;  %v2166_v28 = vpop.f32.mrf.mxu0 }
 0x2cd   : > { %v2531_v29 = vpop.f32.mrf.mxu1 }
 0x2ce   : > { %3336 = vst [vmem:[%s4315_s19 + $0x5f8] sm:$0xff] %v2528_v27  ;;  %v2532_v30 = vadd.f32 %v2531_v29, %v2166_v28  ;;  %v2168_v31 = vpop.f32.mrf.mxu0 }
 0x2cf   : > { %v2533_v32 = vpop.f32.mrf.mxu1 }
 0x2d0   : > { %3339 = vst [vmem:[%s4315_s19 + $0x610] sm:$0xff] %v2532_v30  ;;  %v2534_v33 = vadd.f32 %v2533_v32, %v2168_v31  ;;  %v2172_v34 = vpop.f32.mrf.mxu0 }
 0x2d1   : > { %v2537_v35 = vpop.f32.mrf.mxu1 }
 0x2d2   : > { %3340 = vst [vmem:[%s4315_s19 + $0x618] sm:$0xff] %v2534_v33  ;;  %v2538_v36 = vadd.f32 %v2537_v35, %v2172_v34  ;;  %v2174_v37 = vpop.f32.mrf.mxu0 }
 0x2d3   : > { %v2539_v38 = vpop.f32.mrf.mxu1 }
 0x2d4   : > { %3343 = vst [vmem:[%s4315_s19 + $0x630] sm:$0xff] %v2538_v36  ;;  %v2540_v39 = vadd.f32 %v2539_v38, %v2174_v37 }
 0x2d6   : > { %3344 = vst [vmem:[%s4315_s19 + $0x638] sm:$0xff] %v2540_v39 }
 0x2d7   : > { %3833 = shalt.err (!%p3830_p0)
}
 0x2d8   : > { %s3834_s4 = scalar_lea.hbm %s4520_s23, 25600  ;;  %s3838_s5 = scalar_lea.hbm %s4574_s2, 51200 }
 0x2d9   : > { %p3835_p1 = scmp.ne.s32.totalorder %s4520_s23, %s3834_s4  ;;  %p3839_p9 = scmp.lt.s32.totalorder %s4520_s23, %s4574_s2 }
 0x2da   : > { %p3840_p11 = scmp.lt.s32.totalorder %s3838_s5, %s3834_s4 }
 0x2db   : > { %p3836_p5 = pnand %p3835_p1, %p4591_p12 }
 0x2dc   : > { %p3841_p2 = por %p3840_p11, %p3839_p9 }
 0x2dd   : > { %p3837_p7 = pneg %p3836_p5 }
 0x2df   : > { %p3842_p3 = pnand %p3841_p2, %p3837_p7 }
 0x2e1   : > { %3845 = shalt.err (!%p3842_p3)
}
 0x2e2   : > { %s3912_s15 = smov 512   ;;  %s3913_s17 = smov 1024  }
 0x2e3   : > { %s3914_s19 = smov 32  }
 0x2e4   : > { %3493 = dma.vmem_to_hbm [thread:$0]  (%p4591_p12), %s4522_s30, 25600, %s4520_s23, %s3346_s12, %s3912_s15, %s3913_s17, %s3914_s19  }
 0x2e5 PF: > { %s4592_s22 = sld [smem:[#allocation12_spill]]  ;;  %s3377_s16 = sand.u32 1, %s3884_s9  }
 0x2e6   : > { %p4593_p13 = scmp.ne.s32.totalorder %s4585_s21, 0  ;;  %s3378_s18 = scalar_lea.sflag [#allocation5], %s3377_s16 }
 0x2eb   : > { %p4594_p4 = scmp.ge.s32.totalorder %s4592_s22, 2 }
 0x2ed   : > { %p3504_p6 = pnand %p4594_p4, %p4593_p13 }
 0x2ef   : > { %p3505_p8 = pneg %p3504_p6 }
 0x2f1   : > { %3879 = dma.done.wait (%p3505_p8), %s3378_s18, 25600  }
 0x2f2   : > { %3881 = vsyncadd (%p3505_p8), %s3378_s18, 4294941696  ;;  %s19_s25 = sadd.s32 1, %s4592_s22   ;;  %s4595_s9 = smov %s3888_s10 }
 0x2f3   : > { %p16_p10 = scmp.ge.s32.totalorder %s19_s25, 4   ;;  %s4596_s10 = smov %s3892_s11 }
 0x2f4   : > { %s4597_s11 = smov %s4033_s14  ;;  %s4598_s12 = smov %s3900_s13 }
 0x2f5   : > { %s4599_s13 = smov %s4602_s27  ;;  %s4600_s14 = smov %s19_s25 }
 0x2f6   :  { %18 = sbr.rel (!%p16_p10) target bundleno = 7 (0x7), region = 87 }
 0x2fb   :  { %3383 = vsyncpa [#allocation4], 1 }
 0x2fc   :  { %3385 = vsyncpa [#allocation4 + $0x1], 1 }
 0x2fd   :  { %3386 = vsyncpa [#allocation7], 1 }
 0x2fe   :  { %3388 = vsyncpa [#allocation7 + $0x1], 1 }
 0x2ff   :  { %3389 = vsyncpa [#allocation5], 1 }
 0x300   :  { %3391 = vsyncpa [#allocation5 + $0x1], 1 }

</bundles_post_ra>
